<compile_context>
chip_gen: v7x
topology: tpu7x:2x2x1
jax: 0.10.0
libtpu: 0.0.40
codegen_flags: <defaults>
</compile_context>

<pallas_src>
import jax
import jax.numpy as jnp
from jax.experimental import pallas as pl
from jax.experimental.pallas import tpu as pltpu

# ---------------- model hyper-parameters ----------------
B = 2                # batch
S = 8                # sequence length
H = 32               # hidden_size
NUM_HEADS = 4
HEAD_DIM = H // NUM_HEADS
BH = B * NUM_HEADS   # merged (batch, head) dim used inside the kernel
BS = B * S           # flattened token count
I = 64               # intermediate (FFN) size
MID = 16             # config.mid_size
NUM_LABELS = 4       # len(config.label_list)
OUT_PAD = 128        # lane-dense padded classifier output width
VOCAB = 100
NUM_LAYERS = 2

_SCALE = 1.0 / (float(HEAD_DIM) ** 0.5)


def _ln(x, g, b, eps=1e-12):
    # x: (rows, H), g/b: (1, H); all f32
    mu = jnp.mean(x, axis=-1, keepdims=True)
    var = jnp.mean((x - mu) ** 2, axis=-1, keepdims=True)
    return (x - mu) * jax.lax.rsqrt(var + eps) * g + b


# --------------------------- fused model kernel ---------------------------
def fused_model_kernel(x_ref, bias_ref,
                       wqkv_ref, bqkv_ref,
                       wo_ref, bo_ref, ln1g_ref, ln1b_ref,
                       w1_ref, b1_ref, w2_ref, b2_ref,
                       ln2g_ref, ln2b_ref,
                       wh_ref, bh_ref, wf_ref, bf_ref,
                       out_ref):
    f32 = jnp.float32
    bf16 = jnp.bfloat16

    x = x_ref[...]          # (BS, H) f32 activations
    bias = bias_ref[...]    # (BH, S, S) f32 additive attention mask (hoisted)

    for l in range(NUM_LAYERS):                       # static unroll (L = 2)
        # ---- fused Q/K/V projection (single head-batched einsum) ----
        x_b = jnp.broadcast_to(
            x.reshape(B, S, H)[None, :, None, :, :],
            (3, B, NUM_HEADS, S, H)).reshape(3 * BH, S, H).astype(bf16)
        qkv = jnp.einsum('bsk,bkd->bsd', x_b, wqkv_ref[l],
                         preferred_element_type=f32) + bqkv_ref[l]  # (3*BH,S,HD)
        q = qkv[0 * BH:1 * BH]      # (BH, S, HD); 1/sqrt(HD) pre-folded into Wq
        k = qkv[1 * BH:2 * BH]
        v = qkv[2 * BH:3 * BH]

        # ---- attention scores / softmax (f32) ----
        s = jnp.einsum('bqd,bkd->bqk', q.astype(bf16), k.astype(bf16),
                       preferred_element_type=f32) + bias           # (BH, S, S)
        s = s - jnp.max(s, axis=-1, keepdims=True)
        p = jnp.exp(s)
        p = p * pl.reciprocal(jnp.sum(p, axis=-1, keepdims=True), approx=True)

        ctx = jnp.einsum('bqk,bkd->bqd', p.astype(bf16), v.astype(bf16),
                         preferred_element_type=f32)                 # (BH, S, HD)
        partial = jnp.einsum('bsd,bdo->bso', ctx.astype(bf16), wo_ref[l],
                             preferred_element_type=f32)             # (BH, S, H)

        # merge heads: sum per-head partial outputs (leading-dim slices only)
        p4 = partial.reshape(B, NUM_HEADS, S, H)
        attn4 = p4[:, 0]
        for h_ in range(1, NUM_HEADS):
            attn4 = attn4 + p4[:, h_]
        attn = attn4.reshape(BS, H) + bo_ref[l]

        h1 = _ln(x + attn, ln1g_ref[l], ln1b_ref[l])

        # ---- feed-forward ----
        ffn = jnp.dot(h1.astype(bf16), w1_ref[l],
                      preferred_element_type=f32) + b1_ref[l]
        ffn = jax.nn.gelu(ffn, approximate=True)                    # f32
        ffn = jnp.dot(ffn.astype(bf16), w2_ref[l],
                      preferred_element_type=f32) + b2_ref[l]

        x = _ln(h1 + ffn, ln2g_ref[l], ln2b_ref[l])

    # ---- classification head on all rows (CLS rows selected in wrapper);
    #      Dropout is identity at inference. Output is lane-dense (BS, 128). ----
    hid = jnp.tanh(jnp.dot(x.astype(bf16), wh_ref[...],
                           preferred_element_type=f32) + bh_ref[...])
    logits = jnp.dot(hid.astype(bf16), wf_ref[...],
                     preferred_element_type=f32) + bf_ref[...]
    out_ref[...] = jax.nn.sigmoid(logits)


def run_model(x2, bias_bh, kernel_params):
    vmem = pl.BlockSpec(memory_space=pltpu.MemorySpace.VMEM)
    n_in = 2 + len(kernel_params)
    return pl.pallas_call(
        fused_model_kernel,
        out_shape=jax.ShapeDtypeStruct((BS, OUT_PAD), jnp.float32),
        in_specs=[vmem] * n_in,
        out_specs=vmem,
    )(x2, bias_bh, *kernel_params)


# ------------------------------ parameter init ------------------------------
def init_params(key):
    def nrm(k, shape, scale=0.02):
        return scale * jax.random.normal(k, shape, dtype=jnp.float32)

    keys = jax.random.split(key, 8 + NUM_LAYERS)
    params = {
        "word_emb": nrm(keys[0], (VOCAB, H)),
        "pos_emb": nrm(keys[1], (S, H)),
        "type_emb": nrm(keys[2], (2, H)),
        "emb_ln_g": jnp.ones((1, H), jnp.float32),
        "emb_ln_b": jnp.zeros((1, H), jnp.float32),
        "layers": [],
        "wh": nrm(keys[3], (H, MID)),
        "bh": jnp.zeros((1, MID), jnp.float32),
        "wf": nrm(keys[4], (MID, NUM_LABELS)),
        "bf": jnp.zeros((1, NUM_LABELS), jnp.float32),
    }
    for l in range(NUM_LAYERS):
        lk = jax.random.split(keys[8 + l], 6)
        layer = (
            nrm(lk[0], (H, H)), jnp.zeros((1, H), jnp.float32),   # wq, bq
            nrm(lk[1], (H, H)), jnp.zeros((1, H), jnp.float32),   # wk, bk
            nrm(lk[2], (H, H)), jnp.zeros((1, H), jnp.float32),   # wv, bv
            nrm(lk[3], (H, H)), jnp.zeros((1, H), jnp.float32),   # wo, bo
            jnp.ones((1, H), jnp.float32), jnp.zeros((1, H), jnp.float32),  # ln1
            nrm(lk[4], (H, I)), jnp.zeros((1, I), jnp.float32),   # w1, b1
            nrm(lk[5], (I, H)), jnp.zeros((1, H), jnp.float32),   # w2, b2
            jnp.ones((1, H), jnp.float32), jnp.zeros((1, H), jnp.float32),  # ln2
        )
        params["layers"].append(layer)
    return params


def build_kernel_params(params):
    """Stack per-layer weights, split attention heads (so the kernel never
    slices the lane dim), fuse Q/K/V along the leading batch dim, fold the
    1/sqrt(head_dim) scale into Wq/bq, cast matmul weights to bf16, and
    zero-pad the classifier output to a lane-dense 128-wide slab."""
    bf16 = jnp.bfloat16

    def tile_over_batch(a):            # (NH, ...) -> (B*NH, ...)
        return jnp.broadcast_to(a[None], (B,) + a.shape).reshape((BH,) + a.shape[1:])

    def split_w(w, scale=1.0):         # (H, H) -> (B*NH, H, HD), f32
        return tile_over_batch(
            (w * scale).reshape(H, NUM_HEADS, HEAD_DIM).transpose(1, 0, 2))

    def split_b(b, scale=1.0):         # (1, H) -> (B*NH, 1, HD), f32
        return tile_over_batch((b * scale).reshape(NUM_HEADS, 1, HEAD_DIM))

    wqkv, bqkv = [], []
    wo, bo, l1g, l1b = [], [], [], []
    w1, b1, w2, b2, l2g, l2b = [], [], [], [], [], []
    for (lwq, lbq, lwk, lbk, lwv, lbv, lwo, lbo,
         g1, be1, lw1, lb1, lw2, lb2, g2, be2) in params["layers"]:
        # order along the leading dim: [Q (pre-scaled), K, V] x (B*NH)
        wqkv.append(jnp.concatenate(
            [split_w(lwq, _SCALE), split_w(lwk), split_w(lwv)],
            axis=0).astype(bf16))                                   # (3*BH, H, HD)
        bqkv.append(jnp.concatenate(
            [split_b(lbq, _SCALE), split_b(lbk), split_b(lbv)],
            axis=0))                                                # (3*BH, 1, HD)
        wo.append(tile_over_batch(lwo.reshape(NUM_HEADS, HEAD_DIM, H)).astype(bf16))
        bo.append(lbo); l1g.append(g1); l1b.append(be1)
        w1.append(lw1.astype(bf16)); b1.append(lb1)
        w2.append(lw2.astype(bf16)); b2.append(lb2)
        l2g.append(g2); l2b.append(be2)

    stack = lambda xs: jnp.stack(xs, axis=0)
    wf_pad = jnp.zeros((MID, OUT_PAD), jnp.float32).at[:, :NUM_LABELS].set(params["wf"])
    bf_pad = jnp.zeros((1, OUT_PAD), jnp.float32).at[:, :NUM_LABELS].set(params["bf"])

    return (stack(wqkv), stack(bqkv),
            stack(wo), stack(bo), stack(l1g), stack(l1b),
            stack(w1), stack(b1), stack(w2), stack(b2), stack(l2g), stack(l2b),
            params["wh"].astype(bf16), params["bh"],
            wf_pad.astype(bf16), bf_pad)


# --------------------------------- forward ----------------------------------
def forward(params, kernel_params, input_ids, attention_mask, token_type_ids):
    # TODO(synk): embedding gather (data-dependent indexing) + embedding LN
    # kept as plain-JAX glue; XLA fuses this tiny prologue.
    emb = (params["word_emb"][input_ids]
           + params["pos_emb"][None, :, :]
           + params["type_emb"][token_type_ids])                 # (B, S, H)
    mu = jnp.mean(emb, axis=-1, keepdims=True)
    var = jnp.mean((emb - mu) ** 2, axis=-1, keepdims=True)
    x = ((emb - mu) * jax.lax.rsqrt(var + 1e-12)
         * params["emb_ln_g"][None] + params["emb_ln_b"][None])
    x2 = x.reshape(BS, H)

    # additive attention-mask bias, pre-broadcast to (B*NUM_HEADS, S, S)
    bias = (attention_mask.astype(jnp.float32) - 1.0) * 1e9       # (B, S)
    bias_bh = jnp.broadcast_to(bias[:, None, None, :],
                               (B, NUM_HEADS, S, S)).reshape(BH, S, S)

    out = run_model(x2, bias_bh, kernel_params)                   # (BS, 128)
    return out[0::S, :NUM_LABELS]                                 # CLS rows -> (B, 4)


if __name__ == "__main__":
    key = jax.random.PRNGKey(0)
    pkey, ikey, tkey = jax.random.split(key, 3)

    params = init_params(pkey)
    kernel_params = build_kernel_params(params)

    input_ids = jax.random.randint(ikey, (B, S), 0, VOCAB, dtype=jnp.int32)
    attention_mask = jnp.array(
        [[1] * S, [1] * (S - 2) + [0, 0]], dtype=jnp.int32)       # pad last 2 of row 1
    token_type_ids = jax.random.randint(tkey, (B, S), 0, 2, dtype=jnp.int32)

    fwd = jax.jit(forward)
    probs = fwd(params, kernel_params, input_ids, attention_mask, token_type_ids)
    probs = jax.block_until_ready(probs)

    assert probs.shape == (B, NUM_LABELS)
    assert bool(jnp.all((probs >= 0.0) & (probs <= 1.0)))
    print("KERNEL_OK")
</pallas_src>

<mosaic_0001>
module attributes {stable_mosaic.version = 11 : i64} {
  func.func @fused_model_kernel(%arg0: memref<16x32xf32, #tpu.memory_space<vmem>>, %arg1: memref<8x8x8xf32, #tpu.memory_space<vmem>>, %arg2: memref<2x24x32x8xbf16, #tpu.memory_space<vmem>>, %arg3: memref<2x24x1x8xf32, #tpu.memory_space<vmem>>, %arg4: memref<2x8x8x32xbf16, #tpu.memory_space<vmem>>, %arg5: memref<2x1x32xf32, #tpu.memory_space<vmem>>, %arg6: memref<2x1x32xf32, #tpu.memory_space<vmem>>, %arg7: memref<2x1x32xf32, #tpu.memory_space<vmem>>, %arg8: memref<2x32x64xbf16, #tpu.memory_space<vmem>>, %arg9: memref<2x1x64xf32, #tpu.memory_space<vmem>>, %arg10: memref<2x64x32xbf16, #tpu.memory_space<vmem>>, %arg11: memref<2x1x32xf32, #tpu.memory_space<vmem>>, %arg12: memref<2x1x32xf32, #tpu.memory_space<vmem>>, %arg13: memref<2x1x32xf32, #tpu.memory_space<vmem>>, %arg14: memref<32x16xbf16, #tpu.memory_space<vmem>>, %arg15: memref<1x16xf32, #tpu.memory_space<vmem>>, %arg16: memref<16x128xbf16, #tpu.memory_space<vmem>>, %arg17: memref<1x128xf32, #tpu.memory_space<vmem>>, %arg18: memref<16x128xf32, #tpu.memory_space<vmem>>) attributes {dimension_semantics = [], scalar_prefetch = 0 : i64, scratch_operands = 0 : i64, tpu.core_type = #tpu.core_type<tc>} {
    %c0 = arith.constant 0 : index
    %c0_0 = arith.constant 0 : index
    %0 = vector.load %arg0[%c0, %c0_0] : memref<16x32xf32, #tpu.memory_space<vmem>>, vector<16x32xf32>
    %c0_1 = arith.constant 0 : index
    %c0_2 = arith.constant 0 : index
    %c0_3 = arith.constant 0 : index
    %1 = vector.load %arg1[%c0_1, %c0_2, %c0_3] : memref<8x8x8xf32, #tpu.memory_space<vmem>>, vector<8x8x8xf32>
    %2 = vector.shape_cast %0 : vector<16x32xf32> to vector<2x8x32xf32>
    %3 = vector.shape_cast %2 : vector<2x8x32xf32> to vector<1x2x1x8x32xf32>
    %4 = vector.shape_cast %3 : vector<1x2x1x8x32xf32> to vector<1x2x1x8x32xf32>
    %5 = vector.broadcast %4 : vector<1x2x1x8x32xf32> to vector<3x2x4x8x32xf32>
    %6 = vector.shape_cast %5 : vector<3x2x4x8x32xf32> to vector<24x8x32xf32>
    %7 = arith.truncf %6 : vector<24x8x32xf32> to vector<24x8x32xbf16>
    %c0_4 = arith.constant 0 : index
    %c0_5 = arith.constant 0 : index
    %c0_6 = arith.constant 0 : index
    %c0_7 = arith.constant 0 : index
    %8 = vector.load %arg2[%c0_4, %c0_5, %c0_6, %c0_7] : memref<2x24x32x8xbf16, #tpu.memory_space<vmem>>, vector<1x24x32x8xbf16>
    %9 = vector.shape_cast %8 : vector<1x24x32x8xbf16> to vector<24x32x8xbf16>
    "tpu.trace_start"() <{level = 10 : i32, message = "bsk,bkd->bsd"}> : () -> ()
    %cst = arith.constant dense<0.000000e+00> : vector<24x8x8xf32>
    %10 = tpu.matmul %7, %9, %cst {dimension_numbers = #tpu.dot_dimension_numbers<[2], [1], [1], [2], [0, 0, 0, 1, 1, 2], [0], [0]>} : vector<24x8x32xbf16>, vector<24x32x8xbf16>, vector<24x8x8xf32> -> vector<24x8x8xf32>
    "tpu.trace_stop"() : () -> ()
    %c0_8 = arith.constant 0 : index
    %c0_9 = arith.constant 0 : index
    %c0_10 = arith.constant 0 : index
    %c0_11 = arith.constant 0 : index
    %11 = vector.load %arg3[%c0_8, %c0_9, %c0_10, %c0_11] : memref<2x24x1x8xf32, #tpu.memory_space<vmem>>, vector<1x24x1x8xf32>
    %12 = vector.shape_cast %11 : vector<1x24x1x8xf32> to vector<24x1x8xf32>
    %13 = vector.broadcast %12 : vector<24x1x8xf32> to vector<24x8x8xf32>
    %14 = arith.addf %10, %13 : vector<24x8x8xf32>
    %15 = vector.extract_strided_slice %14 {offsets = [0, 0, 0], sizes = [8, 8, 8], strides = [1, 1, 1]} : vector<24x8x8xf32> to vector<8x8x8xf32>
    %16 = vector.extract_strided_slice %14 {offsets = [8, 0, 0], sizes = [8, 8, 8], strides = [1, 1, 1]} : vector<24x8x8xf32> to vector<8x8x8xf32>
    %17 = vector.extract_strided_slice %14 {offsets = [16, 0, 0], sizes = [8, 8, 8], strides = [1, 1, 1]} : vector<24x8x8xf32> to vector<8x8x8xf32>
    %18 = arith.truncf %15 : vector<8x8x8xf32> to vector<8x8x8xbf16>
    %19 = arith.truncf %16 : vector<8x8x8xf32> to vector<8x8x8xbf16>
    "tpu.trace_start"() <{level = 10 : i32, message = "bqd,bkd->bqk"}> : () -> ()
    %cst_12 = arith.constant dense<0.000000e+00> : vector<8x8x8xf32>
    %20 = tpu.matmul %18, %19, %cst_12 {dimension_numbers = #tpu.dot_dimension_numbers<[2], [2], [1], [1], [0, 0, 0, 1, 1, 1], [0], [0]>} : vector<8x8x8xbf16>, vector<8x8x8xbf16>, vector<8x8x8xf32> -> vector<8x8x8xf32>
    "tpu.trace_stop"() : () -> ()
    %21 = arith.addf %20, %1 : vector<8x8x8xf32>
    %cst_13 = arith.constant dense<0xFF800000> : vector<8x8xf32>
    %22 = vector.multi_reduction <maximumf>, %21, %cst_13 [2] : vector<8x8x8xf32> to vector<8x8xf32>
    %23 = vector.shape_cast %22 : vector<8x8xf32> to vector<8x8x1xf32>
    %24 = vector.broadcast %23 : vector<8x8x1xf32> to vector<8x8x8xf32>
    %25 = arith.subf %21, %24 : vector<8x8x8xf32>
    %26 = math.exp %25 : vector<8x8x8xf32>
    %cst_14 = arith.constant dense<0.000000e+00> : vector<8x8xf32>
    %27 = vector.multi_reduction <add>, %26, %cst_14 [2] : vector<8x8x8xf32> to vector<8x8xf32>
    %28 = vector.shape_cast %27 : vector<8x8xf32> to vector<8x8x1xf32>
    %29 = tpu.reciprocal %28 {approx = true} : vector<8x8x1xf32> -> vector<8x8x1xf32>
    %30 = vector.broadcast %29 : vector<8x8x1xf32> to vector<8x8x8xf32>
    %31 = arith.mulf %26, %30 : vector<8x8x8xf32>
    %32 = arith.truncf %31 : vector<8x8x8xf32> to vector<8x8x8xbf16>
    %33 = arith.truncf %17 : vector<8x8x8xf32> to vector<8x8x8xbf16>
    "tpu.trace_start"() <{level = 10 : i32, message = "bqk,bkd->bqd"}> : () -> ()
    %cst_15 = arith.constant dense<0.000000e+00> : vector<8x8x8xf32>
    %34 = tpu.matmul %32, %33, %cst_15 {dimension_numbers = #tpu.dot_dimension_numbers<[2], [1], [1], [2], [0, 0, 0, 1, 1, 2], [0], [0]>} : vector<8x8x8xbf16>, vector<8x8x8xbf16>, vector<8x8x8xf32> -> vector<8x8x8xf32>
    "tpu.trace_stop"() : () -> ()
    %35 = arith.truncf %34 : vector<8x8x8xf32> to vector<8x8x8xbf16>
    %c0_16 = arith.constant 0 : index
    %c0_17 = arith.constant 0 : index
    %c0_18 = arith.constant 0 : index
    %c0_19 = arith.constant 0 : index
    %36 = vector.load %arg4[%c0_16, %c0_17, %c0_18, %c0_19] : memref<2x8x8x32xbf16, #tpu.memory_space<vmem>>, vector<1x8x8x32xbf16>
    %37 = vector.shape_cast %36 : vector<1x8x8x32xbf16> to vector<8x8x32xbf16>
    "tpu.trace_start"() <{level = 10 : i32, message = "bsd,bdo->bso"}> : () -> ()
    %cst_20 = arith.constant dense<0.000000e+00> : vector<8x8x32xf32>
    %38 = tpu.matmul %35, %37, %cst_20 {dimension_numbers = #tpu.dot_dimension_numbers<[2], [1], [1], [2], [0, 0, 0, 1, 1, 2], [0], [0]>} : vector<8x8x8xbf16>, vector<8x8x32xbf16>, vector<8x8x32xf32> -> vector<8x8x32xf32>
    "tpu.trace_stop"() : () -> ()
    %39 = vector.shape_cast %38 : vector<8x8x32xf32> to vector<2x4x8x32xf32>
    %40 = vector.extract_strided_slice %39 {offsets = [0, 0, 0, 0], sizes = [2, 1, 8, 32], strides = [1, 1, 1, 1]} : vector<2x4x8x32xf32> to vector<2x1x8x32xf32>
    %41 = vector.shape_cast %40 : vector<2x1x8x32xf32> to vector<2x8x32xf32>
    %42 = vector.extract_strided_slice %39 {offsets = [0, 1, 0, 0], sizes = [2, 1, 8, 32], strides = [1, 1, 1, 1]} : vector<2x4x8x32xf32> to vector<2x1x8x32xf32>
    %43 = vector.shape_cast %42 : vector<2x1x8x32xf32> to vector<2x8x32xf32>
    %44 = arith.addf %41, %43 : vector<2x8x32xf32>
    %45 = vector.extract_strided_slice %39 {offsets = [0, 2, 0, 0], sizes = [2, 1, 8, 32], strides = [1, 1, 1, 1]} : vector<2x4x8x32xf32> to vector<2x1x8x32xf32>
    %46 = vector.shape_cast %45 : vector<2x1x8x32xf32> to vector<2x8x32xf32>
    %47 = arith.addf %44, %46 : vector<2x8x32xf32>
    %48 = vector.extract_strided_slice %39 {offsets = [0, 3, 0, 0], sizes = [2, 1, 8, 32], strides = [1, 1, 1, 1]} : vector<2x4x8x32xf32> to vector<2x1x8x32xf32>
    %49 = vector.shape_cast %48 : vector<2x1x8x32xf32> to vector<2x8x32xf32>
    %50 = arith.addf %47, %49 : vector<2x8x32xf32>
    %51 = vector.shape_cast %50 : vector<2x8x32xf32> to vector<16x32xf32>
    %c0_21 = arith.constant 0 : index
    %c0_22 = arith.constant 0 : index
    %c0_23 = arith.constant 0 : index
    %52 = vector.load %arg5[%c0_21, %c0_22, %c0_23] : memref<2x1x32xf32, #tpu.memory_space<vmem>>, vector<1x1x32xf32>
    %53 = vector.shape_cast %52 : vector<1x1x32xf32> to vector<1x32xf32>
    %54 = vector.broadcast %53 : vector<1x32xf32> to vector<16x32xf32>
    %55 = arith.addf %51, %54 : vector<16x32xf32>
    %56 = arith.addf %0, %55 : vector<16x32xf32>
    %c0_24 = arith.constant 0 : index
    %c0_25 = arith.constant 0 : index
    %c0_26 = arith.constant 0 : index
    %57 = vector.load %arg6[%c0_24, %c0_25, %c0_26] : memref<2x1x32xf32, #tpu.memory_space<vmem>>, vector<1x1x32xf32>
    %58 = vector.shape_cast %57 : vector<1x1x32xf32> to vector<1x32xf32>
    %c0_27 = arith.constant 0 : index
    %c0_28 = arith.constant 0 : index
    %c0_29 = arith.constant 0 : index
    %59 = vector.load %arg7[%c0_27, %c0_28, %c0_29] : memref<2x1x32xf32, #tpu.memory_space<vmem>>, vector<1x1x32xf32>
    %60 = vector.shape_cast %59 : vector<1x1x32xf32> to vector<1x32xf32>
    %cst_30 = arith.constant dense<0.000000e+00> : vector<16xf32>
    %61 = vector.multi_reduction <add>, %56, %cst_30 [1] : vector<16x32xf32> to vector<16xf32>
    %62 = vector.shape_cast %61 : vector<16xf32> to vector<16x1xf32>
    %cst_31 = arith.constant 3.200000e+01 : f32
    %63 = vector.broadcast %cst_31 : f32 to vector<16x1xf32>
    %64 = arith.divf %62, %63 : vector<16x1xf32>
    %65 = vector.broadcast %64 : vector<16x1xf32> to vector<16x32xf32>
    %66 = arith.subf %56, %65 : vector<16x32xf32>
    %67 = arith.mulf %66, %66 : vector<16x32xf32>
    %cst_32 = arith.constant dense<0.000000e+00> : vector<16xf32>
    %68 = vector.multi_reduction <add>, %67, %cst_32 [1] : vector<16x32xf32> to vector<16xf32>
    %69 = vector.shape_cast %68 : vector<16xf32> to vector<16x1xf32>
    %cst_33 = arith.constant 3.200000e+01 : f32
    %70 = vector.broadcast %cst_33 : f32 to vector<16x1xf32>
    %71 = arith.divf %69, %70 : vector<16x1xf32>
    %72 = vector.broadcast %64 : vector<16x1xf32> to vector<16x32xf32>
    %73 = arith.subf %56, %72 : vector<16x32xf32>
    %cst_34 = arith.constant 9.99999996E-13 : f32
    %74 = vector.broadcast %cst_34 : f32 to vector<16x1xf32>
    %75 = arith.addf %71, %74 : vector<16x1xf32>
    %76 = math.rsqrt %75 : vector<16x1xf32>
    %77 = vector.broadcast %76 : vector<16x1xf32> to vector<16x32xf32>
    %78 = arith.mulf %73, %77 : vector<16x32xf32>
    %79 = vector.broadcast %58 : vector<1x32xf32> to vector<16x32xf32>
    %80 = arith.mulf %78, %79 : vector<16x32xf32>
    %81 = vector.broadcast %60 : vector<1x32xf32> to vector<16x32xf32>
    %82 = arith.addf %80, %81 : vector<16x32xf32>
    %83 = arith.truncf %82 : vector<16x32xf32> to vector<16x32xbf16>
    %c0_35 = arith.constant 0 : index
    %c0_36 = arith.constant 0 : index
    %c0_37 = arith.constant 0 : index
    %84 = vector.load %arg8[%c0_35, %c0_36, %c0_37] : memref<2x32x64xbf16, #tpu.memory_space<vmem>>, vector<1x32x64xbf16>
    %85 = vector.shape_cast %84 : vector<1x32x64xbf16> to vector<32x64xbf16>
    %cst_38 = arith.constant dense<0.000000e+00> : vector<16x64xf32>
    %86 = tpu.matmul %83, %85, %cst_38 {dimension_numbers = #tpu.dot_dimension_numbers<[1], [0], [0], [1], [0, 0, 1, 1], [], []>} : vector<16x32xbf16>, vector<32x64xbf16>, vector<16x64xf32> -> vector<16x64xf32>
    %c0_39 = arith.constant 0 : index
    %c0_40 = arith.constant 0 : index
    %c0_41 = arith.constant 0 : index
    %87 = vector.load %arg9[%c0_39, %c0_40, %c0_41] : memref<2x1x64xf32, #tpu.memory_space<vmem>>, vector<1x1x64xf32>
    %88 = vector.shape_cast %87 : vector<1x1x64xf32> to vector<1x64xf32>
    %89 = vector.broadcast %88 : vector<1x64xf32> to vector<16x64xf32>
    %90 = arith.addf %86, %89 : vector<16x64xf32>
    %91 = arith.mulf %90, %90 : vector<16x64xf32>
    %92 = arith.mulf %90, %91 : vector<16x64xf32>
    %cst_42 = arith.constant 4.471500e-02 : f32
    %93 = vector.broadcast %cst_42 : f32 to vector<16x64xf32>
    %94 = arith.mulf %93, %92 : vector<16x64xf32>
    %95 = arith.addf %90, %94 : vector<16x64xf32>
    %cst_43 = arith.constant 0.797884583 : f32
    %96 = vector.broadcast %cst_43 : f32 to vector<16x64xf32>
    %97 = arith.mulf %96, %95 : vector<16x64xf32>
    %98 = math.tanh %97 : vector<16x64xf32>
    %cst_44 = arith.constant 1.000000e+00 : f32
    %99 = vector.broadcast %cst_44 : f32 to vector<16x64xf32>
    %100 = arith.addf %99, %98 : vector<16x64xf32>
    %cst_45 = arith.constant 5.000000e-01 : f32
    %101 = vector.broadcast %cst_45 : f32 to vector<16x64xf32>
    %102 = arith.mulf %101, %100 : vector<16x64xf32>
    %103 = arith.mulf %90, %102 : vector<16x64xf32>
    %104 = arith.truncf %103 : vector<16x64xf32> to vector<16x64xbf16>
    %c0_46 = arith.constant 0 : index
    %c0_47 = arith.constant 0 : index
    %c0_48 = arith.constant 0 : index
    %105 = vector.load %arg10[%c0_46, %c0_47, %c0_48] : memref<2x64x32xbf16, #tpu.memory_space<vmem>>, vector<1x64x32xbf16>
    %106 = vector.shape_cast %105 : vector<1x64x32xbf16> to vector<64x32xbf16>
    %cst_49 = arith.constant dense<0.000000e+00> : vector<16x32xf32>
    %107 = tpu.matmul %104, %106, %cst_49 {dimension_numbers = #tpu.dot_dimension_numbers<[1], [0], [0], [1], [0, 0, 1, 1], [], []>} : vector<16x64xbf16>, vector<64x32xbf16>, vector<16x32xf32> -> vector<16x32xf32>
    %c0_50 = arith.constant 0 : index
    %c0_51 = arith.constant 0 : index
    %c0_52 = arith.constant 0 : index
    %108 = vector.load %arg11[%c0_50, %c0_51, %c0_52] : memref<2x1x32xf32, #tpu.memory_space<vmem>>, vector<1x1x32xf32>
    %109 = vector.shape_cast %108 : vector<1x1x32xf32> to vector<1x32xf32>
    %110 = vector.broadcast %109 : vector<1x32xf32> to vector<16x32xf32>
    %111 = arith.addf %107, %110 : vector<16x32xf32>
    %112 = arith.addf %82, %111 : vector<16x32xf32>
    %c0_53 = arith.constant 0 : index
    %c0_54 = arith.constant 0 : index
    %c0_55 = arith.constant 0 : index
    %113 = vector.load %arg12[%c0_53, %c0_54, %c0_55] : memref<2x1x32xf32, #tpu.memory_space<vmem>>, vector<1x1x32xf32>
    %114 = vector.shape_cast %113 : vector<1x1x32xf32> to vector<1x32xf32>
    %c0_56 = arith.constant 0 : index
    %c0_57 = arith.constant 0 : index
    %c0_58 = arith.constant 0 : index
    %115 = vector.load %arg13[%c0_56, %c0_57, %c0_58] : memref<2x1x32xf32, #tpu.memory_space<vmem>>, vector<1x1x32xf32>
    %116 = vector.shape_cast %115 : vector<1x1x32xf32> to vector<1x32xf32>
    %cst_59 = arith.constant dense<0.000000e+00> : vector<16xf32>
    %117 = vector.multi_reduction <add>, %112, %cst_59 [1] : vector<16x32xf32> to vector<16xf32>
    %118 = vector.shape_cast %117 : vector<16xf32> to vector<16x1xf32>
    %cst_60 = arith.constant 3.200000e+01 : f32
    %119 = vector.broadcast %cst_60 : f32 to vector<16x1xf32>
    %120 = arith.divf %118, %119 : vector<16x1xf32>
    %121 = vector.broadcast %120 : vector<16x1xf32> to vector<16x32xf32>
    %122 = arith.subf %112, %121 : vector<16x32xf32>
    %123 = arith.mulf %122, %122 : vector<16x32xf32>
    %cst_61 = arith.constant dense<0.000000e+00> : vector<16xf32>
    %124 = vector.multi_reduction <add>, %123, %cst_61 [1] : vector<16x32xf32> to vector<16xf32>
    %125 = vector.shape_cast %124 : vector<16xf32> to vector<16x1xf32>
    %cst_62 = arith.constant 3.200000e+01 : f32
    %126 = vector.broadcast %cst_62 : f32 to vector<16x1xf32>
    %127 = arith.divf %125, %126 : vector<16x1xf32>
    %128 = vector.broadcast %120 : vector<16x1xf32> to vector<16x32xf32>
    %129 = arith.subf %112, %128 : vector<16x32xf32>
    %cst_63 = arith.constant 9.99999996E-13 : f32
    %130 = vector.broadcast %cst_63 : f32 to vector<16x1xf32>
    %131 = arith.addf %127, %130 : vector<16x1xf32>
    %132 = math.rsqrt %131 : vector<16x1xf32>
    %133 = vector.broadcast %132 : vector<16x1xf32> to vector<16x32xf32>
    %134 = arith.mulf %129, %133 : vector<16x32xf32>
    %135 = vector.broadcast %114 : vector<1x32xf32> to vector<16x32xf32>
    %136 = arith.mulf %134, %135 : vector<16x32xf32>
    %137 = vector.broadcast %116 : vector<1x32xf32> to vector<16x32xf32>
    %138 = arith.addf %136, %137 : vector<16x32xf32>
    %139 = vector.shape_cast %138 : vector<16x32xf32> to vector<2x8x32xf32>
    %140 = vector.shape_cast %139 : vector<2x8x32xf32> to vector<1x2x1x8x32xf32>
    %141 = vector.shape_cast %140 : vector<1x2x1x8x32xf32> to vector<1x2x1x8x32xf32>
    %142 = vector.broadcast %141 : vector<1x2x1x8x32xf32> to vector<3x2x4x8x32xf32>
    %143 = vector.shape_cast %142 : vector<3x2x4x8x32xf32> to vector<24x8x32xf32>
    %144 = arith.truncf %143 : vector<24x8x32xf32> to vector<24x8x32xbf16>
    %c1 = arith.constant 1 : index
    %c0_64 = arith.constant 0 : index
    %c0_65 = arith.constant 0 : index
    %c0_66 = arith.constant 0 : index
    %145 = vector.load %arg2[%c1, %c0_64, %c0_65, %c0_66] : memref<2x24x32x8xbf16, #tpu.memory_space<vmem>>, vector<1x24x32x8xbf16>
    %146 = vector.shape_cast %145 : vector<1x24x32x8xbf16> to vector<24x32x8xbf16>
    "tpu.trace_start"() <{level = 10 : i32, message = "bsk,bkd->bsd"}> : () -> ()
    %cst_67 = arith.constant dense<0.000000e+00> : vector<24x8x8xf32>
    %147 = tpu.matmul %144, %146, %cst_67 {dimension_numbers = #tpu.dot_dimension_numbers<[2], [1], [1], [2], [0, 0, 0, 1, 1, 2], [0], [0]>} : vector<24x8x32xbf16>, vector<24x32x8xbf16>, vector<24x8x8xf32> -> vector<24x8x8xf32>
    "tpu.trace_stop"() : () -> ()
    %c1_68 = arith.constant 1 : index
    %c0_69 = arith.constant 0 : index
    %c0_70 = arith.constant 0 : index
    %c0_71 = arith.constant 0 : index
    %148 = vector.load %arg3[%c1_68, %c0_69, %c0_70, %c0_71] : memref<2x24x1x8xf32, #tpu.memory_space<vmem>>, vector<1x24x1x8xf32>
    %149 = vector.shape_cast %148 : vector<1x24x1x8xf32> to vector<24x1x8xf32>
    %150 = vector.broadcast %149 : vector<24x1x8xf32> to vector<24x8x8xf32>
    %151 = arith.addf %147, %150 : vector<24x8x8xf32>
    %152 = vector.extract_strided_slice %151 {offsets = [0, 0, 0], sizes = [8, 8, 8], strides = [1, 1, 1]} : vector<24x8x8xf32> to vector<8x8x8xf32>
    %153 = vector.extract_strided_slice %151 {offsets = [8, 0, 0], sizes = [8, 8, 8], strides = [1, 1, 1]} : vector<24x8x8xf32> to vector<8x8x8xf32>
    %154 = vector.extract_strided_slice %151 {offsets = [16, 0, 0], sizes = [8, 8, 8], strides = [1, 1, 1]} : vector<24x8x8xf32> to vector<8x8x8xf32>
    %155 = arith.truncf %152 : vector<8x8x8xf32> to vector<8x8x8xbf16>
    %156 = arith.truncf %153 : vector<8x8x8xf32> to vector<8x8x8xbf16>
    "tpu.trace_start"() <{level = 10 : i32, message = "bqd,bkd->bqk"}> : () -> ()
    %cst_72 = arith.constant dense<0.000000e+00> : vector<8x8x8xf32>
    %157 = tpu.matmul %155, %156, %cst_72 {dimension_numbers = #tpu.dot_dimension_numbers<[2], [2], [1], [1], [0, 0, 0, 1, 1, 1], [0], [0]>} : vector<8x8x8xbf16>, vector<8x8x8xbf16>, vector<8x8x8xf32> -> vector<8x8x8xf32>
    "tpu.trace_stop"() : () -> ()
    %158 = arith.addf %157, %1 : vector<8x8x8xf32>
    %cst_73 = arith.constant dense<0xFF800000> : vector<8x8xf32>
    %159 = vector.multi_reduction <maximumf>, %158, %cst_73 [2] : vector<8x8x8xf32> to vector<8x8xf32>
    %160 = vector.shape_cast %159 : vector<8x8xf32> to vector<8x8x1xf32>
    %161 = vector.broadcast %160 : vector<8x8x1xf32> to vector<8x8x8xf32>
    %162 = arith.subf %158, %161 : vector<8x8x8xf32>
    %163 = math.exp %162 : vector<8x8x8xf32>
    %cst_74 = arith.constant dense<0.000000e+00> : vector<8x8xf32>
    %164 = vector.multi_reduction <add>, %163, %cst_74 [2] : vector<8x8x8xf32> to vector<8x8xf32>
    %165 = vector.shape_cast %164 : vector<8x8xf32> to vector<8x8x1xf32>
    %166 = tpu.reciprocal %165 {approx = true} : vector<8x8x1xf32> -> vector<8x8x1xf32>
    %167 = vector.broadcast %166 : vector<8x8x1xf32> to vector<8x8x8xf32>
    %168 = arith.mulf %163, %167 : vector<8x8x8xf32>
    %169 = arith.truncf %168 : vector<8x8x8xf32> to vector<8x8x8xbf16>
    %170 = arith.truncf %154 : vector<8x8x8xf32> to vector<8x8x8xbf16>
    "tpu.trace_start"() <{level = 10 : i32, message = "bqk,bkd->bqd"}> : () -> ()
    %cst_75 = arith.constant dense<0.000000e+00> : vector<8x8x8xf32>
    %171 = tpu.matmul %169, %170, %cst_75 {dimension_numbers = #tpu.dot_dimension_numbers<[2], [1], [1], [2], [0, 0, 0, 1, 1, 2], [0], [0]>} : vector<8x8x8xbf16>, vector<8x8x8xbf16>, vector<8x8x8xf32> -> vector<8x8x8xf32>
    "tpu.trace_stop"() : () -> ()
    %172 = arith.truncf %171 : vector<8x8x8xf32> to vector<8x8x8xbf16>
    %c1_76 = arith.constant 1 : index
    %c0_77 = arith.constant 0 : index
    %c0_78 = arith.constant 0 : index
    %c0_79 = arith.constant 0 : index
    %173 = vector.load %arg4[%c1_76, %c0_77, %c0_78, %c0_79] : memref<2x8x8x32xbf16, #tpu.memory_space<vmem>>, vector<1x8x8x32xbf16>
    %174 = vector.shape_cast %173 : vector<1x8x8x32xbf16> to vector<8x8x32xbf16>
    "tpu.trace_start"() <{level = 10 : i32, message = "bsd,bdo->bso"}> : () -> ()
    %cst_80 = arith.constant dense<0.000000e+00> : vector<8x8x32xf32>
    %175 = tpu.matmul %172, %174, %cst_80 {dimension_numbers = #tpu.dot_dimension_numbers<[2], [1], [1], [2], [0, 0, 0, 1, 1, 2], [0], [0]>} : vector<8x8x8xbf16>, vector<8x8x32xbf16>, vector<8x8x32xf32> -> vector<8x8x32xf32>
    "tpu.trace_stop"() : () -> ()
    %176 = vector.shape_cast %175 : vector<8x8x32xf32> to vector<2x4x8x32xf32>
    %177 = vector.extract_strided_slice %176 {offsets = [0, 0, 0, 0], sizes = [2, 1, 8, 32], strides = [1, 1, 1, 1]} : vector<2x4x8x32xf32> to vector<2x1x8x32xf32>
    %178 = vector.shape_cast %177 : vector<2x1x8x32xf32> to vector<2x8x32xf32>
    %179 = vector.extract_strided_slice %176 {offsets = [0, 1, 0, 0], sizes = [2, 1, 8, 32], strides = [1, 1, 1, 1]} : vector<2x4x8x32xf32> to vector<2x1x8x32xf32>
    %180 = vector.shape_cast %179 : vector<2x1x8x32xf32> to vector<2x8x32xf32>
    %181 = arith.addf %178, %180 : vector<2x8x32xf32>
    %182 = vector.extract_strided_slice %176 {offsets = [0, 2, 0, 0], sizes = [2, 1, 8, 32], strides = [1, 1, 1, 1]} : vector<2x4x8x32xf32> to vector<2x1x8x32xf32>
    %183 = vector.shape_cast %182 : vector<2x1x8x32xf32> to vector<2x8x32xf32>
    %184 = arith.addf %181, %183 : vector<2x8x32xf32>
    %185 = vector.extract_strided_slice %176 {offsets = [0, 3, 0, 0], sizes = [2, 1, 8, 32], strides = [1, 1, 1, 1]} : vector<2x4x8x32xf32> to vector<2x1x8x32xf32>
    %186 = vector.shape_cast %185 : vector<2x1x8x32xf32> to vector<2x8x32xf32>
    %187 = arith.addf %184, %186 : vector<2x8x32xf32>
    %188 = vector.shape_cast %187 : vector<2x8x32xf32> to vector<16x32xf32>
    %c1_81 = arith.constant 1 : index
    %c0_82 = arith.constant 0 : index
    %c0_83 = arith.constant 0 : index
    %189 = vector.load %arg5[%c1_81, %c0_82, %c0_83] : memref<2x1x32xf32, #tpu.memory_space<vmem>>, vector<1x1x32xf32>
    %190 = vector.shape_cast %189 : vector<1x1x32xf32> to vector<1x32xf32>
    %191 = vector.broadcast %190 : vector<1x32xf32> to vector<16x32xf32>
    %192 = arith.addf %188, %191 : vector<16x32xf32>
    %193 = arith.addf %138, %192 : vector<16x32xf32>
    %c1_84 = arith.constant 1 : index
    %c0_85 = arith.constant 0 : index
    %c0_86 = arith.constant 0 : index
    %194 = vector.load %arg6[%c1_84, %c0_85, %c0_86] : memref<2x1x32xf32, #tpu.memory_space<vmem>>, vector<1x1x32xf32>
    %195 = vector.shape_cast %194 : vector<1x1x32xf32> to vector<1x32xf32>
    %c1_87 = arith.constant 1 : index
    %c0_88 = arith.constant 0 : index
    %c0_89 = arith.constant 0 : index
    %196 = vector.load %arg7[%c1_87, %c0_88, %c0_89] : memref<2x1x32xf32, #tpu.memory_space<vmem>>, vector<1x1x32xf32>
    %197 = vector.shape_cast %196 : vector<1x1x32xf32> to vector<1x32xf32>
    %cst_90 = arith.constant dense<0.000000e+00> : vector<16xf32>
    %198 = vector.multi_reduction <add>, %193, %cst_90 [1] : vector<16x32xf32> to vector<16xf32>
    %199 = vector.shape_cast %198 : vector<16xf32> to vector<16x1xf32>
    %cst_91 = arith.constant 3.200000e+01 : f32
    %200 = vector.broadcast %cst_91 : f32 to vector<16x1xf32>
    %201 = arith.divf %199, %200 : vector<16x1xf32>
    %202 = vector.broadcast %201 : vector<16x1xf32> to vector<16x32xf32>
    %203 = arith.subf %193, %202 : vector<16x32xf32>
    %204 = arith.mulf %203, %203 : vector<16x32xf32>
    %cst_92 = arith.constant dense<0.000000e+00> : vector<16xf32>
    %205 = vector.multi_reduction <add>, %204, %cst_92 [1] : vector<16x32xf32> to vector<16xf32>
    %206 = vector.shape_cast %205 : vector<16xf32> to vector<16x1xf32>
    %cst_93 = arith.constant 3.200000e+01 : f32
    %207 = vector.broadcast %cst_93 : f32 to vector<16x1xf32>
    %208 = arith.divf %206, %207 : vector<16x1xf32>
    %209 = vector.broadcast %201 : vector<16x1xf32> to vector<16x32xf32>
    %210 = arith.subf %193, %209 : vector<16x32xf32>
    %cst_94 = arith.constant 9.99999996E-13 : f32
    %211 = vector.broadcast %cst_94 : f32 to vector<16x1xf32>
    %212 = arith.addf %208, %211 : vector<16x1xf32>
    %213 = math.rsqrt %212 : vector<16x1xf32>
    %214 = vector.broadcast %213 : vector<16x1xf32> to vector<16x32xf32>
    %215 = arith.mulf %210, %214 : vector<16x32xf32>
    %216 = vector.broadcast %195 : vector<1x32xf32> to vector<16x32xf32>
    %217 = arith.mulf %215, %216 : vector<16x32xf32>
    %218 = vector.broadcast %197 : vector<1x32xf32> to vector<16x32xf32>
    %219 = arith.addf %217, %218 : vector<16x32xf32>
    %220 = arith.truncf %219 : vector<16x32xf32> to vector<16x32xbf16>
    %c1_95 = arith.constant 1 : index
    %c0_96 = arith.constant 0 : index
    %c0_97 = arith.constant 0 : index
    %221 = vector.load %arg8[%c1_95, %c0_96, %c0_97] : memref<2x32x64xbf16, #tpu.memory_space<vmem>>, vector<1x32x64xbf16>
    %222 = vector.shape_cast %221 : vector<1x32x64xbf16> to vector<32x64xbf16>
    %cst_98 = arith.constant dense<0.000000e+00> : vector<16x64xf32>
    %223 = tpu.matmul %220, %222, %cst_98 {dimension_numbers = #tpu.dot_dimension_numbers<[1], [0], [0], [1], [0, 0, 1, 1], [], []>} : vector<16x32xbf16>, vector<32x64xbf16>, vector<16x64xf32> -> vector<16x64xf32>
    %c1_99 = arith.constant 1 : index
    %c0_100 = arith.constant 0 : index
    %c0_101 = arith.constant 0 : index
    %224 = vector.load %arg9[%c1_99, %c0_100, %c0_101] : memref<2x1x64xf32, #tpu.memory_space<vmem>>, vector<1x1x64xf32>
    %225 = vector.shape_cast %224 : vector<1x1x64xf32> to vector<1x64xf32>
    %226 = vector.broadcast %225 : vector<1x64xf32> to vector<16x64xf32>
    %227 = arith.addf %223, %226 : vector<16x64xf32>
    %228 = arith.mulf %227, %227 : vector<16x64xf32>
    %229 = arith.mulf %227, %228 : vector<16x64xf32>
    %cst_102 = arith.constant 4.471500e-02 : f32
    %230 = vector.broadcast %cst_102 : f32 to vector<16x64xf32>
    %231 = arith.mulf %230, %229 : vector<16x64xf32>
    %232 = arith.addf %227, %231 : vector<16x64xf32>
    %cst_103 = arith.constant 0.797884583 : f32
    %233 = vector.broadcast %cst_103 : f32 to vector<16x64xf32>
    %234 = arith.mulf %233, %232 : vector<16x64xf32>
    %235 = math.tanh %234 : vector<16x64xf32>
    %cst_104 = arith.constant 1.000000e+00 : f32
    %236 = vector.broadcast %cst_104 : f32 to vector<16x64xf32>
    %237 = arith.addf %236, %235 : vector<16x64xf32>
    %cst_105 = arith.constant 5.000000e-01 : f32
    %238 = vector.broadcast %cst_105 : f32 to vector<16x64xf32>
    %239 = arith.mulf %238, %237 : vector<16x64xf32>
    %240 = arith.mulf %227, %239 : vector<16x64xf32>
    %241 = arith.truncf %240 : vector<16x64xf32> to vector<16x64xbf16>
    %c1_106 = arith.constant 1 : index
    %c0_107 = arith.constant 0 : index
    %c0_108 = arith.constant 0 : index
    %242 = vector.load %arg10[%c1_106, %c0_107, %c0_108] : memref<2x64x32xbf16, #tpu.memory_space<vmem>>, vector<1x64x32xbf16>
    %243 = vector.shape_cast %242 : vector<1x64x32xbf16> to vector<64x32xbf16>
    %cst_109 = arith.constant dense<0.000000e+00> : vector<16x32xf32>
    %244 = tpu.matmul %241, %243, %cst_109 {dimension_numbers = #tpu.dot_dimension_numbers<[1], [0], [0], [1], [0, 0, 1, 1], [], []>} : vector<16x64xbf16>, vector<64x32xbf16>, vector<16x32xf32> -> vector<16x32xf32>
    %c1_110 = arith.constant 1 : index
    %c0_111 = arith.constant 0 : index
    %c0_112 = arith.constant 0 : index
    %245 = vector.load %arg11[%c1_110, %c0_111, %c0_112] : memref<2x1x32xf32, #tpu.memory_space<vmem>>, vector<1x1x32xf32>
    %246 = vector.shape_cast %245 : vector<1x1x32xf32> to vector<1x32xf32>
    %247 = vector.broadcast %246 : vector<1x32xf32> to vector<16x32xf32>
    %248 = arith.addf %244, %247 : vector<16x32xf32>
    %249 = arith.addf %219, %248 : vector<16x32xf32>
    %c1_113 = arith.constant 1 : index
    %c0_114 = arith.constant 0 : index
    %c0_115 = arith.constant 0 : index
    %250 = vector.load %arg12[%c1_113, %c0_114, %c0_115] : memref<2x1x32xf32, #tpu.memory_space<vmem>>, vector<1x1x32xf32>
    %251 = vector.shape_cast %250 : vector<1x1x32xf32> to vector<1x32xf32>
    %c1_116 = arith.constant 1 : index
    %c0_117 = arith.constant 0 : index
    %c0_118 = arith.constant 0 : index
    %252 = vector.load %arg13[%c1_116, %c0_117, %c0_118] : memref<2x1x32xf32, #tpu.memory_space<vmem>>, vector<1x1x32xf32>
    %253 = vector.shape_cast %252 : vector<1x1x32xf32> to vector<1x32xf32>
    %cst_119 = arith.constant dense<0.000000e+00> : vector<16xf32>
    %254 = vector.multi_reduction <add>, %249, %cst_119 [1] : vector<16x32xf32> to vector<16xf32>
    %255 = vector.shape_cast %254 : vector<16xf32> to vector<16x1xf32>
    %cst_120 = arith.constant 3.200000e+01 : f32
    %256 = vector.broadcast %cst_120 : f32 to vector<16x1xf32>
    %257 = arith.divf %255, %256 : vector<16x1xf32>
    %258 = vector.broadcast %257 : vector<16x1xf32> to vector<16x32xf32>
    %259 = arith.subf %249, %258 : vector<16x32xf32>
    %260 = arith.mulf %259, %259 : vector<16x32xf32>
    %cst_121 = arith.constant dense<0.000000e+00> : vector<16xf32>
    %261 = vector.multi_reduction <add>, %260, %cst_121 [1] : vector<16x32xf32> to vector<16xf32>
    %262 = vector.shape_cast %261 : vector<16xf32> to vector<16x1xf32>
    %cst_122 = arith.constant 3.200000e+01 : f32
    %263 = vector.broadcast %cst_122 : f32 to vector<16x1xf32>
    %264 = arith.divf %262, %263 : vector<16x1xf32>
    %265 = vector.broadcast %257 : vector<16x1xf32> to vector<16x32xf32>
    %266 = arith.subf %249, %265 : vector<16x32xf32>
    %cst_123 = arith.constant 9.99999996E-13 : f32
    %267 = vector.broadcast %cst_123 : f32 to vector<16x1xf32>
    %268 = arith.addf %264, %267 : vector<16x1xf32>
    %269 = math.rsqrt %268 : vector<16x1xf32>
    %270 = vector.broadcast %269 : vector<16x1xf32> to vector<16x32xf32>
    %271 = arith.mulf %266, %270 : vector<16x32xf32>
    %272 = vector.broadcast %251 : vector<1x32xf32> to vector<16x32xf32>
    %273 = arith.mulf %271, %272 : vector<16x32xf32>
    %274 = vector.broadcast %253 : vector<1x32xf32> to vector<16x32xf32>
    %275 = arith.addf %273, %274 : vector<16x32xf32>
    %276 = arith.truncf %275 : vector<16x32xf32> to vector<16x32xbf16>
    %c0_124 = arith.constant 0 : index
    %c0_125 = arith.constant 0 : index
    %277 = vector.load %arg14[%c0_124, %c0_125] : memref<32x16xbf16, #tpu.memory_space<vmem>>, vector<32x16xbf16>
    %cst_126 = arith.constant dense<0.000000e+00> : vector<16x16xf32>
    %278 = tpu.matmul %276, %277, %cst_126 {dimension_numbers = #tpu.dot_dimension_numbers<[1], [0], [0], [1], [0, 0, 1, 1], [], []>} : vector<16x32xbf16>, vector<32x16xbf16>, vector<16x16xf32> -> vector<16x16xf32>
    %c0_127 = arith.constant 0 : index
    %c0_128 = arith.constant 0 : index
    %279 = vector.load %arg15[%c0_127, %c0_128] : memref<1x16xf32, #tpu.memory_space<vmem>>, vector<1x16xf32>
    %280 = vector.broadcast %279 : vector<1x16xf32> to vector<16x16xf32>
    %281 = arith.addf %278, %280 : vector<16x16xf32>
    %282 = math.tanh %281 : vector<16x16xf32>
    %283 = arith.truncf %282 : vector<16x16xf32> to vector<16x16xbf16>
    %c0_129 = arith.constant 0 : index
    %c0_130 = arith.constant 0 : index
    %284 = vector.load %arg16[%c0_129, %c0_130] : memref<16x128xbf16, #tpu.memory_space<vmem>>, vector<16x128xbf16>
    %cst_131 = arith.constant dense<0.000000e+00> : vector<16x128xf32>
    %285 = tpu.matmul %283, %284, %cst_131 {dimension_numbers = #tpu.dot_dimension_numbers<[1], [0], [0], [1], [0, 0, 1, 1], [], []>} : vector<16x16xbf16>, vector<16x128xbf16>, vector<16x128xf32> -> vector<16x128xf32>
    %c0_132 = arith.constant 0 : index
    %c0_133 = arith.constant 0 : index
    %286 = vector.load %arg17[%c0_132, %c0_133] : memref<1x128xf32, #tpu.memory_space<vmem>>, vector<1x128xf32>
    %287 = vector.broadcast %286 : vector<1x128xf32> to vector<16x128xf32>
    %288 = arith.addf %285, %287 : vector<16x128xf32>
    %289 = arith.negf %288 : vector<16x128xf32>
    %290 = math.exp %289 : vector<16x128xf32>
    %cst_134 = arith.constant 1.000000e+00 : f32
    %291 = vector.broadcast %cst_134 : f32 to vector<16x128xf32>
    %292 = arith.addf %291, %290 : vector<16x128xf32>
    %293 = arith.divf %291, %292 : vector<16x128xf32>
    %c0_135 = arith.constant 0 : index
    %c0_136 = arith.constant 0 : index
    %294 = vector.load %arg18[%c0_135, %c0_136] : memref<16x128xf32, #tpu.memory_space<vmem>>, vector<16x128xf32>
    tpu.vector_store %arg18[%c0_135, %c0_136], %293 {strides = array<i32>} : memref<16x128xf32, #tpu.memory_space<vmem>>, vector<16x128xf32>,
    return
  }
}

</mosaic_0001>

<bundles_post_ra>
// kernel: forward.1
= control target key start
LH: loop header
LB: loop body
LE: loop exit
PB: predicated region body
PF: predicated region fallthrough
CT: control target
= control target key end

     0   :  { %v7946_v0 = vmov 0.0   ;;  %vm7947_vm0 = vmmov 0   ;;  %vm348_vm1 = vcmask 261120   ;;  %vm1607_vm2 = vcmask 64512   ;;  %s9432_s2 = inlined_call_operand.vmem [shape: bf16[2,24,32,8], index: 2, kind: input, shape index: {}]   ;;  %s9433_s0 = inlined_call_operand.vmem [shape: f32[16,32], index: 0, kind: input, shape index: {}]   ;;  %s9434_s3 = inlined_call_operand.vmem [shape: f32[2,24,1,8], index: 3, kind: input, shape index: {}]   ;;  %s9435_s1 = inlined_call_operand.vmem [shape: f32[8,8,8], index: 1, kind: input, shape index: {}]   ;;  %s9436_s4 = inlined_call_operand.vmem [shape: bf16[2,8,8,32], index: 4, kind: input, shape index: {}]   ;;  %s9437_s5 = inlined_call_operand.vmem [shape: f32[2,1,32], index: 5, kind: input, shape index: {}]   ;;  %s9438_s8 = inlined_call_operand.vmem [shape: bf16[2,32,64], index: 8, kind: input, shape index: {}]   ;;  %s9439_s6 = inlined_call_operand.vmem [shape: f32[2,1,32], index: 6, kind: input, shape index: {}]   ;;  %s9440_s7 = inlined_call_operand.vmem [shape: f32[2,1,32], index: 7, kind: input, shape index: {}]   ;;  %s9441_s10 = inlined_call_operand.vmem [shape: bf16[2,64,32], index: 10, kind: input, shape index: {}]   ;;  %s9442_s9 = inlined_call_operand.vmem [shape: f32[2,1,64], index: 9, kind: input, shape index: {}]   ;;  %s9443_s11 = inlined_call_operand.vmem [shape: f32[2,1,32], index: 11, kind: input, shape index: {}]   ;;  %s9444_s12 = inlined_call_operand.vmem [shape: f32[2,1,32], index: 12, kind: input, shape index: {}]   ;;  %s9445_s13 = inlined_call_operand.vmem [shape: f32[2,1,32], index: 13, kind: input, shape index: {}]   ;;  %s9446_s14 = inlined_call_operand.vmem [shape: bf16[32,16], index: 14, kind: input, shape index: {}]   ;;  %s9447_s16 = inlined_call_operand.vmem [shape: bf16[16,128], index: 16, kind: input, shape index: {}]   ;;  %s9448_s15 = inlined_call_operand.vmem [shape: f32[1,16], index: 15, kind: input, shape index: {}]   ;;  %s9449_s17 = inlined_call_operand.vmem [shape: f32[1,128], index: 17, kind: input, shape index: {}]   ;;  %s9450_s18 = inlined_call_operand.vmem [shape: f32[16,128], index: 18, kind: output, shape index: {}]  }
   0x1   :  { %9454 = sst [smem:[#allocation2_spill]] %s9432_s2  ;;  %6997 = vmatprep.subr.bf16.mxu0 %v7946_v0  ;;  %7005 = vmatprep.subr.bf16.mxu1 %v7946_v0  ;;  %vm2083_vm3 = vcmask 1043456   ;;  %vm3021_vm4 = vcmask 523264   ;;  %vm6247_vm5 = vcmask 130048  }
   0x2   :  { %9455 = sst [smem:[#allocation3_spill]] %s9433_s0  ;;  %s9457_s29 = sld [smem:[#allocation2_spill]]  ;;  %7001 = vmatprep.mubr.msk.bf16.mxu0 %vm7947_vm0, %v7946_v0  ;;  %7009 = vmatprep.mubr.msk.bf16.mxu1 %vm7947_vm0, %v7946_v0 }
   0x3   :  { %9456 = sst [smem:[#allocation4_spill]] %s9434_s3  ;;  %s9458_s23 = sld [smem:[#allocation3_spill]] }
   0x4   :  { %s9459_s25 = sld [smem:[#allocation4_spill]] }
   0x8   :  { %v7725_v1 = vld [vmem:[%s9457_s29] sm:$0xff]   ;;  %v7726_v2 = vld [vmem:[%s9457_s29 + $0x10] sm:$0xff]   ;;  %v7727_v3 = vld [vmem:[%s9457_s29 + $0x8] sm:$0xff]  }
   0x9   :  { %6998 = vmatpush3.bf16.msra.mxu0 %v7725_v1  ;;  %7006 = vmatpush3.bf16.msra.mxu1 %v7726_v2  ;;  %v7728_v4 = vld [vmem:[%s9457_s29 + $0x18] sm:$0xff]   ;;  %v60_v5 = vld [vmem:[%s9458_s23] sm:$0xff]  ;;  %v7730_v8 = vld [vmem:[%s9457_s29 + $0x30] sm:$0xff]  }
   0xa   :  { %6999 = vmatprep.subr.bf16.mxu0 %v7946_v0  ;;  %7007 = vmatprep.subr.bf16.mxu1 %v7946_v0  ;;  %v8066_v6 = vpack.c.bf16 %v60_v5, %v60_v5  ;;  %v7729_v7 = vld [vmem:[%s9457_s29 + $0x20] sm:$0xff]   ;;  %v7731_v9 = vld [vmem:[%s9457_s29 + $0x28] sm:$0xff]   ;;  %v7732_v10 = vld [vmem:[%s9457_s29 + $0x38] sm:$0xff]  }
   0xb   :  { %v7733_v11 = vld [vmem:[%s9457_s29 + $0x40] sm:$0xff]   ;;  %v7734_v12 = vld [vmem:[%s9457_s29 + $0x50] sm:$0xff]   ;;  %v7735_v13 = vld [vmem:[%s9457_s29 + $0x48] sm:$0xff]  }
   0xc   :  { %v61_v14 = vld [vmem:[%s9458_s23 + $0x8] sm:$0xff]  ;;  %v7736_v15 = vld [vmem:[%s9457_s29 + $0x58] sm:$0xff]   ;;  %v7737_v17 = vld [vmem:[%s9457_s29 + $0x60] sm:$0xff]  }
   0xd   :  { %7000 = vmatpush3.bf16.msra.mxu0 %v7727_v3  ;;  %7008 = vmatpush3.bf16.msra.mxu1 %v7728_v4  ;;  %v8119_v16 = vpack.c.bf16 %v61_v14, %v61_v14  ;;  %v7738_v18 = vld [vmem:[%s9457_s29 + $0x70] sm:$0xff]   ;;  %v7739_v19 = vld [vmem:[%s9457_s29 + $0x68] sm:$0xff]   ;;  %v7740_v20 = vld [vmem:[%s9457_s29 + $0x78] sm:$0xff]  }
   0xe   :  { %7013 = vmatprep.subr.bf16.mxu0 %v7946_v0  ;;  %7021 = vmatprep.subr.bf16.mxu1 %v7946_v0  ;;  %v7741_v21 = vld [vmem:[%s9457_s29 + $0x80] sm:$0xff]   ;;  %v7742_v22 = vld [vmem:[%s9457_s29 + $0x90] sm:$0xff]   ;;  %v7743_v23 = vld [vmem:[%s9457_s29 + $0x88] sm:$0xff]  }
   0xf   :  { %v7744_v24 = vld [vmem:[%s9457_s29 + $0x98] sm:$0xff]   ;;  %v7745_v25 = vld [vmem:[%s9457_s29 + $0xa0] sm:$0xff]   ;;  %v7746_v26 = vld [vmem:[%s9457_s29 + $0xb0] sm:$0xff]  }
  0x10   :  { %7002 = vmatmul.mubr.msk.bf16.vlgmr.msra.gmra.mrb[0].mxu0 %vm348_vm1, %v8066_v6  ;;  %7010 = vmatmul.mubr.msk.bf16.vlgmr.msra.gmra.mrb[0].mxu1 %vm348_vm1, %v8066_v6  ;;  %v7747_v27 = vld [vmem:[%s9457_s29 + $0xa8] sm:$0xff]   ;;  %v7748_v28 = vld [vmem:[%s9457_s29 + $0xb8] sm:$0xff]   ;;  %v7749_v29 = vld [vmem:[%s9457_s29 + $0xc0] sm:$0xff]  }
  0x11   :  { %7014 = vmatpush3.bf16.msra.mxu0 %v7729_v7  ;;  %7022 = vmatpush3.bf16.msra.mxu1 %v7730_v8  ;;  %v7750_v30 = vld [vmem:[%s9457_s29 + $0xd0] sm:$0xff]   ;;  %v7751_v31 = vld [vmem:[%s9457_s29 + $0xc8] sm:$0xff]   ;;  %v7752_v32 = vld [vmem:[%s9457_s29 + $0xd8] sm:$0xff]  }
  0x12   :  { %7015 = vmatprep.subr.bf16.mxu0 %v7946_v0  ;;  %7023 = vmatprep.subr.bf16.mxu1 %v7946_v0  ;;  %v7753_v33 = vld [vmem:[%s9457_s29 + $0xe0] sm:$0xff]   ;;  %v7754_v34 = vld [vmem:[%s9457_s29 + $0xf0] sm:$0xff]   ;;  %v7755_v35 = vld [vmem:[%s9457_s29 + $0xe8] sm:$0xff]  }
  0x13   :  { %7017 = vmatprep.mubr.msk.bf16.mxu0 %vm7947_vm0, %v7946_v0  ;;  %7025 = vmatprep.mubr.msk.bf16.mxu1 %vm7947_vm0, %v7946_v0  ;;  %v7756_v36 = vld [vmem:[%s9457_s29 + $0xf8] sm:$0xff]   ;;  %v7757_v37 = vld [vmem:[%s9457_s29 + $0x100] sm:$0xff]   ;;  %v7758_v38 = vld [vmem:[%s9457_s29 + $0x110] sm:$0xff]  }
  0x14   :  { %v7759_v39 = vld [vmem:[%s9457_s29 + $0x108] sm:$0xff]   ;;  %v7760_v40 = vld [vmem:[%s9457_s29 + $0x118] sm:$0xff]   ;;  %v7761_v41 = vld [vmem:[%s9457_s29 + $0x120] sm:$0xff]  }
  0x15   :  { %7016 = vmatpush3.bf16.msra.mxu0 %v7731_v9  ;;  %7024 = vmatpush3.bf16.msra.mxu1 %v7732_v10  ;;  %v7762_v42 = vld [vmem:[%s9457_s29 + $0x130] sm:$0xff]   ;;  %v7763_v43 = vld [vmem:[%s9457_s29 + $0x128] sm:$0xff]   ;;  %v7764_v44 = vld [vmem:[%s9457_s29 + $0x138] sm:$0xff]  }
  0x16   :  { %7029 = vmatprep.subr.bf16.mxu0 %v7946_v0  ;;  %7037 = vmatprep.subr.bf16.mxu1 %v7946_v0  ;;  %v7765_v45 = vld [vmem:[%s9457_s29 + $0x140] sm:$0xff]   ;;  %v7766_v46 = vld [vmem:[%s9457_s29 + $0x150] sm:$0xff]   ;;  %v7767_v47 = vld [vmem:[%s9457_s29 + $0x148] sm:$0xff]  }
  0x17   :  { %v7768_v48 = vld [vmem:[%s9457_s29 + $0x158] sm:$0xff]   ;;  %v7769_v49 = vld [vmem:[%s9457_s29 + $0x160] sm:$0xff]   ;;  %v7770_v50 = vld [vmem:[%s9457_s29 + $0x170] sm:$0xff]  }
  0x18   :  { %7018 = vmatmul.mubr.msk.bf16.vlgmr.msra.gmra.mrb[4].mxu0 %vm348_vm1, %v8066_v6  ;;  %7026 = vmatmul.mubr.msk.bf16.vlgmr.msra.gmra.mrb[4].mxu1 %vm348_vm1, %v8066_v6  ;;  %v7771_v51 = vld [vmem:[%s9457_s29 + $0x168] sm:$0xff]   ;;  %v7772_v52 = vld [vmem:[%s9457_s29 + $0x178] sm:$0xff]  }
  0x19   :  { %7030 = vmatpush3.bf16.msra.mxu0 %v7733_v11  ;;  %7038 = vmatpush3.bf16.msra.mxu1 %v7734_v12 }
  0x1a   :  { %7031 = vmatprep.subr.bf16.mxu0 %v7946_v0  ;;  %7039 = vmatprep.subr.bf16.mxu1 %v7946_v0 }
  0x1b   :  { %7033 = vmatprep.mubr.msk.bf16.mxu0 %vm7947_vm0, %v7946_v0  ;;  %7041 = vmatprep.mubr.msk.bf16.mxu1 %vm7947_vm0, %v7946_v0 }
  0x1d   :  { %7032 = vmatpush3.bf16.msra.mxu0 %v7735_v13  ;;  %7040 = vmatpush3.bf16.msra.mxu1 %v7736_v15 }
  0x1e   :  { %7045 = vmatprep.subr.bf16.mxu0 %v7946_v0  ;;  %7053 = vmatprep.subr.bf16.mxu1 %v7946_v0 }
  0x20   :  { %7034 = vmatmul.mubr.msk.bf16.vlgmr.msra.gmra.mrb[8].mxu0 %vm348_vm1, %v8119_v16  ;;  %7042 = vmatmul.mubr.msk.bf16.vlgmr.msra.gmra.mrb[8].mxu1 %vm348_vm1, %v8119_v16 }
  0x21   :  { %7046 = vmatpush3.bf16.msra.mxu0 %v7737_v17  ;;  %7054 = vmatpush3.bf16.msra.mxu1 %v7738_v18 }
  0x22   :  { %7047 = vmatprep.subr.bf16.mxu0 %v7946_v0  ;;  %7055 = vmatprep.subr.bf16.mxu1 %v7946_v0 }
  0x23   :  { %7049 = vmatprep.mubr.msk.bf16.mxu0 %vm7947_vm0, %v7946_v0  ;;  %7057 = vmatprep.mubr.msk.bf16.mxu1 %vm7947_vm0, %v7946_v0 }
  0x25   :  { %7048 = vmatpush3.bf16.msra.mxu0 %v7739_v19  ;;  %7056 = vmatpush3.bf16.msra.mxu1 %v7740_v20 }
  0x26   :  { %7061 = vmatprep.subr.bf16.mxu0 %v7946_v0  ;;  %7069 = vmatprep.subr.bf16.mxu1 %v7946_v0 }
  0x28   :  { %7050 = vmatmul.mubr.msk.bf16.vlgmr.msra.gmra.mrb[12].mxu0 %vm348_vm1, %v8119_v16  ;;  %7058 = vmatmul.mubr.msk.bf16.vlgmr.msra.gmra.mrb[12].mxu1 %vm348_vm1, %v8119_v16 }
  0x29   :  { %7062 = vmatpush3.bf16.msra.mxu0 %v7741_v21  ;;  %7070 = vmatpush3.bf16.msra.mxu1 %v7742_v22  ;;  %v6318_v22 = vld [vmem:[%s9459_s25 + $0x8] ss:$0 sm:$0xff] }
  0x2a   :  { %7063 = vmatprep.subr.bf16.mxu0 %v7946_v0  ;;  %7071 = vmatprep.subr.bf16.mxu1 %v7946_v0 }
  0x2b   :  { %7065 = vmatprep.mubr.msk.bf16.mxu0 %vm7947_vm0, %v7946_v0  ;;  %7073 = vmatprep.mubr.msk.bf16.mxu1 %vm7947_vm0, %v7946_v0 }
  0x2d   :  { %7064 = vmatpush3.bf16.msra.mxu0 %v7743_v23  ;;  %7072 = vmatpush3.bf16.msra.mxu1 %v7744_v24  ;;  %v6319_v23 = vld [vmem:[%s9459_s25 + $0x9] ss:$0 sm:$0xff] }
  0x2e   :  { %7077 = vmatprep.subr.bf16.mxu0 %v7946_v0  ;;  %7085 = vmatprep.subr.bf16.mxu1 %v7946_v0 }
  0x30   :  { %7066 = vmatmul.mubr.msk.bf16.vlgmr.msra.gmra.mrb[16].mxu0 %vm348_vm1, %v8066_v6  ;;  %7074 = vmatmul.mubr.msk.bf16.vlgmr.msra.gmra.mrb[16].mxu1 %vm348_vm1, %v8066_v6 }
  0x31   :  { %7078 = vmatpush3.bf16.msra.mxu0 %v7745_v25  ;;  %7086 = vmatpush3.bf16.msra.mxu1 %v7746_v26 }
  0x32   :  { %7079 = vmatprep.subr.bf16.mxu0 %v7946_v0  ;;  %7087 = vmatprep.subr.bf16.mxu1 %v7946_v0 }
  0x33   :  { %7081 = vmatprep.mubr.msk.bf16.mxu0 %vm7947_vm0, %v7946_v0  ;;  %7089 = vmatprep.mubr.msk.bf16.mxu1 %vm7947_vm0, %v7946_v0 }
  0x35   :  { %7080 = vmatpush3.bf16.msra.mxu0 %v7747_v27  ;;  %7088 = vmatpush3.bf16.msra.mxu1 %v7748_v28 }
  0x36   :  { %7093 = vmatprep.subr.bf16.mxu0 %v7946_v0  ;;  %7101 = vmatprep.subr.bf16.mxu1 %v7946_v0 }
  0x38   :  { %7082 = vmatmul.mubr.msk.bf16.vlgmr.msra.gmra.mrb[20].mxu0 %vm348_vm1, %v8066_v6  ;;  %7090 = vmatmul.mubr.msk.bf16.vlgmr.msra.gmra.mrb[20].mxu1 %vm348_vm1, %v8066_v6 }
  0x39   :  { %7094 = vmatpush3.bf16.msra.mxu0 %v7749_v29  ;;  %7102 = vmatpush3.bf16.msra.mxu1 %v7750_v30 }
  0x3a   :  { %7095 = vmatprep.subr.bf16.mxu0 %v7946_v0  ;;  %7103 = vmatprep.subr.bf16.mxu1 %v7946_v0 }
  0x3b   :  { %7097 = vmatprep.mubr.msk.bf16.mxu0 %vm7947_vm0, %v7946_v0  ;;  %7105 = vmatprep.mubr.msk.bf16.mxu1 %vm7947_vm0, %v7946_v0 }
  0x3d   :  { %7096 = vmatpush3.bf16.msra.mxu0 %v7751_v31  ;;  %7104 = vmatpush3.bf16.msra.mxu1 %v7752_v32 }
  0x3e   :  { %7109 = vmatprep.subr.bf16.mxu0 %v7946_v0  ;;  %7117 = vmatprep.subr.bf16.mxu1 %v7946_v0 }
  0x40   :  { %7098 = vmatmul.mubr.msk.bf16.vlgmr.msra.gmra.mrb[24].mxu0 %vm348_vm1, %v8119_v16  ;;  %7106 = vmatmul.mubr.msk.bf16.vlgmr.msra.gmra.mrb[24].mxu1 %vm348_vm1, %v8119_v16 }
  0x41   :  { %7110 = vmatpush3.bf16.msra.mxu0 %v7753_v33  ;;  %7118 = vmatpush3.bf16.msra.mxu1 %v7754_v34  ;;  %v6310_v34 = vld [vmem:[%s9459_s25] ss:$0 sm:$0xff] }
  0x42   :  { %7111 = vmatprep.subr.bf16.mxu0 %v7946_v0  ;;  %7119 = vmatprep.subr.bf16.mxu1 %v7946_v0 }
  0x43   :  { %7113 = vmatprep.mubr.msk.bf16.mxu0 %vm7947_vm0, %v7946_v0  ;;  %7121 = vmatprep.mubr.msk.bf16.mxu1 %vm7947_vm0, %v7946_v0 }
  0x45   :  { %7112 = vmatpush3.bf16.msra.mxu0 %v7755_v35  ;;  %7120 = vmatpush3.bf16.msra.mxu1 %v7756_v36 }
  0x46   :  { %7125 = vmatprep.subr.bf16.mxu0 %v7946_v0  ;;  %7133 = vmatprep.subr.bf16.mxu1 %v7946_v0 }
  0x48   :  { %7114 = vmatmul.mubr.msk.bf16.vlgmr.msra.gmra.mrb[28].mxu0 %vm348_vm1, %v8119_v16  ;;  %7122 = vmatmul.mubr.msk.bf16.vlgmr.msra.gmra.mrb[28].mxu1 %vm348_vm1, %v8119_v16 }
  0x49   :  { %7126 = vmatpush3.bf16.msra.mxu0 %v7757_v37  ;;  %7129 = vmatprep.mubr.msk.bf16.mxu0 %vm7947_vm0, %v7946_v0  ;;  %v6311_v37 = vld [vmem:[%s9459_s25 + $0x1] ss:$0 sm:$0xff] }
  0x4a   :  { %7127 = vmatprep.subr.bf16.mxu0 %v7946_v0  ;;  %7137 = vmatprep.mubr.msk.bf16.mxu1 %vm7947_vm0, %v7946_v0 }
  0x4b   :  { %7134 = vmatpush3.bf16.msra.mxu1 %v7758_v38 }
  0x4c   :  { %7135 = vmatprep.subr.bf16.mxu1 %v7946_v0 }
  0x4d   :  { %7128 = vmatpush3.bf16.msra.mxu0 %v7759_v39 }
  0x4e   :  { %7141 = vmatprep.subr.bf16.mxu0 %v7946_v0 }
  0x4f   :  { %7136 = vmatpush3.bf16.msra.mxu1 %v7760_v40  ;;  %v6320_v40 = vld [vmem:[%s9459_s25 + $0xa] ss:$0 sm:$0xff] }
  0x50   :  { %7130 = vmatmul.mubr.msk.bf16.vlgmr.msra.gmra.mrb[32].mxu0 %vm348_vm1, %v8066_v6  ;;  %7149 = vmatprep.subr.bf16.mxu1 %v7946_v0 }
  0x51   :  { %7142 = vmatpush3.bf16.msra.mxu0 %v7761_v41  ;;  %7145 = vmatprep.mubr.msk.bf16.mxu0 %vm7947_vm0, %v7946_v0 }
  0x52   :  { %7138 = vmatmul.mubr.msk.bf16.vlgmr.msra.gmra.mrb[32].mxu1 %vm348_vm1, %v8066_v6  ;;  %7143 = vmatprep.subr.bf16.mxu0 %v7946_v0 }
  0x53   :  { %7150 = vmatpush3.bf16.msra.mxu1 %v7762_v42  ;;  %7153 = vmatprep.mubr.msk.bf16.mxu1 %vm7947_vm0, %v7946_v0  ;;  %v6321_v42 = vld [vmem:[%s9459_s25 + $0xb] ss:$0 sm:$0xff] }
  0x54   :  { %7151 = vmatprep.subr.bf16.mxu1 %v7946_v0 }
  0x55   :  { %7144 = vmatpush3.bf16.msra.mxu0 %v7763_v43 }
  0x56   :  { %7157 = vmatprep.subr.bf16.mxu0 %v7946_v0 }
  0x57   :  { %7152 = vmatpush3.bf16.msra.mxu1 %v7764_v44 }
  0x58   :  { %7146 = vmatmul.mubr.msk.bf16.vlgmr.msra.gmra.mrb[36].mxu0 %vm348_vm1, %v8066_v6  ;;  %7165 = vmatprep.subr.bf16.mxu1 %v7946_v0 }
  0x59   :  { %7158 = vmatpush3.bf16.msra.mxu0 %v7765_v45  ;;  %7161 = vmatprep.mubr.msk.bf16.mxu0 %vm7947_vm0, %v7946_v0 }
  0x5a   :  { %7154 = vmatmul.mubr.msk.bf16.vlgmr.msra.gmra.mrb[36].mxu1 %vm348_vm1, %v8066_v6  ;;  %7159 = vmatprep.subr.bf16.mxu0 %v7946_v0 }
  0x5b   :  { %7166 = vmatpush3.bf16.msra.mxu1 %v7766_v46  ;;  %7169 = vmatprep.mubr.msk.bf16.mxu1 %vm7947_vm0, %v7946_v0 }
  0x5c   :  { %7167 = vmatprep.subr.bf16.mxu1 %v7946_v0 }
  0x5d   :  { %7160 = vmatpush3.bf16.msra.mxu0 %v7767_v47 }
  0x5e   :  { %7173 = vmatprep.subr.bf16.mxu0 %v7946_v0 }
  0x5f   :  { %7168 = vmatpush3.bf16.msra.mxu1 %v7768_v48 }
  0x60   :  { %7162 = vmatmul.mubr.msk.bf16.vlgmr.msra.gmra.mrb[40].mxu0 %vm348_vm1, %v8119_v16  ;;  %7181 = vmatprep.subr.bf16.mxu1 %v7946_v0 }
  0x61   :  { %7177 = vmatprep.mubr.msk.bf16.mxu0 %vm7947_vm0, %v7946_v0  ;;  %7174 = vmatpush3.bf16.msra.mxu0 %v7769_v49 }
  0x62   :  { %7170 = vmatmul.mubr.msk.bf16.vlgmr.msra.gmra.mrb[40].mxu1 %vm348_vm1, %v8119_v16  ;;  %7175 = vmatprep.subr.bf16.mxu0 %v7946_v0 }
  0x63   :  { %7182 = vmatpush3.bf16.msra.mxu1 %v7770_v50  ;;  %7185 = vmatprep.mubr.msk.bf16.mxu1 %vm7947_vm0, %v7946_v0 }
  0x64   :  { %7183 = vmatprep.subr.bf16.mxu1 %v7946_v0 }
  0x65   :  { %7176 = vmatpush3.bf16.msra.mxu0 %v7771_v51 }
  0x66   :  { %7189 = vmatprep.subr.bf16.mxu0 %v7946_v0 }
  0x67   :  { %7184 = vmatpush3.bf16.msra.mxu1 %v7772_v52 }
  0x68   :  { %7195 = vmatprep.subr.bf16.mxu1 %v7946_v0  ;;  %7178 = vmatmul.mubr.msk.bf16.vlgmr.msra.gmra.mrb[44].mxu0 %vm348_vm1, %v8119_v16 }
  0x69   :  { %7191 = vmatprep.mubr.msk.bf16.mxu0 %vm7947_vm0, %v7946_v0 }
  0x6a   :  { %7186 = vmatmul.mubr.msk.bf16.vlgmr.msra.gmra.mrb[44].mxu1 %vm348_vm1, %v8119_v16 }
  0x6b   :  { %7197 = vmatprep.mubr.msk.bf16.mxu1 %vm7947_vm0, %v7946_v0 }
  0xe3   :  { %v386_v53 = vpop.f32.mrb[0].mxu0  ;;  %v438_v55 = vpop.f32.mrb[0].mxu1 }
  0xe4   :  { %v7003_v54 = vpop.f32.mrb[1].mxu0  ;;  %v7011_v57 = vpop.f32.mrb[1].mxu1  ;;  %v387_v41 = vadd.f32 %v6310_v34, %v386_v53  ;;  %v439_v43 = vadd.f32 %v6311_v37, %v438_v55 }
  0xe5   :  { %v389_v56 = vpop.f32.mrb[2].mxu0  ;;  %v441_v59 = vpop.f32.mrb[2].mxu1  ;;  %v6312_v57 = vld [vmem:[%s9459_s25 + $0x2] ss:$0 sm:$0xff] }
  0xe6   :  { %v7004_v58 = vpop.f32.mrb[3].mxu0  ;;  %v7012_v60 = vpop.f32.mrb[3].mxu1  ;;  %v1591_v51 = vpack.c.bf16 %v387_v41, %v387_v41  ;;  %v1592_v56 = vpack.c.bf16 %v439_v43, %v439_v43  ;;  %v6313_v59 = vld [vmem:[%s9459_s25 + $0x3] ss:$0 sm:$0xff] }
  0xeb   :  { %v8347_v61 = vpop.f32.mrb[4].mxu0  ;;  %v8349_v63 = vpop.f32.mrb[4].mxu1 }
  0xec   :  { %v7019_v62 = vpop.f32.mrb[5].mxu0  ;;  %v7027_v2 = vpop.f32.mrb[5].mxu1 }
  0xed   :  { %v493_v1 = vpop.f32.mrb[6].mxu0  ;;  %v545_v4 = vpop.f32.mrb[6].mxu1  ;;  %v491_v2 = vadd.f32 %v6312_v57, %v8347_v61 }
  0xee   :  { %v7020_v3 = vpop.f32.mrb[7].mxu0  ;;  %v7028_v5 = vpop.f32.mrb[7].mxu1  ;;  %v6322_v1 = vld [vmem:[%s9459_s25 + $0xc] ss:$0 sm:$0xff]  ;;  %v543_v4 = vadd.f32 %v6313_v59, %v8349_v63  ;;  %v6314_v63 = vld [vmem:[%s9459_s25 + $0x4] ss:$0 sm:$0xff] }
  0xef   :  { %v6323_v3 = vld [vmem:[%s9459_s25 + $0xd] ss:$0 sm:$0xff] }
  0xf3   :  { %v8351_v6 = vpop.f32.mrb[8].mxu0  ;;  %v8353_v8 = vpop.f32.mrb[8].mxu1 }
  0xf4   :  { %v7035_v7 = vpop.f32.mrb[9].mxu0  ;;  %v7043_v10 = vpop.f32.mrb[9].mxu1 }
  0xf5   :  { %v600_v9 = vpop.f32.mrb[10].mxu0  ;;  %v652_v12 = vpop.f32.mrb[10].mxu1 }
  0xf6   :  { %v7036_v11 = vpop.f32.mrb[11].mxu0  ;;  %v7044_v13 = vpop.f32.mrb[11].mxu1 }
  0xf7   :  { %v1593_v13 = vpack.c.bf16 %v491_v2, %v491_v2 }
  0xfb   :  { %v8355_v14 = vpop.f32.mrb[12].mxu0  ;;  %v8357_v16 = vpop.f32.mrb[12].mxu1 }
  0xfc   :  { %v7051_v15 = vpop.f32.mrb[13].mxu0  ;;  %v7059_v18 = vpop.f32.mrb[13].mxu1 }
  0xfd   :  { %v704_v17 = vpop.f32.mrb[14].mxu0  ;;  %v756_v20 = vpop.f32.mrb[14].mxu1 }
  0xfe   :  { %v7052_v19 = vpop.f32.mrb[15].mxu0  ;;  %v7060_v21 = vpop.f32.mrb[15].mxu1 }
  0xff   :  { %v1594_v19 = vpack.c.bf16 %v543_v4, %v543_v4 }
 0x103   :  { %v805_v24 = vpop.f32.mrb[16].mxu0  ;;  %v857_v26 = vpop.f32.mrb[16].mxu1 }
 0x104   :  { %v806_v25 = vadd.f32 %v6318_v22, %v805_v24  ;;  %v7067_v27 = vpop.f32.mrb[17].mxu0  ;;  %v858_v28 = vadd.f32 %v6319_v23, %v857_v26  ;;  %v7075_v30 = vpop.f32.mrb[17].mxu1  ;;  %v6315_v22 = vld [vmem:[%s9459_s25 + $0x5] ss:$0 sm:$0xff]  ;;  %v598_v26 = vadd.f32 %v6314_v63, %v8351_v6 }
 0x105   :  { %v808_v29 = vpop.f32.mrb[18].mxu0  ;;  %v860_v33 = vpop.f32.mrb[18].mxu1  ;;  %v6325_v27 = vld [vmem:[%s9459_s25 + $0xf] ss:$0 sm:$0xff] }
 0x106   :  { %v1599_v31 = vpack.c.bf16 %v806_v25, %v806_v25  ;;  %v7068_v32 = vpop.f32.mrb[19].mxu0  ;;  %v1600_v35 = vpack.c.bf16 %v858_v28, %v858_v28  ;;  %v7076_v36 = vpop.f32.mrb[19].mxu1  ;;  %v6324_v25 = vld [vmem:[%s9459_s25 + $0xe] ss:$0 sm:$0xff]  ;;  %v650_v28 = vadd.f32 %v6315_v22, %v8353_v8  ;;  %v6316_v8 = vld [vmem:[%s9459_s25 + $0x6] ss:$0 sm:$0xff] }
 0x108   :  { %v1612_v38 = vsel %vm1607_vm2, %v1599_v31, 0  ;;  %v1658_v39 = vsel %vm1607_vm2, %v1600_v35, 0  ;;  %v1595_v35 = vpack.c.bf16 %v598_v26, %v598_v26 }
 0x109   :  { %7190 = vmatpush3.bf16.xpose.msra.mxu0 %v1612_v38  ;;  %7196 = vmatpush3.bf16.xpose.msra.mxu1 %v1658_v39  ;;  %v1596_v39 = vpack.c.bf16 %v650_v28, %v650_v28  ;;  %v62_v28 = vld [vmem:[%s9435_s1] sm:$0xff] }
 0x10a   :  { %7201 = vmatprep.subr.bf16.mxu0 %v7946_v0  ;;  %7207 = vmatprep.subr.bf16.mxu1 %v7946_v0 }
 0x10b   :  { %v909_v44 = vpop.f32.mrb[20].mxu0  ;;  %v961_v46 = vpop.f32.mrb[20].mxu1 }
 0x10c   :  { %v910_v45 = vadd.f32 %v6320_v40, %v909_v44  ;;  %v7083_v47 = vpop.f32.mrb[21].mxu0  ;;  %v962_v48 = vadd.f32 %v6321_v42, %v961_v46  ;;  %v7091_v50 = vpop.f32.mrb[21].mxu1  ;;  %v6317_v42 = vld [vmem:[%s9459_s25 + $0x7] ss:$0 sm:$0xff] }
 0x10d   :  { %v912_v49 = vpop.f32.mrb[22].mxu0  ;;  %v964_v54 = vpop.f32.mrb[22].mxu1  ;;  %v754_v46 = vadd.f32 %v6317_v42, %v8357_v16 }
 0x10e   :  { %v1601_v52 = vpack.c.bf16 %v910_v45, %v910_v45  ;;  %v7084_v53 = vpop.f32.mrb[23].mxu0  ;;  %v1602_v58 = vpack.c.bf16 %v962_v48, %v962_v48  ;;  %v7092_v55 = vpop.f32.mrb[23].mxu1  ;;  %v702_v45 = vadd.f32 %v6316_v8, %v8355_v14  ;;  %v6326_v14 = vld [vmem:[%s9459_s25 + $0x10] ss:$0 sm:$0xff]  ;;  %v6327_v49 = vld [vmem:[%s9459_s25 + $0x11] ss:$0 sm:$0xff] }
 0x10f   :  { %v1598_v48 = vpack.c.bf16 %v754_v46, %v754_v46  ;;  %v64_v8 = vld [vmem:[%s9435_s1 + $0x10] sm:$0xff] }
 0x110   :  { %v1704_v60 = vsel %vm1607_vm2, %v1601_v52, 0  ;;  %7192 = vmatmul.mubr.msk.bf16.vlgmr.msra.gmra.mrb[48].mxu0 %vm1607_vm2, %v1591_v51  ;;  %v1750_v62 = vsel %vm1607_vm2, %v1602_v58, 0  ;;  %7198 = vmatmul.mubr.msk.bf16.vlgmr.msra.gmra.mrb[48].mxu1 %vm1607_vm2, %v1592_v56  ;;  %v1597_v47 = vpack.c.bf16 %v702_v45, %v702_v45 }
 0x111   :  { %7202 = vmatpush3.bf16.xpose.msra.mxu0 %v1704_v60  ;;  %7208 = vmatpush3.bf16.xpose.msra.mxu1 %v1750_v62 }
 0x112   :  { %7203 = vmatprep.mubr.msk.bf16.mxu0 %vm7947_vm0, %v7946_v0  ;;  %7209 = vmatprep.mubr.msk.bf16.mxu1 %vm7947_vm0, %v7946_v0 }
 0x113   :  { %v1013_v5 = vpop.f32.mrb[24].mxu0  ;;  %7213 = vmatprep.subr.bf16.mxu0 %v7946_v0  ;;  %v1065_v9 = vpop.f32.mrb[24].mxu1  ;;  %7219 = vmatprep.subr.bf16.mxu1 %v7946_v0 }
 0x114   :  { %v1014_v7 = vadd.f32 %v6322_v1, %v1013_v5  ;;  %v7099_v10 = vpop.f32.mrb[25].mxu0  ;;  %v1066_v61 = vadd.f32 %v6323_v3, %v1065_v9  ;;  %v7107_v12 = vpop.f32.mrb[25].mxu1 }
 0x115   :  { %v1016_v11 = vpop.f32.mrb[26].mxu0  ;;  %v1068_v18 = vpop.f32.mrb[26].mxu1 }
 0x116   :  { %v1603_v15 = vpack.c.bf16 %v1014_v7, %v1014_v7  ;;  %v7100_v17 = vpop.f32.mrb[27].mxu0  ;;  %v1604_v20 = vpack.c.bf16 %v1066_v61, %v1066_v61  ;;  %v7108_v21 = vpop.f32.mrb[27].mxu1 }
 0x118   :  { %v1796_v23 = vsel %vm1607_vm2, %v1603_v15, 0  ;;  %7204 = vmatmul.mubr.msk.bf16.vlgmr.msra.gmra.mrb[52].mxu0 %vm1607_vm2, %v1593_v13  ;;  %v1842_v24 = vsel %vm1607_vm2, %v1604_v20, 0  ;;  %7210 = vmatmul.mubr.msk.bf16.vlgmr.msra.gmra.mrb[52].mxu1 %vm1607_vm2, %v1594_v19 }
 0x119   :  { %7214 = vmatpush3.bf16.xpose.msra.mxu0 %v1796_v23  ;;  %7220 = vmatpush3.bf16.xpose.msra.mxu1 %v1842_v24 }
 0x11a   :  { %7215 = vmatprep.mubr.msk.bf16.mxu0 %vm7947_vm0, %v7946_v0  ;;  %7221 = vmatprep.mubr.msk.bf16.mxu1 %vm7947_vm0, %v7946_v0 }
 0x11b   :  { %v1117_v29 = vpop.f32.mrb[28].mxu0  ;;  %7225 = vmatprep.subr.bf16.mxu0 %v7946_v0  ;;  %v1169_v31 = vpop.f32.mrb[28].mxu1  ;;  %7231 = vmatprep.subr.bf16.mxu1 %v7946_v0 }
 0x11c   :  { %v1118_v30 = vadd.f32 %v6324_v25, %v1117_v29  ;;  %v7115_v32 = vpop.f32.mrb[29].mxu0  ;;  %v1170_v6 = vadd.f32 %v6325_v27, %v1169_v31  ;;  %v7123_v34 = vpop.f32.mrb[29].mxu1 }
 0x11d   :  { %v1120_v33 = vpop.f32.mrb[30].mxu0  ;;  %v1172_v38 = vpop.f32.mrb[30].mxu1 }
 0x11e   :  { %v1605_v36 = vpack.c.bf16 %v1118_v30, %v1118_v30  ;;  %v7116_v37 = vpop.f32.mrb[31].mxu0  ;;  %v1606_v40 = vpack.c.bf16 %v1170_v6, %v1170_v6  ;;  %v7124_v41 = vpop.f32.mrb[31].mxu1  ;;  %v63_v30 = vld [vmem:[%s9435_s1 + $0x8] sm:$0xff] }
 0x11f   :  { %v65_v41 = vld [vmem:[%s9435_s1 + $0x18] sm:$0xff] }
 0x120   :  { %v1888_v43 = vsel %vm1607_vm2, %v1605_v36, 0  ;;  %7216 = vmatmul.mubr.msk.bf16.vlgmr.msra.gmra.mrb[56].mxu0 %vm1607_vm2, %v1595_v35  ;;  %v1934_v44 = vsel %vm1607_vm2, %v1606_v40, 0  ;;  %7222 = vmatmul.mubr.msk.bf16.vlgmr.msra.gmra.mrb[56].mxu1 %vm1607_vm2, %v1596_v39 }
 0x121   :  { %7226 = vmatpush3.bf16.xpose.msra.mxu0 %v1888_v43  ;;  %7232 = vmatpush3.bf16.xpose.msra.mxu1 %v1934_v44 }
 0x122   :  { %7227 = vmatprep.mubr.msk.bf16.mxu0 %vm7947_vm0, %v7946_v0  ;;  %7233 = vmatprep.mubr.msk.bf16.mxu1 %vm7947_vm0, %v7946_v0 }
 0x123   :  { %7237 = vmatprep.subr.bf16.mxu0 %v7946_v0  ;;  %7243 = vmatprep.subr.bf16.mxu1 %v7946_v0  ;;  %v1221_v16 = vpop.f32.mrb[32].mxu0 }
 0x124   :  { %v1222_v50 = vadd.f32 %v6326_v14, %v1221_v16  ;;  %v7131_v51 = vpop.f32.mrb[33].mxu0 }
 0x125   :  { %v1224_v52 = vpop.f32.mrb[34].mxu0  ;;  %v1273_v53 = vpop.f32.mrb[32].mxu1  ;;  %v66_v51 = vld [vmem:[%s9435_s1 + $0x20] sm:$0xff] }
 0x126   :  { %v2072_v54 = vpack.c.bf16 %v1222_v50, %v1222_v50  ;;  %v7132_v56 = vpop.f32.mrb[35].mxu0  ;;  %v1274_v57 = vadd.f32 %v6327_v49, %v1273_v53  ;;  %v7139_v58 = vpop.f32.mrb[33].mxu1  ;;  %v67_v52 = vld [vmem:[%s9435_s1 + $0x28] sm:$0xff] }
 0x127   :  { %v1276_v55 = vpop.f32.mrb[34].mxu1 }
 0x128   :  { %7228 = vmatmul.mubr.msk.bf16.vlgmr.msra.gmra.mrb[60].mxu0 %vm1607_vm2, %v1597_v47  ;;  %7234 = vmatmul.mubr.msk.bf16.vlgmr.msra.gmra.mrb[60].mxu1 %vm1607_vm2, %v1598_v48  ;;  %v2085_v59 = vsel %vm2083_vm3, %v2072_v54, 0  ;;  %v2073_v60 = vpack.c.bf16 %v1274_v57, %v1274_v57  ;;  %v7140_v62 = vpop.f32.mrb[35].mxu1 }
 0x129   :  { %7239 = vmatprep.mubr.msk.bf16.mxu0 %vm7947_vm0, %v7946_v0  ;;  %7245 = vmatprep.mubr.msk.bf16.mxu1 %vm7947_vm0, %v7946_v0 }
 0x12a   :  { %7238 = vmatpush3.bf16.msra.mxu0 %v2085_v59  ;;  %v2131_v1 = vsel %vm2083_vm3, %v2073_v60, 0 }
 0x12b   :  { %7249 = vmatprep.subr.bf16.mxu0 %v7946_v0  ;;  %v8462_v2 = vpop.f32.mrb[36].mxu0  ;;  %7244 = vmatpush3.bf16.msra.mxu1 %v2131_v1 }
 0x12c   :  { %v7147_v3 = vpop.f32.mrb[37].mxu0  ;;  %7255 = vmatprep.subr.bf16.mxu1 %v7946_v0 }
 0x12d   :  { %v1328_v4 = vpop.f32.mrb[38].mxu0  ;;  %v8465_v5 = vpop.f32.mrb[36].mxu1 }
 0x12e   :  { %v7148_v7 = vpop.f32.mrb[39].mxu0  ;;  %v7155_v9 = vpop.f32.mrb[37].mxu1 }
 0x12f   :  { %v1380_v10 = vpop.f32.mrb[38].mxu1  ;;  %v68_v9 = vld [vmem:[%s9435_s1 + $0x30] sm:$0xff] }
 0x130   :  { %v7156_v61 = vpop.f32.mrb[39].mxu1  ;;  %v69_v10 = vld [vmem:[%s9435_s1 + $0x38] sm:$0xff] }
 0x133   :  { %v8467_v11 = vpop.f32.mrb[40].mxu0 }
 0x134   :  { %v7163_v12 = vpop.f32.mrb[41].mxu0 }
 0x135   :  { %v1432_v13 = vpop.f32.mrb[42].mxu0  ;;  %v8469_v15 = vpop.f32.mrb[40].mxu1 }
 0x136   :  { %v7164_v17 = vpop.f32.mrb[43].mxu0  ;;  %v7171_v18 = vpop.f32.mrb[41].mxu1 }
 0x137   :  { %v1484_v19 = vpop.f32.mrb[42].mxu1 }
 0x138   :  { %v7172_v63 = vpop.f32.mrb[43].mxu1 }
 0x13b   :  { %v8471_v20 = vpop.f32.mrb[44].mxu0 }
 0x13c   :  { %v7179_v22 = vpop.f32.mrb[45].mxu0 }
 0x13d   :  { %v8473_v21 = vpop.f32.mrb[44].mxu1  ;;  %v1536_v24 = vpop.f32.mrb[46].mxu0 }
 0x13e   :  { %v7187_v23 = vpop.f32.mrb[45].mxu1  ;;  %v7180_v26 = vpop.f32.mrb[47].mxu0 }
 0x13f   :  { %v1588_v25 = vpop.f32.mrb[46].mxu1 }
 0x140   :  { %v7188_v27 = vpop.f32.mrb[47].mxu1 }
 0x1e3   :  { %v1648_v29 = vpop.f32.mrb[48].mxu0  ;;  %v1694_v32 = vpop.f32.mrb[48].mxu1 }
 0x1e4   :  { %v8481_v31 = vadd.f32 %v1648_v29, %v62_v28  ;;  %v7193_v6 = vpop.f32.mrb[49].mxu0  ;;  %v7199_v33 = vpop.f32.mrb[49].mxu1  ;;  %v1695_v35 = vadd.f32 %v1694_v32, %v63_v30 }
 0x1e5   :  { %v1651_v34 = vpop.f32.mrb[50].mxu0  ;;  %v1697_v36 = vpop.f32.mrb[50].mxu1 }
 0x1e6   :  { %v7194_v37 = vpop.f32.mrb[51].mxu0  ;;  %v1976_v38 = vsel %vm1607_vm2, %v8481_v31, -inf  ;;  %v7200_v39 = vpop.f32.mrb[51].mxu1  ;;  %v1979_v40 = vsel %vm1607_vm2, %v1695_v35, -inf }
 0x1e7   :  { %1977 = vmax.xlane.f32.xlu0 %v1976_v38 }
 0x1eb   :  { %1980 = vmax.xlane.f32.xlu0 %v1979_v40  ;;  %v1740_v42 = vpop.f32.mrb[52].mxu0  ;;  %v1786_v43 = vpop.f32.mrb[52].mxu1 }
 0x1ec   :  { %v1741_v44 = vadd.f32 %v1740_v42, %v64_v8  ;;  %v7205_v45 = vpop.f32.mrb[53].mxu0  ;;  %v7211_v46 = vpop.f32.mrb[53].mxu1  ;;  %v1787_v48 = vadd.f32 %v1786_v43, %v65_v41 }
 0x1ed   :  { %v1743_v47 = vpop.f32.mrb[54].mxu0  ;;  %v1789_v14 = vpop.f32.mrb[54].mxu1 }
 0x1ee   :  { %v7206_v16 = vpop.f32.mrb[55].mxu0  ;;  %v1982_v49 = vsel %vm1607_vm2, %v1741_v44, -inf  ;;  %v7212_v50 = vpop.f32.mrb[55].mxu1  ;;  %v1985_v53 = vsel %vm1607_vm2, %v1787_v48, -inf }
 0x1ef   :  { %1983 = vmax.xlane.f32.xlu1 %v1982_v49 }
 0x1f3   :  { %1986 = vmax.xlane.f32.xlu1 %v1985_v53  ;;  %v1832_v54 = vpop.f32.mrb[56].mxu0  ;;  %v1878_v56 = vpop.f32.mrb[56].mxu1 }
 0x1f4   :  { %v1833_v57 = vadd.f32 %v1832_v54, %v66_v51  ;;  %v7217_v58 = vpop.f32.mrb[57].mxu0  ;;  %v1879_v55 = vadd.f32 %v1878_v56, %v67_v52  ;;  %v7223_v59 = vpop.f32.mrb[57].mxu1 }
 0x1f5   :  { %v1835_v60 = vpop.f32.mrb[58].mxu0  ;;  %v1881_v62 = vpop.f32.mrb[58].mxu1 }
 0x1f6   :  { %v7218_v1 = vpop.f32.mrb[59].mxu0  ;;  %v1988_v3 = vsel %vm1607_vm2, %v1833_v57, -inf  ;;  %v7224_v4 = vpop.f32.mrb[59].mxu1  ;;  %v1991_v7 = vsel %vm1607_vm2, %v1879_v55, -inf }
 0x1f7   :  { %1989 = vmax.xlane.f32.xlu0 %v1988_v3  ;;  %1992 = vmax.xlane.f32.xlu1 %v1991_v7  ;;  %v6328_v7 = vld [vmem:[%s9459_s25 + $0x12] ss:$0 sm:$0xff] }
 0x1fb   :  { %v1924_v61 = vpop.f32.mrb[60].mxu0  ;;  %v1970_v13 = vpop.f32.mrb[60].mxu1 }
 0x1fc   :  { %v1925_v12 = vadd.f32 %v1924_v61, %v68_v9  ;;  %v7229_v17 = vpop.f32.mrb[61].mxu0  ;;  %v1971_v18 = vadd.f32 %v1970_v13, %v69_v10  ;;  %v7235_v19 = vpop.f32.mrb[61].mxu1  ;;  %v1326_v9 = vadd.f32 %v6328_v7, %v8462_v2  ;;  %v6329_v61 = vld [vmem:[%s9459_s25 + $0x13] ss:$0 sm:$0xff] }
 0x1fd   :  { %v1927_v63 = vpop.f32.mrb[62].mxu0  ;;  %v1973_v22 = vpop.f32.mrb[62].mxu1  ;;  %v1378_v17 = vadd.f32 %v6329_v61, %v8465_v5  ;;  %v6331_v5 = vld [vmem:[%s9459_s25 + $0x15] ss:$0 sm:$0xff] }
 0x1fe   :  { %v7230_v23 = vpop.f32.mrb[63].mxu0  ;;  %v1994_v24 = vsel %vm1607_vm2, %v1925_v12, -inf  ;;  %v7236_v25 = vpop.f32.mrb[63].mxu1  ;;  %v1997_v26 = vsel %vm1607_vm2, %v1971_v18, -inf  ;;  %v2074_v13 = vpack.c.bf16 %v1326_v9, %v1326_v9  ;;  %v6330_v63 = vld [vmem:[%s9459_s25 + $0x14] ss:$0 sm:$0xff] }
 0x1ff   :  { %1995 = vmax.xlane.f32.xlu0 %v1994_v24  ;;  %1998 = vmax.xlane.f32.xlu1 %v1997_v26  ;;  %v2075_v24 = vpack.c.bf16 %v1378_v17, %v1378_v17  ;;  %v1430_v25 = vadd.f32 %v6330_v63, %v8467_v11  ;;  %v2460_v9 = vld [vmem:[%s9436_s4 + $0xc] sm:$0xf] }
 0x200   :  { %v2177_v2 = vsel %vm2083_vm3, %v2074_v13, 0  ;;  %v2607_v17 = vsel %vm2083_vm3, %v2460_v9, 0 }
 0x201   :  { %v2223_v11 = vsel %vm2083_vm3, %v2075_v24, 0 }
 0x274   :  { %v1978_v27 = vpop.xlane.xlu0 %1977 }
 0x275   :  { %v2000_v28 = vsub.f32 %v8481_v31, %v1978_v27 }
 0x277   :  { %v2008_v29 = vmul.f32 1.442695, %v2000_v28 }
 0x278   :  { %v1981_v30 = vpop.xlane.xlu0 %1980 }
 0x279   :  { %7836 = vpow2.f32 %v2008_v29  ;;  %v2001_v32 = vsub.f32 %v1695_v35, %v1981_v30 }
 0x27b   :  { %v2010_v6 = vmul.f32 1.442695, %v2001_v32  ;;  %v2076_v32 = vpack.c.bf16 %v1430_v25, %v1430_v25 }
 0x27c   :  { %v1984_v33 = vpop.xlane.xlu1 %1983 }
 0x27d   :  { %7838 = vpow2.f32 %v2010_v6  ;;  %v2002_v34 = vsub.f32 %v1741_v44, %v1984_v33  ;;  %v1482_v6 = vadd.f32 %v6331_v5, %v8469_v15 }
 0x27f   :  { %v2012_v36 = vmul.f32 1.442695, %v2002_v34  ;;  %v6332_v34 = vld [vmem:[%s9459_s25 + $0x16] ss:$0 sm:$0xff] }
 0x280   :  { %v1987_v37 = vpop.xlane.xlu1 %1986  ;;  %v1534_v15 = vadd.f32 %v6332_v34, %v8471_v20 }
 0x281   :  { %7840 = vpow2.f32 %v2012_v36  ;;  %v2003_v38 = vsub.f32 %v1787_v48, %v1987_v37 }
 0x283   :  { %v7837_v39 = vpop.eup %7836  ;;  %v2014_v8 = vmul.f32 1.442695, %v2003_v38  ;;  %v2269_v38 = vsel %vm2083_vm3, %v2076_v32, 0  ;;  %v2463_v32 = vld [vmem:[%s9436_s4 + $0x18] sm:$0xf] }
 0x284   :  { %v1990_v40 = vpop.xlane.xlu0 %1989  ;;  %v2024_v41 = vsel %vm1607_vm2, %v7837_v39, 0.0  ;;  %v1993_v42 = vpop.xlane.xlu1 %1992 }
 0x285   :  { %7842 = vpow2.f32 %v2014_v8  ;;  %v2004_v31 = vsub.f32 %v1833_v57, %v1990_v40  ;;  %2025 = vadd.xlane.f32.xlu0 %v2024_v41  ;;  %v2005_v43 = vsub.f32 %v1879_v55, %v1993_v42  ;;  %v6333_v41 = vld [vmem:[%s9459_s25 + $0x17] ss:$0 sm:$0xff] }
 0x287   :  { %v7839_v45 = vpop.eup %7838  ;;  %v2016_v35 = vmul.f32 1.442695, %v2004_v31  ;;  %v2018_v46 = vmul.f32 1.442695, %v2005_v43 }
 0x288   :  { %v2027_v47 = vsel %vm1607_vm2, %v7839_v45, 0.0 }
 0x289   :  { %7844 = vpow2.f32 %v2016_v35  ;;  %2028 = vadd.xlane.f32.xlu1 %v2027_v47  ;;  %v2078_v35 = vpack.c.bf16 %v1534_v15, %v1534_v15 }
 0x28a   :  { %7846 = vpow2.f32 %v2018_v46  ;;  %v1586_v46 = vadd.f32 %v6333_v41, %v8473_v21 }
 0x28b   :  { %v7841_v44 = vpop.eup %7840 }
 0x28c   :  { %v1996_v48 = vpop.xlane.xlu0 %1995  ;;  %v2030_v14 = vsel %vm1607_vm2, %v7841_v44, 0.0  ;;  %v1999_v16 = vpop.xlane.xlu1 %1998 }
 0x28d   :  { %v2006_v49 = vsub.f32 %v1925_v12, %v1996_v48  ;;  %2031 = vadd.xlane.f32.xlu0 %v2030_v14  ;;  %v2007_v50 = vsub.f32 %v1971_v18, %v1999_v16  ;;  %v2361_v14 = vsel %vm2083_vm3, %v2078_v35, 0  ;;  %v2079_v16 = vpack.c.bf16 %v1586_v46, %v1586_v46 }
 0x28f   :  { %v8514_v51 = vpop.eup %7842  ;;  %v2020_v52 = vmul.f32 1.442695, %v2006_v49  ;;  %v2022_v53 = vmul.f32 1.442695, %v2007_v50  ;;  %v2457_v50 = vld [vmem:[%s9436_s4] sm:$0xf] }
 0x290   :  { %v2033_v54 = vsel %vm1607_vm2, %v8514_v51, 0.0 }
 0x291   :  { %7848 = vpow2.f32 %v2020_v52  ;;  %2034 = vadd.xlane.f32.xlu1 %v2033_v54  ;;  %v2407_v52 = vsel %vm2083_vm3, %v2079_v16, 0 }
 0x292   :  { %7850 = vpow2.f32 %v2022_v53 }
 0x293   :  { %v8518_v56 = vpop.eup %7844 }
 0x294   :  { %v8520_v57 = vpop.eup %7846  ;;  %v2036_v58 = vsel %vm1607_vm2, %v8518_v56, 0.0 }
 0x295   :  { %v2039_v55 = vsel %vm1607_vm2, %v8520_v57, 0.0  ;;  %2037 = vadd.xlane.f32.xlu0 %v2036_v58 }
 0x296   :  { %2040 = vadd.xlane.f32.xlu1 %v2039_v55  ;;  %v2458_v55 = vld [vmem:[%s9436_s4 + $0x4] sm:$0xf] }
 0x29b   :  { %v8526_v59 = vpop.eup %7848 }
 0x29c   :  { %v8528_v60 = vpop.eup %7850  ;;  %v2042_v62 = vsel %vm1607_vm2, %v8526_v59, 0.0 }
 0x29d   :  { %v2045_v1 = vsel %vm1607_vm2, %v8528_v60, 0.0  ;;  %2043 = vadd.xlane.f32.xlu0 %v2042_v62 }
 0x29e   :  { %2046 = vadd.xlane.f32.xlu1 %v2045_v1 }
 0x312   :  { %v2026_v3 = vpop.xlane.xlu0 %2025 }
 0x313   :  { %7852 = vrcp.f32 %v2026_v3 }
 0x316   :  { %v2029_v4 = vpop.xlane.xlu1 %2028 }
 0x317   :  { %7854 = vrcp.f32 %v2029_v4 }
 0x31a   :  { %v2032_v10 = vpop.xlane.xlu0 %2031 }
 0x31b   :  { %7856 = vrcp.f32 %v2032_v10 }
 0x31d   :  { %v7853_v12 = vpop.eup %7852 }
 0x31e   :  { %v2056_v18 = vmul.f32 %v7853_v12, %v7837_v39  ;;  %v2035_v19 = vpop.xlane.xlu1 %2034  ;;  %v2077_v39 = vpack.c.bf16 %v1482_v6, %v1482_v6 }
 0x31f   :  { %7858 = vrcp.f32 %v2035_v19  ;;  %v2461_v19 = vld [vmem:[%s9436_s4 + $0x10] sm:$0xf] }
 0x320   :  { %v2064_v22 = vpack.c.bf16 %v2056_v18, %v2056_v18  ;;  %v2653_v24 = vsel %vm2083_vm3, %v2461_v19, 0 }
 0x321   :  { %v7855_v23 = vpop.eup %7854 }
 0x322   :  { %v2057_v26 = vmul.f32 %v7855_v23, %v7839_v45  ;;  %7240 = vmatmul.mubr.msk.bf16.vlgmr.msra.gmra.mrb[64].mxu0 %vm1607_vm2, %v2064_v22  ;;  %v2038_v27 = vpop.xlane.xlu0 %2037  ;;  %v2315_v45 = vsel %vm2083_vm3, %v2077_v39, 0  ;;  %v2464_v39 = vld [vmem:[%s9436_s4 + $0x1c] sm:$0xf] }
 0x323   :  { %v2041_v28 = vpop.xlane.xlu1 %2040  ;;  %7250 = vmatpush3.bf16.msra.mxu0 %v2177_v2  ;;  %7860 = vrcp.f32 %v2038_v27  ;;  %7251 = vmatprep.mubr.msk.bf16.mxu0 %vm7947_vm0, %v7946_v0 }
 0x324   :  { %7862 = vrcp.f32 %v2041_v28  ;;  %v2065_v29 = vpack.c.bf16 %v2057_v26, %v2057_v26  ;;  %7261 = vmatprep.subr.bf16.mxu0 %v7946_v0  ;;  %v2462_v26 = vld [vmem:[%s9436_s4 + $0x14] sm:$0xf] }
 0x325   :  { %v7857_v30 = vpop.eup %7856 }
 0x326   :  { %v2058_v33 = vmul.f32 %v7857_v30, %v7841_v44  ;;  %7246 = vmatmul.mubr.msk.bf16.vlgmr.msra.gmra.mrb[64].mxu1 %vm1607_vm2, %v2065_v29  ;;  %v2699_v30 = vsel %vm2083_vm3, %v2462_v26, 0 }
 0x327   :  { %7256 = vmatpush3.bf16.msra.mxu1 %v2223_v11  ;;  %7257 = vmatprep.mubr.msk.bf16.mxu1 %vm7947_vm0, %v7946_v0 }
 0x328   :  { %v2066_v36 = vpack.c.bf16 %v2058_v33, %v2058_v33  ;;  %7267 = vmatprep.subr.bf16.mxu1 %v7946_v0 }
 0x329   :  { %v7859_v37 = vpop.eup %7858 }
 0x32a   :  { %v2059_v8 = vmul.f32 %v7859_v37, %v8514_v51  ;;  %7252 = vmatmul.mubr.msk.bf16.vlgmr.msra.gmra.mrb[68].mxu0 %vm1607_vm2, %v2066_v36  ;;  %v2044_v40 = vpop.xlane.xlu0 %2043  ;;  %v2745_v37 = vsel %vm2083_vm3, %v2463_v32, 0 }
 0x32b   :  { %v2047_v42 = vpop.xlane.xlu1 %2046  ;;  %7262 = vmatpush3.bf16.msra.mxu0 %v2269_v38  ;;  %7864 = vrcp.f32 %v2044_v40  ;;  %7263 = vmatprep.mubr.msk.bf16.mxu0 %vm7947_vm0, %v7946_v0 }
 0x32c   :  { %7866 = vrcp.f32 %v2047_v42  ;;  %v2067_v31 = vpack.c.bf16 %v2059_v8, %v2059_v8  ;;  %7273 = vmatprep.subr.bf16.mxu0 %v7946_v0  ;;  %v2791_v42 = vsel %vm2083_vm3, %v2464_v39, 0 }
 0x32d   :  { %v7861_v20 = vpop.eup %7860 }
 0x32e   :  { %v7863_v43 = vpop.eup %7862  ;;  %v2060_v47 = vmul.f32 %v7861_v20, %v8518_v56  ;;  %7258 = vmatmul.mubr.msk.bf16.vlgmr.msra.gmra.mrb[68].mxu1 %vm1607_vm2, %v2067_v31 }
 0x32f   :  { %7268 = vmatpush3.bf16.msra.mxu1 %v2315_v45  ;;  %7269 = vmatprep.mubr.msk.bf16.mxu1 %vm7947_vm0, %v7946_v0  ;;  %v2061_v44 = vmul.f32 %v7863_v43, %v8520_v57  ;;  %v2469_v57 = vsel %vm2083_vm3, %v2457_v50, 0 }
 0x330   :  { %v2068_v48 = vpack.c.bf16 %v2060_v47, %v2060_v47  ;;  %7279 = vmatprep.subr.bf16.mxu1 %v7946_v0 }
 0x331   :  { %v2069_v21 = vpack.c.bf16 %v2061_v44, %v2061_v44 }
 0x332   :  { %7264 = vmatmul.mubr.msk.bf16.vlgmr.msra.gmra.mrb[72].mxu0 %vm1607_vm2, %v2068_v48 }
 0x333   :  { %7274 = vmatpush3.bf16.msra.mxu0 %v2361_v14  ;;  %7275 = vmatprep.mubr.msk.bf16.mxu0 %vm7947_vm0, %v7946_v0 }
 0x334   :  { %7285 = vmatprep.subr.bf16.mxu0 %v7946_v0 }
 0x335   :  { %v7865_v49 = vpop.eup %7864 }
 0x336   :  { %v7867_v51 = vpop.eup %7866  ;;  %v2062_v53 = vmul.f32 %v7865_v49, %v8526_v59  ;;  %7270 = vmatmul.mubr.msk.bf16.vlgmr.msra.gmra.mrb[72].mxu1 %vm1607_vm2, %v2069_v21  ;;  %v2515_v59 = vsel %vm2083_vm3, %v2458_v55, 0 }
 0x337   :  { %7280 = vmatpush3.bf16.msra.mxu1 %v2407_v52  ;;  %7281 = vmatprep.mubr.msk.bf16.mxu1 %vm7947_vm0, %v7946_v0  ;;  %v2063_v54 = vmul.f32 %v7867_v51, %v8528_v60  ;;  %v2459_v60 = vld [vmem:[%s9436_s4 + $0x8] sm:$0xf] }
 0x338   :  { %v2070_v56 = vpack.c.bf16 %v2062_v53, %v2062_v53  ;;  %7291 = vmatprep.subr.bf16.mxu1 %v7946_v0  ;;  %v2561_v4 = vsel %vm2083_vm3, %v2459_v60, 0 }
 0x339   :  { %v2071_v58 = vpack.c.bf16 %v2063_v54, %v2063_v54 }
 0x33a   :  { %7276 = vmatmul.mubr.msk.bf16.vlgmr.msra.gmra.mrb[76].mxu0 %vm1607_vm2, %v2070_v56 }
 0x33b   :  { %7286 = vmatpush3.bf16.msra.mxu0 %v2469_v57  ;;  %7287 = vmatprep.mubr.msk.bf16.mxu0 %vm7947_vm0, %v7946_v0 }
 0x33c   :  { %7297 = vmatprep.subr.bf16.mxu0 %v7946_v0 }
 0x33e   :  { %7282 = vmatmul.mubr.msk.bf16.vlgmr.msra.gmra.mrb[76].mxu1 %vm1607_vm2, %v2071_v58 }
 0x33f   :  { %7293 = vmatprep.mubr.msk.bf16.mxu1 %vm7947_vm0, %v7946_v0  ;;  %7292 = vmatpush3.bf16.msra.mxu1 %v2515_v59 }
 0x340   :  { %7303 = vmatprep.subr.bf16.mxu1 %v7946_v0 }
 0x3f5   :  { %v2121_v62 = vpop.f32.mrb[64].mxu0 }
 0x3f6   :  { %v2449_v1 = vpack.c.bf16 %v2121_v62, %v2121_v62  ;;  %v7241_v3 = vpop.f32.mrb[65].mxu0 }
 0x3f7   :  { %v2124_v7 = vpop.f32.mrb[66].mxu0 }
 0x3f8   :  { %v7242_v10 = vpop.f32.mrb[67].mxu0  ;;  %7288 = vmatmul.mubr.msk.bf16.vlgmr.msra.gmra.mrb[80].mxu0 %vm1607_vm2, %v2449_v1 }
 0x3f9   :  { %v2167_v61 = vpop.f32.mrb[64].mxu1  ;;  %7298 = vmatpush3.bf16.msra.mxu0 %v2561_v4  ;;  %7299 = vmatprep.mubr.msk.bf16.mxu0 %vm7947_vm0, %v7946_v0  ;;  %v6430_v4 = vld [vmem:[%s9437_s5] ss:$0 sm:$0xff] }
 0x3fa   :  { %v2450_v12 = vpack.c.bf16 %v2167_v61, %v2167_v61  ;;  %v7247_v13 = vpop.f32.mrb[65].mxu1  ;;  %7309 = vmatprep.subr.bf16.mxu0 %v7946_v0 }
 0x3fb   :  { %v2170_v18 = vpop.f32.mrb[66].mxu1 }
 0x3fc   :  { %v7248_v63 = vpop.f32.mrb[67].mxu1  ;;  %7294 = vmatmul.mubr.msk.bf16.vlgmr.msra.gmra.mrb[80].mxu1 %vm1607_vm2, %v2450_v12  ;;  %v7936_v18 = vld [vmem:[%s9458_s23] sm:$0xff] }
 0x3fd   :  { %v2213_v22 = vpop.f32.mrb[68].mxu0  ;;  %7304 = vmatpush3.bf16.msra.mxu1 %v2607_v17  ;;  %7305 = vmatprep.mubr.msk.bf16.mxu1 %vm7947_vm0, %v7946_v0 }
 0x3fe   :  { %v2451_v23 = vpack.c.bf16 %v2213_v22, %v2213_v22  ;;  %v7253_v2 = vpop.f32.mrb[69].mxu0  ;;  %7315 = vmatprep.subr.bf16.mxu1 %v7946_v0 }
 0x3ff   :  { %v2216_v25 = vpop.f32.mrb[70].mxu0 }
 0x400   :  { %v7254_v27 = vpop.f32.mrb[71].mxu0  ;;  %7300 = vmatmul.mubr.msk.bf16.vlgmr.msra.gmra.mrb[84].mxu0 %vm1607_vm2, %v2451_v23 }
 0x401   :  { %v2259_v5 = vpop.f32.mrb[68].mxu1  ;;  %7310 = vmatpush3.bf16.msra.mxu0 %v2653_v24  ;;  %7311 = vmatprep.mubr.msk.bf16.mxu0 %vm7947_vm0, %v7946_v0 }
 0x402   :  { %v2452_v28 = vpack.c.bf16 %v2259_v5, %v2259_v5  ;;  %v7259_v29 = vpop.f32.mrb[69].mxu1  ;;  %7321 = vmatprep.subr.bf16.mxu0 %v7946_v0 }
 0x403   :  { %v2262_v11 = vpop.f32.mrb[70].mxu1 }
 0x404   :  { %v7260_v6 = vpop.f32.mrb[71].mxu1  ;;  %7306 = vmatmul.mubr.msk.bf16.vlgmr.msra.gmra.mrb[84].mxu1 %vm1607_vm2, %v2452_v28 }
 0x405   :  { %v2305_v33 = vpop.f32.mrb[72].mxu0  ;;  %7316 = vmatpush3.bf16.msra.mxu1 %v2699_v30  ;;  %7317 = vmatprep.mubr.msk.bf16.mxu1 %vm7947_vm0, %v7946_v0 }
 0x406   :  { %v2453_v34 = vpack.c.bf16 %v2305_v33, %v2305_v33  ;;  %v7265_v36 = vpop.f32.mrb[73].mxu0  ;;  %7327 = vmatprep.subr.bf16.mxu1 %v7946_v0 }
 0x407   :  { %v2308_v38 = vpop.f32.mrb[74].mxu0 }
 0x408   :  { %v7266_v15 = vpop.f32.mrb[75].mxu0  ;;  %7312 = vmatmul.mubr.msk.bf16.vlgmr.msra.gmra.mrb[88].mxu0 %vm1607_vm2, %v2453_v34  ;;  %v7937_v38 = vld [vmem:[%s9458_s23 + $0x8] sm:$0xff] }
 0x409   :  { %v2351_v8 = vpop.f32.mrb[72].mxu1  ;;  %7322 = vmatpush3.bf16.msra.mxu0 %v2745_v37  ;;  %7323 = vmatprep.mubr.msk.bf16.mxu0 %vm7947_vm0, %v7946_v0 }
 0x40a   :  { %v2454_v40 = vpack.c.bf16 %v2351_v8, %v2351_v8  ;;  %v7271_v41 = vpop.f32.mrb[73].mxu1  ;;  %7333 = vmatprep.subr.bf16.mxu0 %v7946_v0 }
 0x40b   :  { %v2354_v31 = vpop.f32.mrb[74].mxu1 }
 0x40c   :  { %v7272_v20 = vpop.f32.mrb[75].mxu1  ;;  %7318 = vmatmul.mubr.msk.bf16.vlgmr.msra.gmra.mrb[88].mxu1 %vm1607_vm2, %v2454_v40 }
 0x40d   :  { %v2397_v43 = vpop.f32.mrb[76].mxu0  ;;  %7328 = vmatpush3.bf16.msra.mxu1 %v2791_v42  ;;  %7329 = vmatprep.mubr.msk.bf16.mxu1 %vm7947_vm0, %v7946_v0 }
 0x40e   :  { %v2455_v45 = vpack.c.bf16 %v2397_v43, %v2397_v43  ;;  %v7277_v35 = vpop.f32.mrb[77].mxu0  ;;  %7341 = vmatprep.subr.bf16.mxu1 %v7946_v0 }
 0x40f   :  { %v2400_v46 = vpop.f32.mrb[78].mxu0 }
 0x410   :  { %v7278_v47 = vpop.f32.mrb[79].mxu0  ;;  %7324 = vmatmul.mubr.msk.bf16.vlgmr.msra.gmra.mrb[92].mxu0 %vm1607_vm2, %v2455_v45 }
 0x411   :  { %v2443_v44 = vpop.f32.mrb[76].mxu1  ;;  %7337 = vmatprep.mubr.msk.bf16.mxu0 %vm7947_vm0, %v7946_v0  ;;  %v7773_v47 = vld [vmem:[%s9438_s8] sm:$0xff]  }
 0x412   :  { %v2456_v48 = vpack.c.bf16 %v2443_v44, %v2443_v44  ;;  %v7283_v14 = vpop.f32.mrb[77].mxu1  ;;  %7334 = vmatpush3.bf16.msra.mxu0 %v7773_v47  ;;  %v7774_v44 = vld [vmem:[%s9438_s8 + $0x8] sm:$0xff]  }
 0x413   :  { %v2446_v16 = vpop.f32.mrb[78].mxu1  ;;  %7335 = vmatprep.subr.bf16.mxu0 %v7946_v0 }
 0x414   :  { %v7284_v21 = vpop.f32.mrb[79].mxu1  ;;  %7330 = vmatmul.mubr.msk.bf16.vlgmr.msra.gmra.mrb[92].mxu1 %vm1607_vm2, %v2456_v48 }
 0x415   :  { %7349 = vmatprep.mubr.msk.bf16.mxu1 %vm7947_vm0, %v7946_v0 }
 0x416   :  { %7336 = vmatpush3.bf16.msra.mxu0 %v7774_v44 }
 0x417   :  { %7353 = vmatprep.subr.bf16.mxu0 %v7946_v0 }
 0x4cb   :  { %v2505_v49 = vpop.f32.mrb[80].mxu0 }
 0x4cc   :  { %v7289_v50 = vpop.f32.mrb[81].mxu0 }
 0x4cd   :  { %v2508_v51 = vpop.f32.mrb[82].mxu0 }
 0x4ce   :  { %v7290_v52 = vpop.f32.mrb[83].mxu0 }
 0x4cf   :  { %v2551_v53 = vpop.f32.mrb[80].mxu1 }
 0x4d0   :  { %v2833_v54 = vadd.f32 %v2551_v53, %v2505_v49  ;;  %v7295_v56 = vpop.f32.mrb[81].mxu1  ;;  %v6431_v53 = vld [vmem:[%s9439_s6] ss:$0 sm:$0xff] }
 0x4d1   :  { %v2554_v57 = vpop.f32.mrb[82].mxu1 }
 0x4d2   :  { %v7296_v58 = vpop.f32.mrb[83].mxu1 }
 0x4d3   :  { %v2597_v55 = vpop.f32.mrb[84].mxu0  ;;  %v6432_v58 = vld [vmem:[%s9440_s7] ss:$0 sm:$0xff] }
 0x4d4   :  { %v2835_v59 = vadd.f32 %v2833_v54, %v2597_v55  ;;  %v7301_v60 = vpop.f32.mrb[85].mxu0 }
 0x4d5   :  { %v2600_v62 = vpop.f32.mrb[86].mxu0 }
 0x4d6   :  { %v7302_v1 = vpop.f32.mrb[87].mxu0 }
 0x4d7   :  { %v2643_v3 = vpop.f32.mrb[84].mxu1  ;;  %v7775_v1 = vld [vmem:[%s9441_s10] sm:$0xff]  }
 0x4d8   :  { %v2837_v7 = vadd.f32 %v2835_v59, %v2643_v3  ;;  %v7307_v9 = vpop.f32.mrb[85].mxu1  ;;  %7342 = vmatpush3.bf16.msra.mxu1 %v7775_v1  ;;  %v7776_v3 = vld [vmem:[%s9441_s10 + $0x8] sm:$0xff]  }
 0x4d9   :  { %v2646_v10 = vpop.f32.mrb[86].mxu1  ;;  %7343 = vmatprep.subr.bf16.mxu1 %v7946_v0  ;;  %v6433_v9 = vld [vmem:[%s9442_s9] ss:$0 sm:$0xff] }
 0x4da   :  { %v2846_v61 = vadd.f32 %v6430_v4, %v2837_v7  ;;  %v7308_v12 = vpop.f32.mrb[87].mxu1  ;;  %v7778_v7 = vld [vmem:[%s9441_s10 + $0x18] sm:$0xff]  }
 0x4db   :  { %v2689_v13 = vpop.f32.mrb[88].mxu0 }
 0x4dc   :  { %v7313_v17 = vpop.f32.mrb[89].mxu0  ;;  %v2848_v19 = vadd.f32 %v7936_v18, %v2846_v61  ;;  %7344 = vmatpush3.bf16.msra.mxu1 %v7776_v3 }
 0x4dd   :  { %v2692_v63 = vpop.f32.mrb[90].mxu0  ;;  %7345 = vmatprep.subr.bf16.mxu1 %v7946_v0 }
 0x4de   :  { %v7314_v22 = vpop.f32.mrb[91].mxu0  ;;  %v2852_v23 = vsel %vm348_vm1, %v2848_v19, 0.0 }
 0x4df   :  { %v2735_v2 = vpop.f32.mrb[88].mxu1  ;;  %2853 = vadd.xlane.f32.xlu0 %v2852_v23 }
 0x4e0   :  { %v2834_v24 = vadd.f32 %v2735_v2, %v2689_v13  ;;  %v7319_v25 = vpop.f32.mrb[89].mxu1 }
 0x4e1   :  { %v2738_v26 = vpop.f32.mrb[90].mxu1 }
 0x4e2   :  { %v7320_v27 = vpop.f32.mrb[91].mxu1 }
 0x4e3   :  { %v2781_v5 = vpop.f32.mrb[92].mxu0 }
 0x4e4   :  { %v2836_v28 = vadd.f32 %v2834_v24, %v2781_v5  ;;  %v7325_v29 = vpop.f32.mrb[93].mxu0 }
 0x4e5   :  { %v2784_v30 = vpop.f32.mrb[94].mxu0 }
 0x4e6   :  { %v7326_v11 = vpop.f32.mrb[95].mxu0 }
 0x4e7   :  { %v2827_v32 = vpop.f32.mrb[92].mxu1 }
 0x4e8   :  { %v2838_v6 = vadd.f32 %v2836_v28, %v2827_v32  ;;  %v7331_v33 = vpop.f32.mrb[93].mxu1 }
 0x4e9   :  { %v2830_v34 = vpop.f32.mrb[94].mxu1 }
 0x4ea   :  { %v2847_v36 = vadd.f32 %v6430_v4, %v2838_v6  ;;  %v7332_v37 = vpop.f32.mrb[95].mxu1  ;;  %v7777_v4 = vld [vmem:[%s9441_s10 + $0x10] sm:$0xff]  }
 0x4eb   :  { %7346 = vmatpush3.bf16.msra.mxu1 %v7777_v4  ;;  %v6437_v37 = vld [vmem:[%s9443_s11] ss:$0 sm:$0xff] }
 0x4ec   :  { %v2849_v39 = vadd.f32 %v7937_v38, %v2847_v36  ;;  %7347 = vmatprep.subr.bf16.mxu1 %v7946_v0  ;;  %v6444_v4 = vld [vmem:[%s9445_s13] ss:$0 sm:$0xff] }
 0x4ee   :  { %v2855_v15 = vsel %vm348_vm1, %v2849_v39, 0.0 }
 0x4ef   :  { %2856 = vadd.xlane.f32.xlu1 %v2855_v15  ;;  %7348 = vmatpush3.bf16.msra.mxu1 %v7778_v7 }
 0x4f0   :  { %7369 = vmatprep.subr.bf16.mxu1 %v7946_v0 }
 0x56c   :  { %v2854_v8 = vpop.xlane.xlu0 %2853 }
 0x56d   :  { %v2859_v40 = vmul.f32 0.03125, %v2854_v8 }
 0x56f   :  { %v2861_v41 = vsub.f32 %v2848_v19, %v2859_v40 }
 0x571   :  { %v2863_v42 = vmul.f32 %v2861_v41, %v2861_v41 }
 0x573   :  { %v2865_v31 = vsel %vm348_vm1, %v2863_v42, 0.0 }
 0x574   :  { %2866 = vadd.xlane.f32.xlu0 %v2865_v31 }
 0x57c   :  { %v2857_v20 = vpop.xlane.xlu1 %2856 }
 0x57d   :  { %v2860_v43 = vmul.f32 0.03125, %v2857_v20 }
 0x57f   :  { %v2862_v45 = vsub.f32 %v2849_v39, %v2860_v43 }
 0x581   :  { %v2864_v35 = vmul.f32 %v2862_v45, %v2862_v45 }
 0x583   :  { %v2868_v46 = vsel %vm348_vm1, %v2864_v35, 0.0 }
 0x584   :  { %2869 = vadd.xlane.f32.xlu1 %v2868_v46 }
 0x601   :  { %v2867_v48 = vpop.xlane.xlu0 %2866 }
 0x602   :  { %v2871_v14 = vmul.f32 0.03125, %v2867_v48 }
 0x604   :  { %v2873_v16 = vadd.f32 1e-12, %v2871_v14 }
 0x606   :  { %7868 = vrsqrt.f32 %v2873_v16 }
 0x610   :  { %v7869_v51 = vpop.eup %7868 }
 0x611   :  { %v2870_v21 = vpop.xlane.xlu1 %2869  ;;  %v2877_v52 = vmul.f32 %v7869_v51, %v2861_v41  ;;  %v7780_v51 = vld [vmem:[%s9457_s29 + $0x1a0] sm:$0xff]  }
 0x612   :  { %v2872_v49 = vmul.f32 0.03125, %v2870_v21 }
 0x613   :  { %v2885_v56 = vmul.f32 %v6431_v53, %v2877_v52  ;;  %v7781_v52 = vld [vmem:[%s9457_s29 + $0x188] sm:$0xff]  }
 0x614   :  { %v2874_v50 = vadd.f32 1e-12, %v2872_v49 }
 0x615   :  { %v2893_v59 = vadd.f32 %v6432_v58, %v2885_v56 }
 0x616   :  { %7870 = vrsqrt.f32 %v2874_v50  ;;  %v7779_v50 = vld [vmem:[%s9457_s29 + $0x180] sm:$0xff]  }
 0x620   :  { %v7871_v54 = vpop.eup %7870 }
 0x621   :  { %v2878_v57 = vmul.f32 %v7871_v54, %v2862_v45 }
 0x623   :  { %v2886_v55 = vmul.f32 %v6431_v53, %v2878_v57  ;;  %v7782_v53 = vld [vmem:[%s9457_s29 + $0x1a8] sm:$0xff]  }
 0x625   :  { %v2894_v60 = vadd.f32 %v6432_v58, %v2886_v55 }
 0x627   :  { %v2895_v62 = vpack.c.bf16 %v2894_v60, %v2893_v59 }
 0x629   :  { %7338 = vmatmul.mubr.msk.bf16.vlgmr.msra.gmra.mrb[96].mxu0 %vm348_vm1, %v2895_v62  ;;  %v6443_v62 = vld [vmem:[%s9444_s12] ss:$0 sm:$0xff] }
 0x62a   :  { %7357 = vmatprep.mubr.msk.bf16.mxu0 %vm7947_vm0, %v7946_v0  ;;  %7354 = vmatpush3.bf16.msra.mxu0 %v7779_v50  ;;  %v7824_v50 = vld [vmem:[%s9457_s29 + $0x2d8] sm:$0xff]  }
 0x62b   :  { %7355 = vmatprep.subr.bf16.mxu0 %v7946_v0 }
 0x62e   :  { %7356 = vmatpush3.bf16.msra.mxu0 %v7781_v52  ;;  %v7826_v52 = vld [vmem:[%s9457_s29 + $0x2f8] sm:$0xff]  }
 0x62f   :  { %7361 = vmatprep.subr.bf16.mxu0 %v7946_v0 }
 0x6fc   :  { %v2956_v10 = vpop.f32.mrb[96].mxu0 }
 0x6fd   :  { %v2957_v61 = vadd.f32 %v6433_v9, %v2956_v10  ;;  %v7339_v12 = vpop.f32.mrb[97].mxu0 }
 0x6fe   :  { %v2959_v13 = vpop.f32.mrb[98].mxu0  ;;  %v7784_v12 = vld [vmem:[%s9457_s29 + $0x1c0] sm:$0xff]  }
 0x6ff   :  { %v2963_v17 = vmul.f32 %v2957_v61, %v2957_v61  ;;  %v2960_v18 = vadd.f32 %v6433_v9, %v2959_v13  ;;  %v7340_v19 = vpop.f32.mrb[99].mxu0 }
 0x700   :  { %v7786_v19 = vld [vmem:[%s9457_s29 + $0x1c8] sm:$0xff]  }
 0x701   :  { %v2965_v63 = vmul.f32 %v2963_v17, %v2957_v61  ;;  %v2964_v22 = vmul.f32 %v2960_v18, %v2960_v18 }
 0x703   :  { %v2967_v23 = vmul.f32 0.044715, %v2965_v63  ;;  %v2966_v2 = vmul.f32 %v2964_v22, %v2960_v18  ;;  %v7787_v22 = vld [vmem:[%s9457_s29 + $0x1b0] sm:$0xff]  }
 0x705   :  { %v2969_v24 = vadd.f32 %v2967_v23, %v2957_v61  ;;  %v2968_v25 = vmul.f32 0.044715, %v2966_v2  ;;  %v7788_v23 = vld [vmem:[%s9457_s29 + $0x1e0] sm:$0xff]  }
 0x707   :  { %v2971_v26 = vmul.f32 0.7978846, %v2969_v24  ;;  %v2970_v27 = vadd.f32 %v2968_v25, %v2960_v18  ;;  %v7789_v24 = vld [vmem:[%s9457_s29 + $0x1b8] sm:$0xff]   ;;  %v7790_v25 = vld [vmem:[%s9457_s29 + $0x1e8] sm:$0xff]  }
 0x709   :  { %7872 = vtanh.f32 %v2971_v26  ;;  %v2972_v5 = vmul.f32 0.7978846, %v2970_v27  ;;  %v7791_v26 = vld [vmem:[%s9457_s29 + $0x1d0] sm:$0xff]   ;;  %v7792_v27 = vld [vmem:[%s9457_s29 + $0x200] sm:$0xff]  }
 0x70b   :  { %7874 = vtanh.f32 %v2972_v5  ;;  %v7793_v5 = vld [vmem:[%s9457_s29 + $0x1d8] sm:$0xff]  }
 0x713   :  { %v7873_v28 = vpop.eup %7872 }
 0x714   :  { %v2975_v29 = vadd.f32 1.0, %v7873_v28  ;;  %v7794_v28 = vld [vmem:[%s9457_s29 + $0x208] sm:$0xff]  }
 0x715   :  { %v7875_v30 = vpop.eup %7874 }
 0x716   :  { %v2977_v11 = vmul.f32 0.5, %v2975_v29  ;;  %v2976_v32 = vadd.f32 1.0, %v7875_v30  ;;  %v7795_v29 = vld [vmem:[%s9457_s29 + $0x1f0] sm:$0xff]   ;;  %v7796_v30 = vld [vmem:[%s9457_s29 + $0x220] sm:$0xff]  }
 0x718   :  { %v2978_v6 = vmul.f32 0.5, %v2976_v32  ;;  %v2979_v33 = vmul.f32 %v2977_v11, %v2957_v61  ;;  %v7783_v61 = vld [vmem:[%s9457_s29 + $0x190] sm:$0xff]   ;;  %v7797_v11 = vld [vmem:[%s9457_s29 + $0x1f8] sm:$0xff]   ;;  %v7798_v32 = vld [vmem:[%s9457_s29 + $0x228] sm:$0xff]  }
 0x71a   :  { %v2980_v34 = vmul.f32 %v2978_v6, %v2960_v18  ;;  %v7785_v18 = vld [vmem:[%s9457_s29 + $0x198] sm:$0xff]   ;;  %v7799_v6 = vld [vmem:[%s9457_s29 + $0x210] sm:$0xff]  }
 0x71c   :  { %v2981_v36 = vpack.c.bf16 %v2980_v34, %v2979_v33  ;;  %v7800_v33 = vld [vmem:[%s9457_s29 + $0x240] sm:$0xff]   ;;  %v7801_v34 = vld [vmem:[%s9457_s29 + $0x218] sm:$0xff]  }
 0x71e   :  { %7350 = vmatmul.mubr.msk.bf16.vlgmr.msra.gmra.mrb[96].mxu1 %vm3021_vm4, %v2981_v36  ;;  %v7802_v36 = vld [vmem:[%s9457_s29 + $0x248] sm:$0xff]  }
 0x71f   :  { %7373 = vmatprep.mubr.msk.bf16.mxu1 %vm7947_vm0, %v7946_v0  ;;  %7370 = vmatpush3.bf16.msra.mxu1 %v7780_v51  ;;  %v7825_v51 = vld [vmem:[%s9457_s29 + $0x2f0] sm:$0xff]  }
 0x720   :  { %7371 = vmatprep.subr.bf16.mxu1 %v7946_v0 }
 0x723   :  { %7372 = vmatpush3.bf16.msra.mxu1 %v7782_v53 }
 0x724   :  { %7385 = vmatprep.subr.bf16.mxu1 %v7946_v0 }
 0x7f1   :  { %v3059_v38 = vpop.f32.mrb[96].mxu1 }
 0x7f2   :  { %v3060_v39 = vadd.f32 %v6437_v37, %v3059_v38  ;;  %v7351_v15 = vpop.f32.mrb[97].mxu1  ;;  %v7804_v38 = vld [vmem:[%s9457_s29 + $0x260] sm:$0xff]  }
 0x7f3   :  { %v3062_v8 = vpop.f32.mrb[98].mxu1  ;;  %v7806_v15 = vld [vmem:[%s9457_s29 + $0x268] sm:$0xff]  }
 0x7f4   :  { %v3063_v40 = vadd.f32 %v6437_v37, %v3062_v8  ;;  %v7352_v41 = vpop.f32.mrb[99].mxu1  ;;  %v3066_v42 = vadd.f32 %v3060_v39, %v2893_v59  ;;  %v7803_v37 = vld [vmem:[%s9457_s29 + $0x230] sm:$0xff]   ;;  %v7805_v39 = vld [vmem:[%s9457_s29 + $0x238] sm:$0xff]  }
 0x7f5   :  { %v7807_v8 = vld [vmem:[%s9457_s29 + $0x250] sm:$0xff]   ;;  %v7809_v41 = vld [vmem:[%s9457_s29 + $0x258] sm:$0xff]  }
 0x7f6   :  { %v3070_v31 = vsel %vm348_vm1, %v3066_v42, 0.0  ;;  %v3067_v20 = vadd.f32 %v3063_v40, %v2894_v60  ;;  %v7808_v40 = vld [vmem:[%s9457_s29 + $0x280] sm:$0xff]  }
 0x7f7   :  { %3071 = vadd.xlane.f32.xlu0 %v3070_v31  ;;  %v7811_v31 = vld [vmem:[%s9457_s29 + $0x270] sm:$0xff]  }
 0x7f8   :  { %v3073_v43 = vsel %vm348_vm1, %v3067_v20, 0.0 }
 0x7f9   :  { %3074 = vadd.xlane.f32.xlu1 %v3073_v43  ;;  %v7813_v43 = vld [vmem:[%s9457_s29 + $0x278] sm:$0xff]  }
 0x884   :  { %v3072_v45 = vpop.xlane.xlu0 %3071 }
 0x885   :  { %v3076_v35 = vmul.f32 0.03125, %v3072_v45  ;;  %v7814_v45 = vld [vmem:[%s9457_s29 + $0x2a8] sm:$0xff]  }
 0x886   :  { %v3075_v46 = vpop.xlane.xlu1 %3074 }
 0x887   :  { %v3078_v47 = vsub.f32 %v3066_v42, %v3076_v35  ;;  %v3077_v44 = vmul.f32 0.03125, %v3075_v46  ;;  %v7810_v42 = vld [vmem:[%s9457_s29 + $0x288] sm:$0xff]   ;;  %v7815_v35 = vld [vmem:[%s9457_s29 + $0x290] sm:$0xff]   ;;  %v7816_v46 = vld [vmem:[%s9457_s29 + $0x2c0] sm:$0xff]  }
 0x889   :  { %v3079_v48 = vsub.f32 %v3067_v20, %v3077_v44  ;;  %v3080_v14 = vmul.f32 %v3078_v47, %v3078_v47  ;;  %v7812_v20 = vld [vmem:[%s9457_s29 + $0x2a0] sm:$0xff]   ;;  %v7818_v44 = vld [vmem:[%s9457_s29 + $0x2c8] sm:$0xff]  }
 0x88b   :  { %v3082_v16 = vsel %vm348_vm1, %v3080_v14, 0.0  ;;  %v3081_v21 = vmul.f32 %v3079_v48, %v3079_v48  ;;  %v7820_v14 = vld [vmem:[%s9457_s29 + $0x2e0] sm:$0xff]  }
 0x88c   :  { %3083 = vadd.xlane.f32.xlu0 %v3082_v16  ;;  %v7821_v16 = vld [vmem:[%s9457_s29 + $0x2b8] sm:$0xff]  }
 0x88d   :  { %v3085_v49 = vsel %vm348_vm1, %v3081_v21, 0.0  ;;  %v7822_v21 = vld [vmem:[%s9457_s29 + $0x2e8] sm:$0xff]  }
 0x88e   :  { %3086 = vadd.xlane.f32.xlu1 %v3085_v49  ;;  %v7823_v49 = vld [vmem:[%s9457_s29 + $0x2d0] sm:$0xff]  }
 0x919   :  { %v3084_v54 = vpop.xlane.xlu0 %3083 }
 0x91a   :  { %v3088_v56 = vmul.f32 0.03125, %v3084_v54 }
 0x91b   :  { %v3087_v57 = vpop.xlane.xlu1 %3086 }
 0x91c   :  { %v3090_v58 = vadd.f32 1e-12, %v3088_v56  ;;  %v3089_v55 = vmul.f32 0.03125, %v3087_v57 }
 0x91e   :  { %7876 = vrsqrt.f32 %v3090_v58  ;;  %v3091_v59 = vadd.f32 1e-12, %v3089_v55 }
 0x920   :  { %7878 = vrsqrt.f32 %v3091_v59 }
 0x928   :  { %v7877_v60 = vpop.eup %7876 }
 0x929   :  { %v3094_v1 = vmul.f32 %v7877_v60, %v3078_v47  ;;  %v7817_v47 = vld [vmem:[%s9457_s29 + $0x298] sm:$0xff]  }
 0x92a   :  { %v7879_v3 = vpop.eup %7878 }
 0x92b   :  { %v3102_v7 = vmul.f32 %v6443_v62, %v3094_v1  ;;  %v3095_v9 = vmul.f32 %v7879_v3, %v3079_v48  ;;  %v7819_v48 = vld [vmem:[%s9457_s29 + $0x2b0] sm:$0xff]  }
 0x92d   :  { %v8744_v10 = vadd.f32 %v6444_v4, %v3102_v7  ;;  %v3103_v17 = vmul.f32 %v6443_v62, %v3095_v9 }
 0x92f   :  { %v8754_v13 = vpack.c.bf16 %v8744_v10, %v8744_v10  ;;  %v8766_v63 = vadd.f32 %v6444_v4, %v3103_v17 }
 0x931   :  { %7358 = vmatmul.mubr.msk.bf16.vlgmr.msra.gmra.mrb[100].mxu0 %vm348_vm1, %v8754_v13  ;;  %7374 = vmatmul.mubr.msk.bf16.vlgmr.msra.gmra.mrb[100].mxu1 %vm348_vm1, %v8754_v13  ;;  %v8782_v2 = vpack.c.bf16 %v8766_v63, %v8766_v63 }
 0x932   :  { %7362 = vmatpush3.bf16.msra.mxu0 %v7783_v61  ;;  %7386 = vmatpush3.bf16.msra.mxu1 %v7784_v12 }
 0x933   :  { %7363 = vmatprep.subr.bf16.mxu0 %v7946_v0  ;;  %7387 = vmatprep.subr.bf16.mxu1 %v7946_v0 }
 0x934   :  { %7365 = vmatprep.mubr.msk.bf16.mxu0 %vm7947_vm0, %v7946_v0  ;;  %7389 = vmatprep.mubr.msk.bf16.mxu1 %vm7947_vm0, %v7946_v0 }
 0x936   :  { %7364 = vmatpush3.bf16.msra.mxu0 %v7785_v18  ;;  %7388 = vmatpush3.bf16.msra.mxu1 %v7786_v19 }
 0x937   :  { %7377 = vmatprep.subr.bf16.mxu0 %v7946_v0  ;;  %7401 = vmatprep.subr.bf16.mxu1 %v7946_v0 }
 0x939   :  { %7366 = vmatmul.mubr.msk.bf16.vlgmr.msra.gmra.mrb[104].mxu0 %vm348_vm1, %v8754_v13  ;;  %7390 = vmatmul.mubr.msk.bf16.vlgmr.msra.gmra.mrb[104].mxu1 %vm348_vm1, %v8782_v2 }
 0x93a   :  { %7378 = vmatpush3.bf16.msra.mxu0 %v7787_v22  ;;  %7402 = vmatpush3.bf16.msra.mxu1 %v7788_v23 }
 0x93b   :  { %7379 = vmatprep.subr.bf16.mxu0 %v7946_v0  ;;  %7403 = vmatprep.subr.bf16.mxu1 %v7946_v0 }
 0x93c   :  { %7381 = vmatprep.mubr.msk.bf16.mxu0 %vm7947_vm0, %v7946_v0  ;;  %7405 = vmatprep.mubr.msk.bf16.mxu1 %vm7947_vm0, %v7946_v0 }
 0x93e   :  { %7380 = vmatpush3.bf16.msra.mxu0 %v7789_v24  ;;  %7404 = vmatpush3.bf16.msra.mxu1 %v7790_v25  ;;  %v6573_v25 = vld [vmem:[%s9459_s25 + $0x20] ss:$0 sm:$0xff] }
 0x93f   :  { %7393 = vmatprep.subr.bf16.mxu0 %v7946_v0  ;;  %7417 = vmatprep.subr.bf16.mxu1 %v7946_v0 }
 0x941   :  { %7382 = vmatmul.mubr.msk.bf16.vlgmr.msra.gmra.mrb[108].mxu0 %vm348_vm1, %v8754_v13  ;;  %7406 = vmatmul.mubr.msk.bf16.vlgmr.msra.gmra.mrb[108].mxu1 %vm348_vm1, %v8782_v2 }
 0x942   :  { %7394 = vmatpush3.bf16.msra.mxu0 %v7791_v26  ;;  %7418 = vmatpush3.bf16.msra.mxu1 %v7792_v27 }
 0x943   :  { %7395 = vmatprep.subr.bf16.mxu0 %v7946_v0  ;;  %7419 = vmatprep.subr.bf16.mxu1 %v7946_v0 }
 0x944   :  { %7397 = vmatprep.mubr.msk.bf16.mxu0 %vm7947_vm0, %v7946_v0  ;;  %7421 = vmatprep.mubr.msk.bf16.mxu1 %vm7947_vm0, %v7946_v0 }
 0x946   :  { %7396 = vmatpush3.bf16.msra.mxu0 %v7793_v5  ;;  %7420 = vmatpush3.bf16.msra.mxu1 %v7794_v28 }
 0x947   :  { %7409 = vmatprep.subr.bf16.mxu0 %v7946_v0  ;;  %7433 = vmatprep.subr.bf16.mxu1 %v7946_v0 }
 0x949   :  { %7398 = vmatmul.mubr.msk.bf16.vlgmr.msra.gmra.mrb[112].mxu0 %vm348_vm1, %v8782_v2  ;;  %7422 = vmatmul.mubr.msk.bf16.vlgmr.msra.gmra.mrb[112].mxu1 %vm348_vm1, %v8754_v13 }
 0x94a   :  { %7410 = vmatpush3.bf16.msra.mxu0 %v7795_v29  ;;  %7434 = vmatpush3.bf16.msra.mxu1 %v7796_v30 }
 0x94b   :  { %7411 = vmatprep.subr.bf16.mxu0 %v7946_v0  ;;  %7435 = vmatprep.subr.bf16.mxu1 %v7946_v0 }
 0x94c   :  { %7413 = vmatprep.mubr.msk.bf16.mxu0 %vm7947_vm0, %v7946_v0  ;;  %7437 = vmatprep.mubr.msk.bf16.mxu1 %vm7947_vm0, %v7946_v0 }
 0x94e   :  { %7412 = vmatpush3.bf16.msra.mxu0 %v7797_v11  ;;  %7436 = vmatpush3.bf16.msra.mxu1 %v7798_v32 }
 0x94f   :  { %7425 = vmatprep.subr.bf16.mxu0 %v7946_v0  ;;  %7449 = vmatprep.subr.bf16.mxu1 %v7946_v0 }
 0x951   :  { %7414 = vmatmul.mubr.msk.bf16.vlgmr.msra.gmra.mrb[116].mxu0 %vm348_vm1, %v8782_v2  ;;  %7438 = vmatmul.mubr.msk.bf16.vlgmr.msra.gmra.mrb[116].mxu1 %vm348_vm1, %v8754_v13 }
 0x952   :  { %7426 = vmatpush3.bf16.msra.mxu0 %v7799_v6  ;;  %7450 = vmatpush3.bf16.msra.mxu1 %v7800_v33 }
 0x953   :  { %7427 = vmatprep.subr.bf16.mxu0 %v7946_v0  ;;  %7451 = vmatprep.subr.bf16.mxu1 %v7946_v0 }
 0x954   :  { %7429 = vmatprep.mubr.msk.bf16.mxu0 %vm7947_vm0, %v7946_v0  ;;  %7453 = vmatprep.mubr.msk.bf16.mxu1 %vm7947_vm0, %v7946_v0 }
 0x956   :  { %7428 = vmatpush3.bf16.msra.mxu0 %v7801_v34  ;;  %7452 = vmatpush3.bf16.msra.mxu1 %v7802_v36  ;;  %v6565_v34 = vld [vmem:[%s9459_s25 + $0x18] ss:$0 sm:$0xff] }
 0x957   :  { %7441 = vmatprep.subr.bf16.mxu0 %v7946_v0  ;;  %7465 = vmatprep.subr.bf16.mxu1 %v7946_v0 }
 0x959   :  { %7430 = vmatmul.mubr.msk.bf16.vlgmr.msra.gmra.mrb[120].mxu0 %vm348_vm1, %v8754_v13  ;;  %7454 = vmatmul.mubr.msk.bf16.vlgmr.msra.gmra.mrb[120].mxu1 %vm348_vm1, %v8782_v2 }
 0x95a   :  { %7442 = vmatpush3.bf16.msra.mxu0 %v7803_v37  ;;  %7466 = vmatpush3.bf16.msra.mxu1 %v7804_v38  ;;  %v6575_v37 = vld [vmem:[%s9459_s25 + $0x22] ss:$0 sm:$0xff] }
 0x95b   :  { %7443 = vmatprep.subr.bf16.mxu0 %v7946_v0  ;;  %7467 = vmatprep.subr.bf16.mxu1 %v7946_v0 }
 0x95c   :  { %7445 = vmatprep.mubr.msk.bf16.mxu0 %vm7947_vm0, %v7946_v0  ;;  %7469 = vmatprep.mubr.msk.bf16.mxu1 %vm7947_vm0, %v7946_v0 }
 0x95e   :  { %7444 = vmatpush3.bf16.msra.mxu0 %v7805_v39  ;;  %7468 = vmatpush3.bf16.msra.mxu1 %v7806_v15 }
 0x95f   :  { %7457 = vmatprep.subr.bf16.mxu0 %v7946_v0  ;;  %7481 = vmatprep.subr.bf16.mxu1 %v7946_v0 }
 0x961   :  { %7446 = vmatmul.mubr.msk.bf16.vlgmr.msra.gmra.mrb[124].mxu0 %vm348_vm1, %v8754_v13  ;;  %7470 = vmatmul.mubr.msk.bf16.vlgmr.msra.gmra.mrb[124].mxu1 %vm348_vm1, %v8782_v2 }
 0x962   :  { %7458 = vmatpush3.bf16.msra.mxu0 %v7807_v8  ;;  %7482 = vmatpush3.bf16.msra.mxu1 %v7808_v40 }
 0x963   :  { %7459 = vmatprep.subr.bf16.mxu0 %v7946_v0  ;;  %7483 = vmatprep.subr.bf16.mxu1 %v7946_v0 }
 0x964   :  { %7461 = vmatprep.mubr.msk.bf16.mxu0 %vm7947_vm0, %v7946_v0  ;;  %7485 = vmatprep.mubr.msk.bf16.mxu1 %vm7947_vm0, %v7946_v0 }
 0x966   :  { %7460 = vmatpush3.bf16.msra.mxu0 %v7809_v41  ;;  %7484 = vmatpush3.bf16.msra.mxu1 %v7810_v42 }
 0x967   :  { %7473 = vmatprep.subr.bf16.mxu0 %v7946_v0  ;;  %7497 = vmatprep.subr.bf16.mxu1 %v7946_v0 }
 0x969   :  { %7462 = vmatmul.mubr.msk.bf16.vlgmr.msra.gmra.mrb[128].mxu0 %vm348_vm1, %v8782_v2  ;;  %7486 = vmatmul.mubr.msk.bf16.vlgmr.msra.gmra.mrb[128].mxu1 %vm348_vm1, %v8754_v13 }
 0x96a   :  { %7474 = vmatpush3.bf16.msra.mxu0 %v7811_v31  ;;  %7498 = vmatpush3.bf16.msra.mxu1 %v7812_v20 }
 0x96b   :  { %7475 = vmatprep.subr.bf16.mxu0 %v7946_v0  ;;  %7499 = vmatprep.subr.bf16.mxu1 %v7946_v0 }
 0x96c   :  { %7477 = vmatprep.mubr.msk.bf16.mxu0 %vm7947_vm0, %v7946_v0  ;;  %7501 = vmatprep.mubr.msk.bf16.mxu1 %vm7947_vm0, %v7946_v0 }
 0x96e   :  { %7476 = vmatpush3.bf16.msra.mxu0 %v7813_v43  ;;  %7500 = vmatpush3.bf16.msra.mxu1 %v7814_v45 }
 0x96f   :  { %7489 = vmatprep.subr.bf16.mxu0 %v7946_v0  ;;  %7513 = vmatprep.subr.bf16.mxu1 %v7946_v0 }
 0x971   :  { %7478 = vmatmul.mubr.msk.bf16.vlgmr.msra.gmra.mrb[132].mxu0 %vm348_vm1, %v8782_v2  ;;  %7502 = vmatmul.mubr.msk.bf16.vlgmr.msra.gmra.mrb[132].mxu1 %vm348_vm1, %v8754_v13 }
 0x972   :  { %7490 = vmatpush3.bf16.msra.mxu0 %v7815_v35  ;;  %7514 = vmatpush3.bf16.msra.mxu1 %v7816_v46  ;;  %v6567_v46 = vld [vmem:[%s9459_s25 + $0x1a] ss:$0 sm:$0xff] }
 0x973   :  { %7491 = vmatprep.subr.bf16.mxu0 %v7946_v0  ;;  %7515 = vmatprep.subr.bf16.mxu1 %v7946_v0 }
 0x974   :  { %7493 = vmatprep.mubr.msk.bf16.mxu0 %vm7947_vm0, %v7946_v0  ;;  %7517 = vmatprep.mubr.msk.bf16.mxu1 %vm7947_vm0, %v7946_v0 }
 0x976   :  { %7492 = vmatpush3.bf16.msra.mxu0 %v7817_v47  ;;  %7516 = vmatpush3.bf16.msra.mxu1 %v7818_v44  ;;  %v6574_v44 = vld [vmem:[%s9459_s25 + $0x21] ss:$0 sm:$0xff] }
 0x977   :  { %7505 = vmatprep.subr.bf16.mxu0 %v7946_v0  ;;  %7529 = vmatprep.subr.bf16.mxu1 %v7946_v0 }
 0x979   :  { %7494 = vmatmul.mubr.msk.bf16.vlgmr.msra.gmra.mrb[136].mxu0 %vm348_vm1, %v8754_v13  ;;  %7518 = vmatmul.mubr.msk.bf16.vlgmr.msra.gmra.mrb[136].mxu1 %vm348_vm1, %v8782_v2 }
 0x97a   :  { %7506 = vmatpush3.bf16.msra.mxu0 %v7819_v48  ;;  %7530 = vmatpush3.bf16.msra.mxu1 %v7820_v14  ;;  %v6577_v48 = vld [vmem:[%s9459_s25 + $0x24] ss:$0 sm:$0xff] }
 0x97b   :  { %7507 = vmatprep.subr.bf16.mxu0 %v7946_v0  ;;  %7531 = vmatprep.subr.bf16.mxu1 %v7946_v0 }
 0x97c   :  { %7509 = vmatprep.mubr.msk.bf16.mxu0 %vm7947_vm0, %v7946_v0  ;;  %7533 = vmatprep.mubr.msk.bf16.mxu1 %vm7947_vm0, %v7946_v0 }
 0x97e   :  { %7508 = vmatpush3.bf16.msra.mxu0 %v7821_v16  ;;  %7532 = vmatpush3.bf16.msra.mxu1 %v7822_v21 }
 0x97f   :  { %7521 = vmatprep.subr.bf16.mxu0 %v7946_v0  ;;  %7545 = vmatprep.subr.bf16.mxu1 %v7946_v0 }
 0x981   :  { %7510 = vmatmul.mubr.msk.bf16.vlgmr.msra.gmra.mrb[140].mxu0 %vm348_vm1, %v8754_v13  ;;  %7534 = vmatmul.mubr.msk.bf16.vlgmr.msra.gmra.mrb[140].mxu1 %vm348_vm1, %v8782_v2 }
 0x982   :  { %7522 = vmatpush3.bf16.msra.mxu0 %v7823_v49  ;;  %7525 = vmatprep.mubr.msk.bf16.mxu0 %vm7947_vm0, %v7946_v0 }
 0x983   :  { %7523 = vmatprep.subr.bf16.mxu0 %v7946_v0  ;;  %7547 = vmatprep.mubr.msk.bf16.mxu1 %vm7947_vm0, %v7946_v0 }
 0x986   :  { %7524 = vmatpush3.bf16.msra.mxu0 %v7824_v50 }
 0x987   :  { %7537 = vmatprep.subr.bf16.mxu0 %v7946_v0 }
 0x989   :  { %7526 = vmatmul.mubr.msk.bf16.vlgmr.msra.gmra.mrb[144].mxu0 %vm348_vm1, %v8782_v2 }
 0x98a   :  { %7538 = vmatpush3.bf16.msra.mxu0 %v7825_v51  ;;  %7541 = vmatprep.mubr.msk.bf16.mxu0 %vm7947_vm0, %v7946_v0 }
 0x98b   :  { %7539 = vmatprep.subr.bf16.mxu0 %v7946_v0 }
 0x98e   :  { %7540 = vmatpush3.bf16.msra.mxu0 %v7826_v52 }
 0x98f   :  { %7551 = vmatprep.subr.bf16.mxu0 %v7946_v0 }
 0x991   :  { %7542 = vmatmul.mubr.msk.bf16.vlgmr.msra.gmra.mrb[148].mxu0 %vm348_vm1, %v8782_v2 }
 0x992   :  { %7553 = vmatprep.mubr.msk.bf16.mxu0 %vm7947_vm0, %v7946_v0 }
 0xa04   :  { %v3429_v53 = vpop.f32.mrb[100].mxu0  ;;  %v3533_v54 = vpop.f32.mrb[100].mxu1 }
 0xa05   :  { %v7359_v56 = vpop.f32.mrb[101].mxu0  ;;  %v7375_v57 = vpop.f32.mrb[101].mxu1  ;;  %v3430_v38 = vadd.f32 %v6565_v34, %v3429_v53  ;;  %v3534_v14 = vadd.f32 %v6567_v46, %v3533_v54  ;;  %v6569_v54 = vld [vmem:[%s9459_s25 + $0x1c] ss:$0 sm:$0xff] }
 0xa06   :  { %v3432_v58 = vpop.f32.mrb[102].mxu0  ;;  %v3536_v55 = vpop.f32.mrb[102].mxu1 }
 0xa07   :  { %v7360_v59 = vpop.f32.mrb[103].mxu0  ;;  %v7376_v60 = vpop.f32.mrb[103].mxu1  ;;  %v4634_v20 = vpack.c.bf16 %v3430_v38, %v3430_v38  ;;  %v4636_v57 = vpack.c.bf16 %v3534_v14, %v3534_v14 }
 0xa0c   :  { %v9028_v62 = vpop.f32.mrb[104].mxu0  ;;  %v9030_v1 = vpop.f32.mrb[104].mxu1 }
 0xa0d   :  { %v7367_v3 = vpop.f32.mrb[105].mxu0  ;;  %v7391_v4 = vpop.f32.mrb[105].mxu1 }
 0xa0e   :  { %v3484_v7 = vpop.f32.mrb[106].mxu0  ;;  %v3643_v9 = vpop.f32.mrb[106].mxu1  ;;  %v6566_v3 = vld [vmem:[%s9459_s25 + $0x19] ss:$0 sm:$0xff] }
 0xa0f   :  { %v7368_v61 = vpop.f32.mrb[107].mxu0  ;;  %v7392_v12 = vpop.f32.mrb[107].mxu1  ;;  %v6576_v9 = vld [vmem:[%s9459_s25 + $0x23] ss:$0 sm:$0xff] }
 0xa10   :  { %v6579_v61 = vld [vmem:[%s9459_s25 + $0x26] ss:$0 sm:$0xff]  ;;  %v3482_v12 = vadd.f32 %v6566_v3, %v9028_v62  ;;  %v6572_v3 = vld [vmem:[%s9459_s25 + $0x1f] ss:$0 sm:$0xff] }
 0xa14   :  { %v9032_v13 = vpop.f32.mrb[108].mxu0  ;;  %v9034_v17 = vpop.f32.mrb[108].mxu1 }
 0xa15   :  { %v7383_v18 = vpop.f32.mrb[109].mxu0  ;;  %v7407_v19 = vpop.f32.mrb[109].mxu1 }
 0xa16   :  { %v3588_v22 = vpop.f32.mrb[110].mxu0  ;;  %v3747_v23 = vpop.f32.mrb[110].mxu1  ;;  %v3641_v18 = vadd.f32 %v6569_v54, %v9030_v1 }
 0xa17   :  { %v7384_v2 = vpop.f32.mrb[111].mxu0  ;;  %v7408_v24 = vpop.f32.mrb[111].mxu1 }
 0xa1c   :  { %v9039_v26 = vpop.f32.mrb[112].mxu0  ;;  %v3848_v27 = vpop.f32.mrb[112].mxu1 }
 0xa1d   :  { %v3849_v5 = vadd.f32 %v6573_v25, %v3848_v27  ;;  %v7399_v28 = vpop.f32.mrb[113].mxu0  ;;  %v7423_v29 = vpop.f32.mrb[113].mxu1 }
 0xa1e   :  { %v3695_v30 = vpop.f32.mrb[114].mxu0  ;;  %v3851_v11 = vpop.f32.mrb[114].mxu1  ;;  %v4635_v28 = vpack.c.bf16 %v3482_v12, %v3482_v12  ;;  %v4638_v29 = vpack.c.bf16 %v3641_v18, %v3641_v18 }
 0xa1f   :  { %v4642_v32 = vpack.c.bf16 %v3849_v5, %v3849_v5  ;;  %v7400_v6 = vpop.f32.mrb[115].mxu0  ;;  %v7424_v33 = vpop.f32.mrb[115].mxu1 }
 0xa20   :  { %v6571_v6 = vld [vmem:[%s9459_s25 + $0x1e] ss:$0 sm:$0xff] }
 0xa21   :  { %v4654_v36 = vsel %vm1607_vm2, %v4642_v32, 0  ;;  %v6568_v32 = vld [vmem:[%s9459_s25 + $0x1b] ss:$0 sm:$0xff] }
 0xa22   :  { %7546 = vmatpush3.bf16.xpose.msra.mxu1 %v4654_v36  ;;  %v6578_v36 = vld [vmem:[%s9459_s25 + $0x25] ss:$0 sm:$0xff]  ;;  %v3586_v38 = vadd.f32 %v6568_v32, %v9032_v13 }
 0xa23   :  { %7557 = vmatprep.subr.bf16.mxu1 %v7946_v0 }
 0xa24   :  { %v9049_v39 = vpop.f32.mrb[116].mxu0  ;;  %v3952_v15 = vpop.f32.mrb[116].mxu1 }
 0xa25   :  { %v3953_v8 = vadd.f32 %v6575_v37, %v3952_v15  ;;  %v7415_v40 = vpop.f32.mrb[117].mxu0  ;;  %v7439_v41 = vpop.f32.mrb[117].mxu1  ;;  %v6581_v37 = vld [vmem:[%s9459_s25 + $0x28] ss:$0 sm:$0xff]  ;;  %v3745_v15 = vadd.f32 %v6571_v6, %v9034_v17 }
 0xa26   :  { %v3799_v42 = vpop.f32.mrb[118].mxu0  ;;  %v3955_v31 = vpop.f32.mrb[118].mxu1 }
 0xa27   :  { %v4644_v43 = vpack.c.bf16 %v3953_v8, %v3953_v8  ;;  %v7416_v45 = vpop.f32.mrb[119].mxu0  ;;  %v7440_v35 = vpop.f32.mrb[119].mxu1  ;;  %v4640_v17 = vpack.c.bf16 %v3745_v15, %v3745_v15 }
 0xa28   :  { %v4637_v45 = vpack.c.bf16 %v3586_v38, %v3586_v38 }
 0xa29   :  { %v4746_v47 = vsel %vm1607_vm2, %v4644_v43, 0  ;;  %7548 = vmatmul.mubr.msk.bf16.vlgmr.msra.gmra.mrb[144].mxu1 %vm1607_vm2, %v4634_v20 }
 0xa2a   :  { %7558 = vmatpush3.bf16.xpose.msra.mxu1 %v4746_v47  ;;  %7559 = vmatprep.mubr.msk.bf16.mxu1 %vm7947_vm0, %v7946_v0 }
 0xa2b   :  { %7569 = vmatprep.subr.bf16.mxu1 %v7946_v0 }
 0xa2c   :  { %v3900_v16 = vpop.f32.mrb[120].mxu0  ;;  %v4056_v21 = vpop.f32.mrb[120].mxu1 }
 0xa2d   :  { %v3901_v49 = vadd.f32 %v6574_v44, %v3900_v16  ;;  %v4057_v50 = vadd.f32 %v6577_v48, %v4056_v21  ;;  %v7431_v51 = vpop.f32.mrb[121].mxu0  ;;  %v7455_v52 = vpop.f32.mrb[121].mxu1  ;;  %v6570_v48 = vld [vmem:[%s9459_s25 + $0x1d] ss:$0 sm:$0xff]  ;;  %v6580_v21 = vld [vmem:[%s9459_s25 + $0x27] ss:$0 sm:$0xff] }
 0xa2e   :  { %v3903_v53 = vpop.f32.mrb[122].mxu0  ;;  %v4059_v56 = vpop.f32.mrb[122].mxu1 }
 0xa2f   :  { %v4643_v58 = vpack.c.bf16 %v3901_v49, %v3901_v49  ;;  %v4646_v55 = vpack.c.bf16 %v4057_v50, %v4057_v50  ;;  %v7432_v59 = vpop.f32.mrb[123].mxu0  ;;  %v7456_v60 = vpop.f32.mrb[123].mxu1  ;;  %v3693_v49 = vadd.f32 %v6570_v48, %v9039_v26 }
 0xa31   :  { %v4700_v4 = vsel %vm1607_vm2, %v4643_v58, 0  ;;  %v4838_v7 = vsel %vm1607_vm2, %v4646_v55, 0  ;;  %7560 = vmatmul.mubr.msk.bf16.vlgmr.msra.gmra.mrb[148].mxu1 %vm1607_vm2, %v4636_v57  ;;  %v4639_v55 = vpack.c.bf16 %v3693_v49, %v3693_v49 }
 0xa32   :  { %7552 = vmatpush3.bf16.xpose.msra.mxu0 %v4700_v4  ;;  %7570 = vmatpush3.bf16.xpose.msra.mxu1 %v4838_v7  ;;  %v6582_v4 = vld [vmem:[%s9459_s25 + $0x29] ss:$0 sm:$0xff]  ;;  %v3797_v7 = vadd.f32 %v6572_v3, %v9049_v39 }
 0xa33   :  { %7571 = vmatprep.mubr.msk.bf16.mxu1 %vm7947_vm0, %v7946_v0  ;;  %7563 = vmatprep.subr.bf16.mxu0 %v7946_v0 }
 0xa34   :  { %v4004_v19 = vpop.f32.mrb[124].mxu0  ;;  %v4160_v22 = vpop.f32.mrb[124].mxu1  ;;  %7581 = vmatprep.subr.bf16.mxu1 %v7946_v0 }
 0xa35   :  { %v4005_v23 = vadd.f32 %v6576_v9, %v4004_v19  ;;  %v4161_v2 = vadd.f32 %v6579_v61, %v4160_v22  ;;  %v7447_v24 = vpop.f32.mrb[125].mxu0  ;;  %v7471_v25 = vpop.f32.mrb[125].mxu1 }
 0xa36   :  { %v4007_v27 = vpop.f32.mrb[126].mxu0  ;;  %v4163_v5 = vpop.f32.mrb[126].mxu1 }
 0xa37   :  { %v4645_v62 = vpack.c.bf16 %v4005_v23, %v4005_v23  ;;  %v4648_v30 = vpack.c.bf16 %v4161_v2, %v4161_v2  ;;  %v7448_v1 = vpop.f32.mrb[127].mxu0  ;;  %v7472_v11 = vpop.f32.mrb[127].mxu1  ;;  %v4641_v2 = vpack.c.bf16 %v3797_v7, %v3797_v7 }
 0xa39   :  { %v4792_v33 = vsel %vm1607_vm2, %v4645_v62, 0  ;;  %v4930_v34 = vsel %vm1607_vm2, %v4648_v30, 0  ;;  %7554 = vmatmul.mubr.msk.bf16.vlgmr.msra.gmra.mrb[152].mxu0 %vm1607_vm2, %v4635_v28  ;;  %7572 = vmatmul.mubr.msk.bf16.vlgmr.msra.gmra.mrb[152].mxu1 %vm1607_vm2, %v4638_v29 }
 0xa3a   :  { %7564 = vmatpush3.bf16.xpose.msra.mxu0 %v4792_v33  ;;  %7582 = vmatpush3.bf16.xpose.msra.mxu1 %v4930_v34 }
 0xa3b   :  { %7565 = vmatprep.mubr.msk.bf16.mxu0 %vm7947_vm0, %v7946_v0  ;;  %7583 = vmatprep.mubr.msk.bf16.mxu1 %vm7947_vm0, %v7946_v0 }
 0xa3c   :  { %v4108_v8 = vpop.f32.mrb[128].mxu0  ;;  %v4264_v40 = vpop.f32.mrb[128].mxu1  ;;  %7575 = vmatprep.subr.bf16.mxu0 %v7946_v0  ;;  %7593 = vmatprep.subr.bf16.mxu1 %v7946_v0 }
 0xa3d   :  { %v4109_v41 = vadd.f32 %v6578_v36, %v4108_v8  ;;  %v4265_v42 = vadd.f32 %v6581_v37, %v4264_v40  ;;  %v7463_v31 = vpop.f32.mrb[129].mxu0  ;;  %v7487_v20 = vpop.f32.mrb[129].mxu1 }
 0xa3e   :  { %v4111_v43 = vpop.f32.mrb[130].mxu0  ;;  %v4267_v13 = vpop.f32.mrb[130].mxu1 }
 0xa3f   :  { %v4647_v35 = vpack.c.bf16 %v4109_v41, %v4109_v41  ;;  %v5114_v46 = vpack.c.bf16 %v4265_v42, %v4265_v42  ;;  %v7464_v47 = vpop.f32.mrb[131].mxu0  ;;  %v7488_v44 = vpop.f32.mrb[131].mxu1  ;;  %v7938_v41 = vld [vmem:[%s9435_s1] sm:$0xff] }
 0xa41   :  { %v4884_v14 = vsel %vm1607_vm2, %v4647_v35, 0  ;;  %v5126_v16 = vsel %vm2083_vm3, %v5114_v46, 0  ;;  %7566 = vmatmul.mubr.msk.bf16.vlgmr.msra.gmra.mrb[156].mxu0 %vm1607_vm2, %v4637_v45  ;;  %7584 = vmatmul.mubr.msk.bf16.vlgmr.msra.gmra.mrb[156].mxu1 %vm1607_vm2, %v4640_v17  ;;  %v7939_v17 = vld [vmem:[%s9435_s1 + $0x10] sm:$0xff] }
 0xa42   :  { %7576 = vmatpush3.bf16.xpose.msra.mxu0 %v4884_v14  ;;  %7594 = vmatpush3.bf16.msra.mxu1 %v5126_v16 }
 0xa43   :  { %7577 = vmatprep.mubr.msk.bf16.mxu0 %vm7947_vm0, %v7946_v0  ;;  %7587 = vmatprep.subr.bf16.mxu0 %v7946_v0 }
 0xa44   :  { %v4212_v50 = vpop.f32.mrb[132].mxu0  ;;  %v9124_v51 = vpop.f32.mrb[132].mxu1  ;;  %7595 = vmatprep.mubr.msk.bf16.mxu1 %vm7947_vm0, %v7946_v0  ;;  %7605 = vmatprep.subr.bf16.mxu1 %v7946_v0 }
 0xa45   :  { %v4213_v52 = vadd.f32 %v6580_v21, %v4212_v50  ;;  %v7479_v53 = vpop.f32.mrb[133].mxu0  ;;  %v7503_v56 = vpop.f32.mrb[133].mxu1  ;;  %v7940_v21 = vld [vmem:[%s9435_s1 + $0x8] sm:$0xff]  ;;  %v7941_v50 = vld [vmem:[%s9435_s1 + $0x20] sm:$0xff] }
 0xa46   :  { %v4215_v57 = vpop.f32.mrb[134].mxu0  ;;  %v4371_v58 = vpop.f32.mrb[134].mxu1 }
 0xa47   :  { %v4649_v26 = vpack.c.bf16 %v4213_v52, %v4213_v52  ;;  %v7480_v59 = vpop.f32.mrb[135].mxu0  ;;  %v7504_v60 = vpop.f32.mrb[135].mxu1 }
 0xa49   :  { %v4976_v54 = vsel %vm1607_vm2, %v4649_v26, 0  ;;  %7578 = vmatmul.mubr.msk.bf16.vlgmr.msra.gmra.mrb[160].mxu0 %vm1607_vm2, %v4639_v55 }
 0xa4a   :  { %7588 = vmatpush3.bf16.xpose.msra.mxu0 %v4976_v54  ;;  %7589 = vmatprep.mubr.msk.bf16.mxu0 %vm7947_vm0, %v7946_v0 }
 0xa4b   :  { %7599 = vmatprep.subr.bf16.mxu0 %v7946_v0 }
 0xa4c   :  { %v4316_v9 = vpop.f32.mrb[136].mxu0  ;;  %v9141_v61 = vpop.f32.mrb[136].mxu1 }
 0xa4d   :  { %v4317_v12 = vadd.f32 %v6582_v4, %v4316_v9  ;;  %v7495_v18 = vpop.f32.mrb[137].mxu0  ;;  %v7519_v19 = vpop.f32.mrb[137].mxu1  ;;  %v7942_v4 = vld [vmem:[%s9435_s1 + $0x18] sm:$0xff]  ;;  %v7943_v9 = vld [vmem:[%s9435_s1 + $0x30] sm:$0xff] }
 0xa4e   :  { %v4319_v22 = vpop.f32.mrb[138].mxu0  ;;  %v4475_v23 = vpop.f32.mrb[138].mxu1 }
 0xa4f   :  { %v5115_v24 = vpack.c.bf16 %v4317_v12, %v4317_v12  ;;  %v7496_v25 = vpop.f32.mrb[139].mxu0  ;;  %v7520_v27 = vpop.f32.mrb[139].mxu1 }
 0xa51   :  { %v5172_v5 = vsel %vm2083_vm3, %v5115_v24, 0  ;;  %7590 = vmatmul.mubr.msk.bf16.vlgmr.msra.gmra.mrb[164].mxu0 %vm1607_vm2, %v4641_v2 }
 0xa52   :  { %7600 = vmatpush3.bf16.msra.mxu0 %v5172_v5  ;;  %7601 = vmatprep.mubr.msk.bf16.mxu0 %vm7947_vm0, %v7946_v0 }
 0xa53   :  { %7611 = vmatprep.subr.bf16.mxu0 %v7946_v0 }
 0xa54   :  { %v9148_v39 = vpop.f32.mrb[140].mxu0  ;;  %v9150_v28 = vpop.f32.mrb[140].mxu1 }
 0xa55   :  { %v7511_v29 = vpop.f32.mrb[141].mxu0  ;;  %v7535_v62 = vpop.f32.mrb[141].mxu1 }
 0xa56   :  { %v4423_v30 = vpop.f32.mrb[142].mxu0  ;;  %v4579_v1 = vpop.f32.mrb[142].mxu1  ;;  %v7944_v29 = vld [vmem:[%s9435_s1 + $0x28] sm:$0xff] }
 0xa57   :  { %v7512_v11 = vpop.f32.mrb[143].mxu0  ;;  %v7536_v32 = vpop.f32.mrb[143].mxu1 }
 0xa5c   :  { %v9152_v6 = vpop.f32.mrb[144].mxu0 }
 0xa5d   :  { %v7527_v33 = vpop.f32.mrb[145].mxu0 }
 0xa5e   :  { %v4527_v34 = vpop.f32.mrb[146].mxu0 }
 0xa5f   :  { %v7528_v36 = vpop.f32.mrb[147].mxu0  ;;  %v7945_v34 = vld [vmem:[%s9435_s1 + $0x38] sm:$0xff] }
 0xa64   :  { %v9154_v37 = vpop.f32.mrb[148].mxu0 }
 0xa65   :  { %v7543_v38 = vpop.f32.mrb[149].mxu0 }
 0xa66   :  { %v4631_v15 = vpop.f32.mrb[150].mxu0 }
 0xa67   :  { %v7544_v8 = vpop.f32.mrb[151].mxu0 }
 0xafc   :  { %v4690_v40 = vpop.f32.mrb[144].mxu1 }
 0xafd   :  { %v9159_v42 = vadd.f32 %v7938_v41, %v4690_v40  ;;  %v7549_v31 = vpop.f32.mrb[145].mxu1 }
 0xafe   :  { %v4693_v20 = vpop.f32.mrb[146].mxu1 }
 0xaff   :  { %v7550_v43 = vpop.f32.mrb[147].mxu1  ;;  %v5018_v13 = vsel %vm1607_vm2, %v9159_v42, -inf }
 0xb00   :  { %5019 = vmax.xlane.f32.xlu0 %v5018_v13 }
 0xb04   :  { %v4782_v45 = vpop.f32.mrb[148].mxu1 }
 0xb05   :  { %v4783_v35 = vadd.f32 %v7939_v17, %v4782_v45  ;;  %v7561_v46 = vpop.f32.mrb[149].mxu1 }
 0xb06   :  { %v4785_v47 = vpop.f32.mrb[150].mxu1 }
 0xb07   :  { %v7562_v44 = vpop.f32.mrb[151].mxu1  ;;  %v5024_v48 = vsel %vm1607_vm2, %v4783_v35, -inf }
 0xb08   :  { %5025 = vmax.xlane.f32.xlu0 %v5024_v48 }
 0xb0c   :  { %v4736_v14 = vpop.f32.mrb[152].mxu0  ;;  %v4874_v16 = vpop.f32.mrb[152].mxu1 }
 0xb0d   :  { %v4737_v49 = vadd.f32 %v7940_v21, %v4736_v14  ;;  %v4875_v52 = vadd.f32 %v7941_v50, %v4874_v16  ;;  %v7555_v53 = vpop.f32.mrb[153].mxu0  ;;  %v7573_v56 = vpop.f32.mrb[153].mxu1 }
 0xb0e   :  { %v4739_v57 = vpop.f32.mrb[154].mxu0  ;;  %v4877_v58 = vpop.f32.mrb[154].mxu1 }
 0xb0f   :  { %v7556_v55 = vpop.f32.mrb[155].mxu0  ;;  %v7574_v26 = vpop.f32.mrb[155].mxu1  ;;  %v5030_v59 = vsel %vm1607_vm2, %v4875_v52, -inf  ;;  %v5021_v60 = vsel %vm1607_vm2, %v4737_v49, -inf }
 0xb10   :  { %5031 = vmax.xlane.f32.xlu0 %v5030_v59  ;;  %5022 = vmax.xlane.f32.xlu1 %v5021_v60 }
 0xb14   :  { %v4828_v3 = vpop.f32.mrb[156].mxu0  ;;  %v4966_v54 = vpop.f32.mrb[156].mxu1 }
 0xb15   :  { %v4829_v7 = vadd.f32 %v7942_v4, %v4828_v3  ;;  %v4967_v12 = vadd.f32 %v7943_v9, %v4966_v54  ;;  %v7567_v18 = vpop.f32.mrb[157].mxu0  ;;  %v7585_v19 = vpop.f32.mrb[157].mxu1 }
 0xb16   :  { %v4831_v22 = vpop.f32.mrb[158].mxu0  ;;  %v4969_v23 = vpop.f32.mrb[158].mxu1 }
 0xb17   :  { %v7568_v2 = vpop.f32.mrb[159].mxu0  ;;  %v7586_v24 = vpop.f32.mrb[159].mxu1  ;;  %v5036_v25 = vsel %vm1607_vm2, %v4967_v12, -inf  ;;  %v5027_v27 = vsel %vm1607_vm2, %v4829_v7, -inf }
 0xb18   :  { %5037 = vmax.xlane.f32.xlu0 %v5036_v25  ;;  %5028 = vmax.xlane.f32.xlu1 %v5027_v27 }
 0xb1c   :  { %v4920_v5 = vpop.f32.mrb[160].mxu0 }
 0xb1d   :  { %v4921_v62 = vadd.f32 %v7944_v29, %v4920_v5  ;;  %v7579_v30 = vpop.f32.mrb[161].mxu0  ;;  %v6583_v5 = vld [vmem:[%s9459_s25 + $0x2a] ss:$0 sm:$0xff] }
 0xb1e   :  { %v4923_v1 = vpop.f32.mrb[162].mxu0  ;;  %v4369_v29 = vadd.f32 %v6583_v5, %v9124_v51 }
 0xb1f   :  { %v7580_v11 = vpop.f32.mrb[163].mxu0  ;;  %v5033_v32 = vsel %vm1607_vm2, %v4921_v62, -inf }
 0xb20   :  { %5034 = vmax.xlane.f32.xlu1 %v5033_v32  ;;  %v5116_v1 = vpack.c.bf16 %v4369_v29, %v4369_v29  ;;  %v6585_v32 = vld [vmem:[%s9459_s25 + $0x2c] ss:$0 sm:$0xff] }
 0xb24   :  { %v5012_v33 = vpop.f32.mrb[164].mxu0 }
 0xb25   :  { %v5013_v36 = vadd.f32 %v7945_v34, %v5012_v33  ;;  %v7591_v38 = vpop.f32.mrb[165].mxu0  ;;  %v5218_v34 = vsel %vm2083_vm3, %v5116_v1, 0 }
 0xb26   :  { %v5015_v15 = vpop.f32.mrb[166].mxu0 }
 0xb27   :  { %v7592_v8 = vpop.f32.mrb[167].mxu0  ;;  %v5039_v40 = vsel %vm1607_vm2, %v5013_v36, -inf }
 0xb28   :  { %5040 = vmax.xlane.f32.xlu1 %v5039_v40 }
 0xb8d   :  { %v5020_v41 = vpop.xlane.xlu0 %5019 }
 0xb8e   :  { %v5042_v31 = vsub.f32 %v9159_v42, %v5020_v41  ;;  %v6587_v41 = vld [vmem:[%s9459_s25 + $0x2e] ss:$0 sm:$0xff] }
 0xb90   :  { %v5050_v20 = vmul.f32 1.442695, %v5042_v31 }
 0xb92   :  { %7880 = vpow2.f32 %v5050_v20 }
 0xb95   :  { %v5026_v43 = vpop.xlane.xlu0 %5025 }
 0xb96   :  { %v5044_v13 = vsub.f32 %v4783_v35, %v5026_v43  ;;  %v4577_v43 = vadd.f32 %v6587_v41, %v9150_v28 }
 0xb98   :  { %v5054_v45 = vmul.f32 1.442695, %v5044_v13 }
 0xb9a   :  { %7882 = vpow2.f32 %v5054_v45 }
 0xb9c   :  { %v7881_v17 = vpop.eup %7880 }
 0xb9d   :  { %v5032_v46 = vpop.xlane.xlu0 %5031  ;;  %v5023_v47 = vpop.xlane.xlu1 %5022  ;;  %v5066_v44 = vsel %vm1607_vm2, %v7881_v17, 0.0 }
 0xb9e   :  { %v5046_v48 = vsub.f32 %v4875_v52, %v5032_v46  ;;  %v5043_v14 = vsub.f32 %v4737_v49, %v5023_v47  ;;  %5067 = vadd.xlane.f32.xlu0 %v5066_v44  ;;  %v5120_v44 = vpack.c.bf16 %v4577_v43, %v4577_v43 }
 0xba0   :  { %v5058_v16 = vmul.f32 1.442695, %v5046_v48  ;;  %v5052_v21 = vmul.f32 1.442695, %v5043_v14 }
 0xba2   :  { %7884 = vpow2.f32 %v5058_v16 }
 0xba3   :  { %7886 = vpow2.f32 %v5052_v21 }
 0xba4   :  { %v7883_v50 = vpop.eup %7882 }
 0xba5   :  { %v5038_v42 = vpop.xlane.xlu0 %5037  ;;  %v5029_v53 = vpop.xlane.xlu1 %5028  ;;  %v5072_v56 = vsel %vm1607_vm2, %v7883_v50, 0.0 }
 0xba6   :  { %v5048_v35 = vsub.f32 %v4967_v12, %v5038_v42  ;;  %v5045_v57 = vsub.f32 %v4829_v7, %v5029_v53  ;;  %5073 = vadd.xlane.f32.xlu0 %v5072_v56 }
 0xba8   :  { %v5062_v58 = vmul.f32 1.442695, %v5048_v35  ;;  %v5056_v55 = vmul.f32 1.442695, %v5045_v57 }
 0xbaa   :  { %7888 = vpow2.f32 %v5062_v58 }
 0xbab   :  { %7890 = vpow2.f32 %v5056_v55 }
 0xbac   :  { %v9194_v26 = vpop.eup %7884 }
 0xbad   :  { %v9196_v49 = vpop.eup %7886  ;;  %v5035_v52 = vpop.xlane.xlu1 %5034  ;;  %v5078_v59 = vsel %vm1607_vm2, %v9194_v26, 0.0 }
 0xbae   :  { %v5047_v60 = vsub.f32 %v4921_v62, %v5035_v52  ;;  %5079 = vadd.xlane.f32.xlu0 %v5078_v59  ;;  %v5069_v3 = vsel %vm1607_vm2, %v9196_v49, 0.0 }
 0xbaf   :  { %5070 = vadd.xlane.f32.xlu1 %v5069_v3 }
 0xbb0   :  { %v5060_v54 = vmul.f32 1.442695, %v5047_v60 }
 0xbb2   :  { %7892 = vpow2.f32 %v5060_v54 }
 0xbb4   :  { %v9202_v4 = vpop.eup %7888 }
 0xbb5   :  { %v9204_v7 = vpop.eup %7890  ;;  %v5041_v9 = vpop.xlane.xlu1 %5040  ;;  %v5084_v12 = vsel %vm1607_vm2, %v9202_v4, 0.0 }
 0xbb6   :  { %v5049_v18 = vsub.f32 %v5013_v36, %v5041_v9  ;;  %5085 = vadd.xlane.f32.xlu0 %v5084_v12  ;;  %v5075_v19 = vsel %vm1607_vm2, %v9204_v7, 0.0  ;;  %v4473_v36 = vadd.f32 %v6585_v32, %v9141_v61  ;;  %v6584_v61 = vld [vmem:[%s9459_s25 + $0x2b] ss:$0 sm:$0xff] }
 0xbb7   :  { %5076 = vadd.xlane.f32.xlu1 %v5075_v19  ;;  %v4421_v45 = vadd.f32 %v6584_v61, %v9148_v39  ;;  %v6586_v39 = vld [vmem:[%s9459_s25 + $0x2d] ss:$0 sm:$0xff] }
 0xbb8   :  { %v5064_v22 = vmul.f32 1.442695, %v5049_v18  ;;  %v5118_v8 = vpack.c.bf16 %v4473_v36, %v4473_v36  ;;  %v4525_v56 = vadd.f32 %v6586_v39, %v9152_v6 }
 0xbb9   :  { %v5117_v28 = vpack.c.bf16 %v4421_v45, %v4421_v45 }
 0xbba   :  { %7894 = vpow2.f32 %v5064_v22  ;;  %v5310_v20 = vsel %vm2083_vm3, %v5118_v8, 0  ;;  %v5119_v6 = vpack.c.bf16 %v4525_v56, %v4525_v56  ;;  %v6677_v22 = vld [vmem:[%s9436_s4 + $0x20] sm:$0xf]  ;;  %v6680_v8 = vld [vmem:[%s9436_s4 + $0x2c] sm:$0xf] }
 0xbbb   :  { %v5264_v53 = vsel %vm2083_vm3, %v5117_v28, 0 }
 0xbbc   :  { %v9210_v23 = vpop.eup %7892  ;;  %v5356_v60 = vsel %vm2083_vm3, %v5119_v6, 0 }
 0xbbd   :  { %v5081_v2 = vsel %vm1607_vm2, %v9210_v23, 0.0 }
 0xbbe   :  { %5082 = vadd.xlane.f32.xlu1 %v5081_v2  ;;  %v6678_v2 = vld [vmem:[%s9436_s4 + $0x24] sm:$0xf] }
 0xbc4   :  { %v9214_v24 = vpop.eup %7894 }
 0xbc5   :  { %v5087_v25 = vsel %vm1607_vm2, %v9214_v24, 0.0 }
 0xbc6   :  { %5088 = vadd.xlane.f32.xlu1 %v5087_v25  ;;  %v6679_v25 = vld [vmem:[%s9436_s4 + $0x28] sm:$0xf] }
 0xc2b   :  { %v5068_v27 = vpop.xlane.xlu0 %5067 }
 0xc2c   :  { %7896 = vrcp.f32 %v5068_v27 }
 0xc33   :  { %v5074_v62 = vpop.xlane.xlu0 %5073 }
 0xc34   :  { %7898 = vrcp.f32 %v5074_v62  ;;  %v5603_v62 = vsel %vm2083_vm3, %v6679_v25, 0 }
 0xc36   :  { %v7897_v30 = vpop.eup %7896 }
 0xc37   :  { %v5098_v11 = vmul.f32 %v7897_v30, %v7881_v17 }
 0xc39   :  { %v5106_v33 = vpack.c.bf16 %v5098_v11, %v5098_v11  ;;  %v6681_v11 = vld [vmem:[%s9436_s4 + $0x30] sm:$0xf] }
 0xc3a   :  { %v5695_v36 = vsel %vm2083_vm3, %v6681_v11, 0 }
 0xc3b   :  { %7596 = vmatmul.mubr.msk.bf16.vlgmr.msra.gmra.mrb[160].mxu1 %vm1607_vm2, %v5106_v33  ;;  %v5080_v38 = vpop.xlane.xlu0 %5079 }
 0xc3c   :  { %7606 = vmatpush3.bf16.msra.mxu1 %v5218_v34  ;;  %7900 = vrcp.f32 %v5080_v38  ;;  %v5071_v51 = vpop.xlane.xlu1 %5070  ;;  %7607 = vmatprep.mubr.msk.bf16.mxu1 %vm7947_vm0, %v7946_v0 }
 0xc3d   :  { %7902 = vrcp.f32 %v5071_v51  ;;  %7617 = vmatprep.subr.bf16.mxu1 %v7946_v0 }
 0xc3e   :  { %v7899_v15 = vpop.eup %7898 }
 0xc3f   :  { %v5100_v40 = vmul.f32 %v7899_v15, %v7883_v50  ;;  %v5402_v50 = vsel %vm2083_vm3, %v5120_v44, 0  ;;  %v6683_v15 = vld [vmem:[%s9436_s4 + $0x38] sm:$0xf] }
 0xc41   :  { %v5108_v31 = vpack.c.bf16 %v5100_v40, %v5100_v40 }
 0xc43   :  { %7608 = vmatmul.mubr.msk.bf16.vlgmr.msra.gmra.mrb[164].mxu1 %vm1607_vm2, %v5108_v31  ;;  %v5086_v13 = vpop.xlane.xlu0 %5085 }
 0xc44   :  { %7618 = vmatpush3.bf16.msra.mxu1 %v5310_v20  ;;  %7904 = vrcp.f32 %v5086_v13  ;;  %v5077_v17 = vpop.xlane.xlu1 %5076  ;;  %7619 = vmatprep.mubr.msk.bf16.mxu1 %vm7947_vm0, %v7946_v0  ;;  %v5787_v20 = vsel %vm2083_vm3, %v6683_v15, 0 }
 0xc45   :  { %7906 = vrcp.f32 %v5077_v17  ;;  %7629 = vmatprep.subr.bf16.mxu1 %v7946_v0  ;;  %v5649_v17 = vsel %vm2083_vm3, %v6680_v8, 0 }
 0xc46   :  { %v7901_v46 = vpop.eup %7900 }
 0xc47   :  { %v7903_v47 = vpop.eup %7902  ;;  %v5102_v48 = vmul.f32 %v7901_v46, %v9194_v26  ;;  %v6588_v26 = vld [vmem:[%s9459_s25 + $0x2f] ss:$0 sm:$0xff] }
 0xc48   :  { %v5099_v14 = vmul.f32 %v7903_v47, %v9196_v49  ;;  %v4629_v3 = vadd.f32 %v6588_v26, %v9154_v37 }
 0xc49   :  { %v5110_v16 = vpack.c.bf16 %v5102_v48, %v5102_v48  ;;  %v6682_v48 = vld [vmem:[%s9436_s4 + $0x34] sm:$0xf] }
 0xc4a   :  { %v5107_v21 = vpack.c.bf16 %v5099_v14, %v5099_v14 }
 0xc4b   :  { %7620 = vmatmul.mubr.msk.bf16.vlgmr.msra.gmra.mrb[168].mxu1 %vm1607_vm2, %v5110_v16  ;;  %v5083_v42 = vpop.xlane.xlu1 %5082 }
 0xc4c   :  { %7602 = vmatmul.mubr.msk.bf16.vlgmr.msra.gmra.mrb[168].mxu0 %vm1607_vm2, %v5107_v21  ;;  %7630 = vmatpush3.bf16.msra.mxu1 %v5402_v50  ;;  %7908 = vrcp.f32 %v5083_v42 }
 0xc4d   :  { %7612 = vmatpush3.bf16.msra.mxu0 %v5264_v53  ;;  %7613 = vmatprep.mubr.msk.bf16.mxu0 %vm7947_vm0, %v7946_v0  ;;  %v5741_v53 = vsel %vm2083_vm3, %v6682_v48, 0 }
 0xc4e   :  { %v7905_v35 = vpop.eup %7904  ;;  %7623 = vmatprep.subr.bf16.mxu0 %v7946_v0  ;;  %7631 = vmatprep.mubr.msk.bf16.mxu1 %vm7947_vm0, %v7946_v0 }
 0xc4f   :  { %v7907_v57 = vpop.eup %7906  ;;  %v5104_v58 = vmul.f32 %v7905_v35, %v9202_v4  ;;  %7641 = vmatprep.subr.bf16.mxu1 %v7946_v0 }
 0xc50   :  { %v5101_v55 = vmul.f32 %v7907_v57, %v9204_v7  ;;  %v5121_v7 = vpack.c.bf16 %v4629_v3, %v4629_v3 }
 0xc51   :  { %v5112_v49 = vpack.c.bf16 %v5104_v58, %v5104_v58  ;;  %v6684_v58 = vld [vmem:[%s9436_s4 + $0x3c] sm:$0xf] }
 0xc52   :  { %v5109_v52 = vpack.c.bf16 %v5101_v55, %v5101_v55  ;;  %v5448_v12 = vsel %vm2083_vm3, %v5121_v7, 0 }
 0xc53   :  { %7632 = vmatmul.mubr.msk.bf16.vlgmr.msra.gmra.mrb[172].mxu1 %vm1607_vm2, %v5112_v49  ;;  %v5089_v59 = vpop.xlane.xlu1 %5088  ;;  %v5833_v49 = vsel %vm2083_vm3, %v6684_v58, 0 }
 0xc54   :  { %7614 = vmatmul.mubr.msk.bf16.vlgmr.msra.gmra.mrb[172].mxu0 %vm1607_vm2, %v5109_v52  ;;  %7910 = vrcp.f32 %v5089_v59  ;;  %7643 = vmatprep.mubr.msk.bf16.mxu1 %vm7947_vm0, %v7946_v0 }
 0xc55   :  { %7624 = vmatpush3.bf16.msra.mxu0 %v5356_v60  ;;  %7625 = vmatprep.mubr.msk.bf16.mxu0 %vm7947_vm0, %v7946_v0 }
 0xc56   :  { %v7909_v54 = vpop.eup %7908  ;;  %7635 = vmatprep.subr.bf16.mxu0 %v7946_v0 }
 0xc57   :  { %v5103_v4 = vmul.f32 %v7909_v54, %v9210_v23  ;;  %v5511_v23 = vsel %vm2083_vm3, %v6677_v22, 0 }
 0xc58   :  { %7642 = vmatpush3.bf16.msra.mxu1 %v5511_v23 }
 0xc59   :  { %v5111_v9 = vpack.c.bf16 %v5103_v4, %v5103_v4  ;;  %7653 = vmatprep.subr.bf16.mxu1 %v7946_v0 }
 0xc5c   :  { %7626 = vmatmul.mubr.msk.bf16.vlgmr.msra.gmra.mrb[176].mxu0 %vm1607_vm2, %v5111_v9 }
 0xc5d   :  { %7636 = vmatpush3.bf16.msra.mxu0 %v5448_v12  ;;  %7637 = vmatprep.mubr.msk.bf16.mxu0 %vm7947_vm0, %v7946_v0 }
 0xc5e   :  { %v7911_v37 = vpop.eup %7910  ;;  %7647 = vmatprep.subr.bf16.mxu0 %v7946_v0 }
 0xc5f   :  { %v5105_v18 = vmul.f32 %v7911_v37, %v9214_v24  ;;  %v5557_v24 = vsel %vm2083_vm3, %v6678_v2, 0 }
 0xc61   :  { %v5113_v19 = vpack.c.bf16 %v5105_v18, %v5105_v18 }
 0xc64   :  { %7638 = vmatmul.mubr.msk.bf16.vlgmr.msra.gmra.mrb[180].mxu0 %vm1607_vm2, %v5113_v19 }
 0xc65   :  { %7649 = vmatprep.mubr.msk.bf16.mxu0 %vm7947_vm0, %v7946_v0  ;;  %7648 = vmatpush3.bf16.msra.mxu0 %v5557_v24 }
 0xc66   :  { %7659 = vmatprep.subr.bf16.mxu0 %v7946_v0 }
 0xd0e   :  { %v5162_v27 = vpop.f32.mrb[160].mxu1 }
 0xd0f   :  { %v5490_v5 = vpack.c.bf16 %v5162_v27, %v5162_v27  ;;  %v7597_v29 = vpop.f32.mrb[161].mxu1 }
 0xd10   :  { %v5165_v30 = vpop.f32.mrb[162].mxu1 }
 0xd11   :  { %v7598_v1 = vpop.f32.mrb[163].mxu1  ;;  %7644 = vmatmul.mubr.msk.bf16.vlgmr.msra.gmra.mrb[176].mxu1 %vm1607_vm2, %v5490_v5 }
 0xd12   :  { %7654 = vmatpush3.bf16.msra.mxu1 %v5603_v62  ;;  %7655 = vmatprep.mubr.msk.bf16.mxu1 %vm7947_vm0, %v7946_v0 }
 0xd13   :  { %7665 = vmatprep.subr.bf16.mxu1 %v7946_v0 }
 0xd16   :  { %v5254_v32 = vpop.f32.mrb[164].mxu1 }
 0xd17   :  { %v5492_v33 = vpack.c.bf16 %v5254_v32, %v5254_v32  ;;  %v7609_v34 = vpop.f32.mrb[165].mxu1 }
 0xd18   :  { %v5257_v38 = vpop.f32.mrb[166].mxu1 }
 0xd19   :  { %v7610_v51 = vpop.f32.mrb[167].mxu1  ;;  %7656 = vmatmul.mubr.msk.bf16.vlgmr.msra.gmra.mrb[180].mxu1 %vm1607_vm2, %v5492_v33 }
 0xd1a   :  { %7666 = vmatpush3.bf16.msra.mxu1 %v5695_v36  ;;  %7667 = vmatprep.mubr.msk.bf16.mxu1 %vm7947_vm0, %v7946_v0  ;;  %v6694_v36 = vld [vmem:[%s9437_s5 + $0x1] ss:$0 sm:$0xff] }
 0xd1b   :  { %7677 = vmatprep.subr.bf16.mxu1 %v7946_v0 }
 0xd1e   :  { %v5346_v40 = vpop.f32.mrb[168].mxu1 }
 0xd1f   :  { %v5208_v41 = vpop.f32.mrb[168].mxu0  ;;  %v5494_v61 = vpack.c.bf16 %v5346_v40, %v5346_v40  ;;  %v7621_v31 = vpop.f32.mrb[169].mxu1 }
 0xd20   :  { %v5491_v43 = vpack.c.bf16 %v5208_v41, %v5208_v41  ;;  %v7603_v13 = vpop.f32.mrb[169].mxu0  ;;  %v5349_v45 = vpop.f32.mrb[170].mxu1 }
 0xd21   :  { %v5211_v46 = vpop.f32.mrb[170].mxu0  ;;  %v7622_v47 = vpop.f32.mrb[171].mxu1  ;;  %7668 = vmatmul.mubr.msk.bf16.vlgmr.msra.gmra.mrb[184].mxu1 %vm1607_vm2, %v5494_v61 }
 0xd22   :  { %v7604_v44 = vpop.f32.mrb[171].mxu0  ;;  %7650 = vmatmul.mubr.msk.bf16.vlgmr.msra.gmra.mrb[184].mxu0 %vm1607_vm2, %v5491_v43  ;;  %7678 = vmatpush3.bf16.msra.mxu1 %v5787_v20 }
 0xd23   :  { %7660 = vmatpush3.bf16.msra.mxu0 %v5649_v17  ;;  %7661 = vmatprep.mubr.msk.bf16.mxu0 %vm7947_vm0, %v7946_v0 }
 0xd24   :  { %7679 = vmatprep.mubr.msk.bf16.mxu1 %vm7947_vm0, %v7946_v0  ;;  %7671 = vmatprep.subr.bf16.mxu0 %v7946_v0 }
 0xd25   :  { %7689 = vmatprep.subr.bf16.mxu1 %v7946_v0 }
 0xd26   :  { %v5438_v28 = vpop.f32.mrb[172].mxu1 }
 0xd27   :  { %v5300_v14 = vpop.f32.mrb[172].mxu0  ;;  %v5496_v39 = vpack.c.bf16 %v5438_v28, %v5438_v28  ;;  %v7633_v16 = vpop.f32.mrb[173].mxu1 }
 0xd28   :  { %v5493_v21 = vpack.c.bf16 %v5300_v14, %v5300_v14  ;;  %v7615_v50 = vpop.f32.mrb[173].mxu0  ;;  %v5441_v42 = vpop.f32.mrb[174].mxu1 }
 0xd29   :  { %v5303_v56 = vpop.f32.mrb[174].mxu0  ;;  %v7634_v35 = vpop.f32.mrb[175].mxu1  ;;  %7680 = vmatmul.mubr.msk.bf16.vlgmr.msra.gmra.mrb[188].mxu1 %vm1607_vm2, %v5496_v39 }
 0xd2a   :  { %v7616_v57 = vpop.f32.mrb[175].mxu0  ;;  %7662 = vmatmul.mubr.msk.bf16.vlgmr.msra.gmra.mrb[188].mxu0 %vm1607_vm2, %v5493_v21  ;;  %7693 = vmatprep.mubr.msk.bf16.mxu1 %vm7947_vm0, %v7946_v0 }
 0xd2b   :  { %7672 = vmatpush3.bf16.msra.mxu0 %v5741_v53  ;;  %7673 = vmatprep.mubr.msk.bf16.mxu0 %vm7947_vm0, %v7946_v0 }
 0xd2c   :  { %7683 = vmatprep.subr.bf16.mxu0 %v7946_v0 }
 0xd2f   :  { %v5392_v6 = vpop.f32.mrb[176].mxu0 }
 0xd30   :  { %v5495_v55 = vpack.c.bf16 %v5392_v6, %v5392_v6  ;;  %v7627_v26 = vpop.f32.mrb[177].mxu0 }
 0xd31   :  { %v5395_v52 = vpop.f32.mrb[178].mxu0 }
 0xd32   :  { %v7628_v59 = vpop.f32.mrb[179].mxu0  ;;  %7674 = vmatmul.mubr.msk.bf16.vlgmr.msra.gmra.mrb[192].mxu0 %vm1607_vm2, %v5495_v55  ;;  %v7828_v52 = vld [vmem:[%s9438_s8 + $0x18] sm:$0xff]  }
 0xd33   :  { %7684 = vmatpush3.bf16.msra.mxu0 %v5833_v49  ;;  %7685 = vmatprep.mubr.msk.bf16.mxu0 %vm7947_vm0, %v7946_v0 }
 0xd34   :  { %7697 = vmatprep.subr.bf16.mxu0 %v7946_v0 }
 0xd37   :  { %v5484_v60 = vpop.f32.mrb[180].mxu0 }
 0xd38   :  { %v5497_v3 = vpack.c.bf16 %v5484_v60, %v5484_v60  ;;  %v7639_v54 = vpop.f32.mrb[181].mxu0 }
 0xd39   :  { %v5487_v4 = vpop.f32.mrb[182].mxu0 }
 0xd3a   :  { %v7640_v7 = vpop.f32.mrb[183].mxu0  ;;  %7686 = vmatmul.mubr.msk.bf16.vlgmr.msra.gmra.mrb[196].mxu0 %vm1607_vm2, %v5497_v3 }
 0xd3b   :  { %7705 = vmatprep.mubr.msk.bf16.mxu0 %vm7947_vm0, %v7946_v0 }
 0xde4   :  { %v5547_v9 = vpop.f32.mrb[176].mxu1 }
 0xde5   :  { %v7645_v12 = vpop.f32.mrb[177].mxu1 }
 0xde6   :  { %v5550_v37 = vpop.f32.mrb[178].mxu1 }
 0xde7   :  { %v7646_v18 = vpop.f32.mrb[179].mxu1  ;;  %v6697_v37 = vld [vmem:[%s9439_s6 + $0x1] ss:$0 sm:$0xff] }
 0xdec   :  { %v5639_v19 = vpop.f32.mrb[180].mxu1 }
 0xded   :  { %v7657_v22 = vpop.f32.mrb[181].mxu1 }
 0xdee   :  { %v5642_v23 = vpop.f32.mrb[182].mxu1 }
 0xdef   :  { %v7658_v2 = vpop.f32.mrb[183].mxu1  ;;  %v6698_v23 = vld [vmem:[%s9440_s7 + $0x1] ss:$0 sm:$0xff] }
 0xdf4   :  { %v5731_v24 = vpop.f32.mrb[184].mxu1 }
 0xdf5   :  { %v5593_v25 = vpop.f32.mrb[184].mxu0  ;;  %v7669_v27 = vpop.f32.mrb[185].mxu1 }
 0xdf6   :  { %v5875_v5 = vadd.f32 %v5593_v25, %v5547_v9  ;;  %v7651_v29 = vpop.f32.mrb[185].mxu0  ;;  %v5734_v62 = vpop.f32.mrb[186].mxu1 }
 0xdf7   :  { %v5596_v30 = vpop.f32.mrb[186].mxu0  ;;  %v7670_v1 = vpop.f32.mrb[187].mxu1  ;;  %v7830_v29 = vld [vmem:[%s9441_s10 + $0x28] sm:$0xff]   ;;  %v7831_v62 = vld [vmem:[%s9441_s10 + $0x30] sm:$0xff]  }
 0xdf8   :  { %v7652_v11 = vpop.f32.mrb[187].mxu0  ;;  %v5877_v32 = vadd.f32 %v5875_v5, %v5639_v19  ;;  %v7829_v5 = vld [vmem:[%s9441_s10 + $0x20] sm:$0xff]   ;;  %v7832_v30 = vld [vmem:[%s9441_s10 + $0x38] sm:$0xff]  }
 0xdf9   :  { %7698 = vmatpush3.bf16.msra.mxu0 %v7829_v5  ;;  %v6704_v1 = vld [vmem:[%s9442_s9 + $0x1] ss:$0 sm:$0xff] }
 0xdfa   :  { %7699 = vmatprep.subr.bf16.mxu0 %v7946_v0 }
 0xdfc   :  { %v5823_v33 = vpop.f32.mrb[188].mxu1 }
 0xdfd   :  { %v5685_v34 = vpop.f32.mrb[188].mxu0  ;;  %v7681_v38 = vpop.f32.mrb[189].mxu1  ;;  %7700 = vmatpush3.bf16.msra.mxu0 %v7830_v29 }
 0xdfe   :  { %v5879_v51 = vadd.f32 %v5877_v32, %v5685_v34  ;;  %v7663_v15 = vpop.f32.mrb[189].mxu0  ;;  %v5826_v8 = vpop.f32.mrb[190].mxu1  ;;  %7701 = vmatprep.subr.bf16.mxu0 %v7946_v0 }
 0xdff   :  { %v5688_v40 = vpop.f32.mrb[190].mxu0  ;;  %v7682_v41 = vpop.f32.mrb[191].mxu1 }
 0xe00   :  { %v5889_v61 = vadd.f32 %v6694_v36, %v5879_v51  ;;  %v7664_v31 = vpop.f32.mrb[191].mxu0 }
 0xe01   :  { %7702 = vmatpush3.bf16.msra.mxu0 %v7831_v62  ;;  %v6726_v62 = vld [vmem:[%s9445_s13 + $0x1] ss:$0 sm:$0xff] }
 0xe02   :  { %v5891_v20 = vadd.f32 %v5889_v61, %v8744_v10  ;;  %7703 = vmatprep.subr.bf16.mxu0 %v7946_v0 }
 0xe04   :  { %v5897_v43 = vsel %vm348_vm1, %v5891_v20, 0.0 }
 0xe05   :  { %5898 = vadd.xlane.f32.xlu0 %v5897_v43  ;;  %v5777_v13 = vpop.f32.mrb[192].mxu0  ;;  %7704 = vmatpush3.bf16.msra.mxu0 %v7832_v30 }
 0xe06   :  { %v5876_v45 = vadd.f32 %v5777_v13, %v5731_v24  ;;  %v7675_v17 = vpop.f32.mrb[193].mxu0 }
 0xe07   :  { %v5780_v46 = vpop.f32.mrb[194].mxu0 }
 0xe08   :  { %v7676_v47 = vpop.f32.mrb[195].mxu0  ;;  %v5878_v44 = vadd.f32 %v5876_v45, %v5823_v33 }
 0xe0d   :  { %v5869_v48 = vpop.f32.mrb[196].mxu0 }
 0xe0e   :  { %v5880_v28 = vadd.f32 %v5878_v44, %v5869_v48  ;;  %v7687_v14 = vpop.f32.mrb[197].mxu0 }
 0xe0f   :  { %v5872_v39 = vpop.f32.mrb[198].mxu0 }
 0xe10   :  { %v5890_v16 = vadd.f32 %v6694_v36, %v5880_v28  ;;  %v7688_v21 = vpop.f32.mrb[199].mxu0 }
 0xe12   :  { %v5892_v50 = vadd.f32 %v5890_v16, %v8766_v63  ;;  %v7827_v63 = vld [vmem:[%s9438_s8 + $0x10] sm:$0xff]   ;;  %v6717_v16 = vld [vmem:[%s9443_s11 + $0x1] ss:$0 sm:$0xff] }
 0xe13   :  { %7690 = vmatpush3.bf16.msra.mxu1 %v7827_v63 }
 0xe14   :  { %v5900_v42 = vsel %vm348_vm1, %v5892_v50, 0.0  ;;  %7691 = vmatprep.subr.bf16.mxu1 %v7946_v0 }
 0xe15   :  { %5901 = vadd.xlane.f32.xlu1 %v5900_v42 }
 0xe17   :  { %7692 = vmatpush3.bf16.msra.mxu1 %v7828_v52 }
 0xe18   :  { %7709 = vmatprep.subr.bf16.mxu1 %v7946_v0 }
 0xe92   :  { %v5899_v10 = vpop.xlane.xlu0 %5898 }
 0xe93   :  { %v5903_v53 = vmul.f32 0.03125, %v5899_v10 }
 0xe95   :  { %v5905_v56 = vsub.f32 %v5891_v20, %v5903_v53 }
 0xe97   :  { %v5907_v35 = vmul.f32 %v5905_v56, %v5905_v56 }
 0xe99   :  { %v5909_v57 = vsel %vm348_vm1, %v5907_v35, 0.0 }
 0xe9a   :  { %5910 = vadd.xlane.f32.xlu0 %v5909_v57 }
 0xea2   :  { %v5902_v58 = vpop.xlane.xlu1 %5901 }
 0xea3   :  { %v5904_v6 = vmul.f32 0.03125, %v5902_v58 }
 0xea5   :  { %v5906_v55 = vsub.f32 %v5892_v50, %v5904_v6 }
 0xea7   :  { %v5908_v26 = vmul.f32 %v5906_v55, %v5906_v55 }
 0xea9   :  { %v5912_v49 = vsel %vm348_vm1, %v5908_v26, 0.0 }
 0xeaa   :  { %5913 = vadd.xlane.f32.xlu1 %v5912_v49 }
 0xf27   :  { %v5911_v59 = vpop.xlane.xlu0 %5910 }
 0xf28   :  { %v5915_v60 = vmul.f32 0.03125, %v5911_v59 }
 0xf2a   :  { %v5917_v3 = vadd.f32 1e-12, %v5915_v60 }
 0xf2c   :  { %7912 = vrsqrt.f32 %v5917_v3 }
 0xf36   :  { %v7913_v9 = vpop.eup %7912 }
 0xf37   :  { %v5914_v54 = vpop.xlane.xlu1 %5913  ;;  %v5921_v12 = vmul.f32 %v7913_v9, %v5905_v56  ;;  %v7834_v9 = vld [vmem:[%s9446_s14 + $0x8] sm:$0xff]  }
 0xf38   :  { %v5916_v4 = vmul.f32 0.03125, %v5914_v54 }
 0xf39   :  { %v5929_v19 = vmul.f32 %v6697_v37, %v5921_v12 }
 0xf3a   :  { %v5918_v7 = vadd.f32 1e-12, %v5916_v4 }
 0xf3b   :  { %v5937_v24 = vadd.f32 %v6698_v23, %v5929_v19 }
 0xf3c   :  { %7914 = vrsqrt.f32 %v5918_v7  ;;  %v7833_v7 = vld [vmem:[%s9446_s14] sm:$0xff]  }
 0xf46   :  { %v7915_v18 = vpop.eup %7914 }
 0xf47   :  { %v5922_v22 = vmul.f32 %v7915_v18, %v5906_v55 }
 0xf49   :  { %v5930_v2 = vmul.f32 %v6697_v37, %v5922_v22 }
 0xf4b   :  { %v5938_v25 = vadd.f32 %v6698_v23, %v5930_v2 }
 0xf4d   :  { %v5939_v27 = vpack.c.bf16 %v5938_v25, %v5937_v24 }
 0xf4f   :  { %7694 = vmatmul.mubr.msk.bf16.vlgmr.msra.gmra.mrb[192].mxu1 %vm348_vm1, %v5939_v27 }
 0xf50   :  { %7713 = vmatprep.mubr.msk.bf16.mxu1 %vm7947_vm0, %v7946_v0  ;;  %7710 = vmatpush3.bf16.msra.mxu1 %v7833_v7 }
 0xf51   :  { %7711 = vmatprep.subr.bf16.mxu1 %v7946_v0 }
 0xf54   :  { %7712 = vmatpush3.bf16.msra.mxu1 %v7834_v9 }
 0xf55   :  { %7717 = vmatprep.subr.bf16.mxu1 %v7946_v0 }
0x1022   :  { %v6002_v11 = vpop.f32.mrb[192].mxu1 }
0x1023   :  { %v6003_v32 = vadd.f32 %v6704_v1, %v6002_v11  ;;  %v7695_v33 = vpop.f32.mrb[193].mxu1 }
0x1024   :  { %v6005_v34 = vpop.f32.mrb[194].mxu1  ;;  %v7835_v33 = vld [vmem:[%s9447_s16] sm:$0xff]  }
0x1025   :  { %v6009_v36 = vmul.f32 %v6003_v32, %v6003_v32  ;;  %v6006_v38 = vadd.f32 %v6704_v1, %v6005_v34  ;;  %v7696_v51 = vpop.f32.mrb[195].mxu1  ;;  %v6727_v34 = vld [vmem:[%s9448_s15] ss:$0 sm:$0xff] }
0x1027   :  { %v6011_v15 = vmul.f32 %v6009_v36, %v6003_v32  ;;  %v6010_v8 = vmul.f32 %v6006_v38, %v6006_v38 }
0x1029   :  { %v6013_v40 = vmul.f32 0.044715, %v6011_v15  ;;  %v6012_v41 = vmul.f32 %v6010_v8, %v6006_v38 }
0x102b   :  { %v6015_v61 = vadd.f32 %v6013_v40, %v6003_v32  ;;  %v6014_v31 = vmul.f32 0.044715, %v6012_v41 }
0x102d   :  { %v6017_v20 = vmul.f32 0.7978846, %v6015_v61  ;;  %v6016_v43 = vadd.f32 %v6014_v31, %v6006_v38  ;;  %v6731_v31 = vld [vmem:[%s9449_s17] ss:$0 sm:$0xff] }
0x102f   :  { %7916 = vtanh.f32 %v6017_v20  ;;  %v6018_v13 = vmul.f32 0.7978846, %v6016_v43 }
0x1031   :  { %7918 = vtanh.f32 %v6018_v13 }
0x1039   :  { %v7917_v45 = vpop.eup %7916 }
0x103a   :  { %v6021_v17 = vadd.f32 1.0, %v7917_v45 }
0x103b   :  { %v7919_v46 = vpop.eup %7918 }
0x103c   :  { %v6023_v47 = vmul.f32 0.5, %v6021_v17  ;;  %v6022_v44 = vadd.f32 1.0, %v7919_v46 }
0x103e   :  { %v6024_v48 = vmul.f32 0.5, %v6022_v44  ;;  %v6025_v28 = vmul.f32 %v6023_v47, %v6003_v32 }
0x1040   :  { %v6026_v14 = vmul.f32 %v6024_v48, %v6006_v38 }
0x1042   :  { %v6027_v39 = vpack.c.bf16 %v6026_v14, %v6025_v28 }
0x1044   :  { %7706 = vmatmul.mubr.msk.bf16.vlgmr.msra.gmra.mrb[200].mxu0 %vm3021_vm4, %v6027_v39 }
0x1117   :  { %v6106_v21 = vpop.f32.mrb[200].mxu0 }
0x1118   :  { %v6107_v50 = vadd.f32 %v6717_v16, %v6106_v21  ;;  %v7707_v42 = vpop.f32.mrb[201].mxu0 }
0x1119   :  { %v6109_v10 = vpop.f32.mrb[202].mxu0 }
0x111a   :  { %v6110_v53 = vadd.f32 %v6717_v16, %v6109_v10  ;;  %v7708_v56 = vpop.f32.mrb[203].mxu0  ;;  %v6113_v35 = vadd.f32 %v6107_v50, %v5937_v24  ;;  %v6725_v24 = vld [vmem:[%s9444_s12 + $0x1] ss:$0 sm:$0xff] }
0x111c   :  { %v6119_v57 = vsel %vm348_vm1, %v6113_v35, 0.0  ;;  %v6114_v58 = vadd.f32 %v6110_v53, %v5938_v25 }
0x111d   :  { %6120 = vadd.xlane.f32.xlu0 %v6119_v57 }
0x111e   :  { %v6122_v6 = vsel %vm348_vm1, %v6114_v58, 0.0 }
0x111f   :  { %6123 = vadd.xlane.f32.xlu1 %v6122_v6 }
0x11aa   :  { %v6121_v55 = vpop.xlane.xlu0 %6120 }
0x11ab   :  { %v6125_v26 = vmul.f32 0.03125, %v6121_v55 }
0x11ac   :  { %v6124_v49 = vpop.xlane.xlu1 %6123 }
0x11ad   :  { %v6127_v63 = vsub.f32 %v6113_v35, %v6125_v26  ;;  %v6126_v52 = vmul.f32 0.03125, %v6124_v49 }
0x11af   :  { %v6128_v59 = vsub.f32 %v6114_v58, %v6126_v52  ;;  %v6129_v60 = vmul.f32 %v6127_v63, %v6127_v63 }
0x11b1   :  { %v6131_v3 = vsel %vm348_vm1, %v6129_v60, 0.0  ;;  %v6130_v54 = vmul.f32 %v6128_v59, %v6128_v59 }
0x11b2   :  { %6132 = vadd.xlane.f32.xlu0 %v6131_v3 }
0x11b3   :  { %v6134_v4 = vsel %vm348_vm1, %v6130_v54, 0.0 }
0x11b4   :  { %6135 = vadd.xlane.f32.xlu1 %v6134_v4 }
0x123f   :  { %v6133_v12 = vpop.xlane.xlu0 %6132 }
0x1240   :  { %v6137_v37 = vmul.f32 0.03125, %v6133_v12 }
0x1241   :  { %v6136_v18 = vpop.xlane.xlu1 %6135 }
0x1242   :  { %v6139_v19 = vadd.f32 1e-12, %v6137_v37  ;;  %v6138_v22 = vmul.f32 0.03125, %v6136_v18 }
0x1244   :  { %7920 = vrsqrt.f32 %v6139_v19  ;;  %v6140_v23 = vadd.f32 1e-12, %v6138_v22 }
0x1246   :  { %7922 = vrsqrt.f32 %v6140_v23 }
0x124e   :  { %v7921_v2 = vpop.eup %7920 }
0x124f   :  { %v6143_v25 = vmul.f32 %v7921_v2, %v6127_v63 }
0x1250   :  { %v7923_v27 = vpop.eup %7922 }
0x1251   :  { %v6151_v5 = vmul.f32 %v6725_v24, %v6143_v25  ;;  %v6144_v29 = vmul.f32 %v7923_v27, %v6128_v59 }
0x1253   :  { %v6152_v30 = vmul.f32 %v6725_v24, %v6144_v29  ;;  %v6159_v1 = vadd.f32 %v6726_v62, %v6151_v5 }
0x1255   :  { %v6160_v11 = vadd.f32 %v6726_v62, %v6152_v30 }
0x1257   :  { %v6161_v32 = vpack.c.bf16 %v6160_v11, %v6159_v1 }
0x1259   :  { %7714 = vmatmul.mubr.msk.bf16.vlgmr.msra.gmra.mrb[196].mxu1 %vm348_vm1, %v6161_v32 }
0x125a   :  { %7719 = vmatprep.mubr.msk.bf16.mxu1 %vm7947_vm0, %v7946_v0  ;;  %7718 = vmatpush3.bf16.msra.mxu1 %v7835_v33 }
0x132c   :  { %v6222_v36 = vpop.f32.mrb[196].mxu1 }
0x132d   :  { %v6223_v38 = vadd.f32 %v6727_v34, %v6222_v36  ;;  %v7715_v51 = vpop.f32.mrb[197].mxu1 }
0x132e   :  { %v6225_v15 = vpop.f32.mrb[198].mxu1 }
0x132f   :  { %v6226_v8 = vadd.f32 %v6727_v34, %v6225_v15  ;;  %v7716_v40 = vpop.f32.mrb[199].mxu1  ;;  %7924 = vtanh.f32 %v6223_v38 }
0x1331   :  { %7926 = vtanh.f32 %v6226_v8 }
0x1339   :  { %v7925_v41 = vpop.eup %7924 }
0x133b   :  { %v7927_v61 = vpop.eup %7926 }
0x133c   :  { %v6231_v0 = vpack.c.bf16 %v7927_v61, %v7925_v41 }
0x133e   :  { %7720 = vmatmul.mubr.msk.bf16.vlgmr.msra.gmra.mrb[200].mxu1 %vm6247_vm5, %v6231_v0 }
0x1411   :  { %v6285_v20 = vpop.f32.mrb[200].mxu1 }
0x1412   :  { %v6286_v43 = vadd.f32 %v6731_v31, %v6285_v20  ;;  %v7721_v13 = vpop.f32.mrb[201].mxu1 }
0x1413   :  { %v6288_v45 = vpop.f32.mrb[202].mxu1 }
0x1414   :  { %v6734_v17 = vmul.f32 -1.442695, %v6286_v43  ;;  %v6289_v46 = vadd.f32 %v6731_v31, %v6288_v45  ;;  %v7722_v47 = vpop.f32.mrb[203].mxu1 }
0x1416   :  { %7928 = vpow2.f32 %v6734_v17  ;;  %v6735_v44 = vmul.f32 -1.442695, %v6289_v46 }
0x1418   :  { %7930 = vpow2.f32 %v6735_v44 }
0x1420   :  { %v7929_v48 = vpop.eup %7928 }
0x1421   :  { %v6298_v28 = vadd.f32 1.0, %v7929_v48 }
0x1422   :  { %v7931_v14 = vpop.eup %7930 }
0x1423   :  { %7932 = vrcp.f32 %v6298_v28  ;;  %v6299_v39 = vadd.f32 1.0, %v7931_v14 }
0x1425   :  { %7934 = vrcp.f32 %v6299_v39 }
0x142d   :  { %v7933_v16 = vpop.eup %7932 }
0x142e   :  { %6304 = vst [vmem:[%s9450_s18] sm:$0xff] %v7933_v16 }
0x142f   :  { %v7935_v21 = vpop.eup %7934 }
0x1430   :  { %6305 = vst [vmem:[%s9450_s18 + $0x8] sm:$0xff] %v7935_v21 }

</bundles_post_ra>
